<compile_context>
chip_gen: v5e
topology: v5e:2x2
jax: 0.10.0
libtpu: 0.0.40
codegen_flags: <defaults>
</compile_context>

<pallas_src>
import functools

import jax
import jax.numpy as jnp
from jax.experimental import pallas as pl
from jax.experimental.pallas import tpu as pltpu


def _round_up(x, m):
    return (x + m - 1) // m * m


# ---------------------------------------------------------------------------
# Fused Pallas kernels: matmul (K-accumulated) + bias + epilogue
#   grid = (N, Kp // tk);  axis 0 = batch ("parallel"), axis 1 = K ("arbitrary")
#   w_ref : (Coutp, tk)      bf16
#   x_ref : (1, tk, HWp)     bf16   (im2col patches^T for batch n)
#   b_ref : (Coutp, 1)       f32
#   o_ref : (1, Coutp, HWp)  f32
#   acc   : (Coutp, HWp)     f32 VMEM scratch
# ---------------------------------------------------------------------------
def _conv_in_kernel(w_ref, x_ref, b_ref, o_ref, acc_ref, *, hw, mode):
    k = pl.program_id(1)

    @pl.when(k == 0)
    def _():
        acc_ref[...] = jnp.zeros_like(acc_ref)

    acc_ref[...] += jnp.dot(
        w_ref[...], x_ref[0], preferred_element_type=jnp.float32
    )

    @pl.when(k == pl.num_programs(1) - 1)
    def _():
        y = acc_ref[...] + b_ref[...]  # (Coutp, HWp), bias broadcast over lanes
        if mode == "tanh":
            o_ref[0] = jnp.tanh(y)
        else:
            # InstanceNorm over the valid HW lanes (padded lanes masked out of
            # the sums; padded rows are all-zero and normalize to zero).
            lane = jax.lax.broadcasted_iota(jnp.int32, y.shape, 1)
            ym = jnp.where(lane < hw, y, 0.0)
            inv_hw = 1.0 / hw
            mean = jnp.sum(ym, axis=-1, keepdims=True) * inv_hw
            var = jnp.maximum(
                jnp.sum(ym * ym, axis=-1, keepdims=True) * inv_hw - mean * mean,
                0.0,
            )
            out = (y - mean) * jax.lax.rsqrt(var + 1e-5)
            if mode == "relu":
                out = jnp.maximum(out, 0.0)
            o_ref[0] = out


def _conv_in_res_kernel(w_ref, x_ref, b_ref, res_ref, o_ref, acc_ref, *, hw):
    # residual + InstanceNorm(conv(x))  (tail of a ResidualBlock, no ReLU)
    k = pl.program_id(1)

    @pl.when(k == 0)
    def _():
        acc_ref[...] = jnp.zeros_like(acc_ref)

    acc_ref[...] += jnp.dot(
        w_ref[...], x_ref[0], preferred_element_type=jnp.float32
    )

    @pl.when(k == pl.num_programs(1) - 1)
    def _():
        y = acc_ref[...] + b_ref[...]
        lane = jax.lax.broadcasted_iota(jnp.int32, y.shape, 1)
        ym = jnp.where(lane < hw, y, 0.0)
        inv_hw = 1.0 / hw
        mean = jnp.sum(ym, axis=-1, keepdims=True) * inv_hw
        var = jnp.maximum(
            jnp.sum(ym * ym, axis=-1, keepdims=True) * inv_hw - mean * mean, 0.0
        )
        o_ref[0] = res_ref[0] + (y - mean) * jax.lax.rsqrt(var + 1e-5)


# ---------------------------------------------------------------------------
# Conv2d (reflect padding) -> fused matmul + bias + IN(+ReLU/+res) or tanh
# ---------------------------------------------------------------------------
def conv2d_fused(x, w, b, *, stride=1, padding=0, pad_mode="reflect",
                 mode="relu", residual=None):
    """x: (N, Cin, H, W) f32, w: (Cout, Cin, kh, kw), b: (Cout,).
    mode in {"relu", "none", "tanh"}; if residual is given -> residual + IN."""
    N, Cin, H, W = x.shape
    Cout, _, kh, kw = w.shape
    if padding > 0:
        x = jnp.pad(
            x, ((0, 0), (0, 0), (padding, padding), (padding, padding)),
            mode=pad_mode,
        )
    _, _, Hp, Wp = x.shape
    Ho = (Hp - kh) // stride + 1
    Wo = (Wp - kw) // stride + 1

    # im2col -> patches^T with layout (N, K, Ho*Wo); K order = (cin, i, j),
    # matching w.reshape(Cout, Cin*kh*kw).
    cols = []
    for i in range(kh):
        for j in range(kw):
            cols.append(
                x[:, :, i: i + stride * (Ho - 1) + 1: stride,
                        j: j + stride * (Wo - 1) + 1: stride]
            )
    patches = jnp.stack(cols, axis=2).reshape(N, Cin * kh * kw, Ho * Wo)

    K = Cin * kh * kw
    HW = Ho * Wo
    tk = min(256, _round_up(K, 128))
    Kp = _round_up(K, tk)
    HWp = _round_up(HW, 128)
    Coutp = _round_up(Cout, 16)  # bf16 sublane packing; NOT padded to 128 lanes

    wmat = jnp.zeros((Coutp, Kp), jnp.bfloat16).at[:Cout, :K].set(
        w.reshape(Cout, K).astype(jnp.bfloat16)
    )
    xmat = jnp.zeros((N, Kp, HWp), jnp.bfloat16).at[:, :K, :HW].set(
        patches.astype(jnp.bfloat16)
    )
    bias = jnp.zeros((Coutp, 1), jnp.float32).at[:Cout, 0].set(b)

    nk = Kp // tk
    in_specs = [
        pl.BlockSpec((Coutp, tk), lambda n, k: (0, k)),
        pl.BlockSpec((1, tk, HWp), lambda n, k: (n, k, 0)),
        pl.BlockSpec((Coutp, 1), lambda n, k: (0, 0)),
    ]
    args = [wmat, xmat, bias]
    if residual is not None:
        resp = jnp.zeros((N, Coutp, HWp), jnp.float32).at[:, :Cout, :HW].set(
            residual.reshape(N, Cout, HW)
        )
        in_specs.append(pl.BlockSpec((1, Coutp, HWp), lambda n, k: (n, 0, 0)))
        args.append(resp)
        kern = functools.partial(_conv_in_res_kernel, hw=HW)
    else:
        kern = functools.partial(_conv_in_kernel, hw=HW, mode=mode)

    out = pl.pallas_call(
        kern,
        out_shape=jax.ShapeDtypeStruct((N, Coutp, HWp), jnp.float32),
        grid_spec=pltpu.PrefetchScalarGridSpec(
            num_scalar_prefetch=0,
            grid=(N, nk),
            in_specs=in_specs,
            out_specs=pl.BlockSpec((1, Coutp, HWp), lambda n, k: (n, 0, 0)),
            scratch_shapes=[pltpu.VMEM((Coutp, HWp), jnp.float32)],
        ),
        compiler_params=pltpu.CompilerParams(
            dimension_semantics=("parallel", "arbitrary"),
            vmem_limit_bytes=48 * 1024 * 1024,
        ),
    )(*args)
    return out[:, :Cout, :HW].reshape(N, Cout, Ho, Wo)


# ---------------------------------------------------------------------------
# ConvTranspose2d -> dilate + zero-pad + fused conv (flipped weights)
# ---------------------------------------------------------------------------
def conv_transpose2d_fused(x, w, b, *, stride=2, padding=1, output_padding=1,
                           mode="relu"):
    """PyTorch ConvTranspose2d + IN + ReLU.  x: (N,Cin,H,W), w: (Cin,Cout,kh,kw)."""
    N, Cin, H, W = x.shape
    _, Cout, kh, kw = w.shape
    Hd, Wd = (H - 1) * stride + 1, (W - 1) * stride + 1
    xd = jnp.zeros((N, Cin, Hd, Wd), x.dtype).at[:, :, ::stride, ::stride].set(x)
    pt = kh - 1 - padding
    pb = kh - 1 - padding + output_padding
    pL = kw - 1 - padding
    pR = kw - 1 - padding + output_padding
    xd = jnp.pad(xd, ((0, 0), (0, 0), (pt, pb), (pL, pR)))
    wflip = jnp.flip(w, axis=(2, 3)).transpose(1, 0, 2, 3)  # (Cout, Cin, kh, kw)
    # TODO(synk): replace dilated-input conv with stride^2 sub-pixel decomposition.
    return conv2d_fused(xd, wflip, b, stride=1, padding=0, mode=mode)


# ---------------------------------------------------------------------------
# Generator parameters + forward
# ---------------------------------------------------------------------------
def init_generator_params(key, img_channels=3, num_features=8, num_residuals=2):
    keys = iter(jax.random.split(key, 128))

    def cw(cout, cin, k):
        return 0.1 * jax.random.normal(next(keys), (cout, cin, k, k), jnp.float32)

    def ctw(cin, cout, k):
        return 0.1 * jax.random.normal(next(keys), (cin, cout, k, k), jnp.float32)

    def bias(c):
        return 0.01 * jax.random.normal(next(keys), (c,), jnp.float32)

    F = num_features
    return {
        "c1": (cw(F, img_channels, 7), bias(F)),
        "c2": (cw(2 * F, F, 3), bias(2 * F)),
        "c3": (cw(4 * F, 2 * F, 3), bias(4 * F)),
        "res": [
            {
                "w1": cw(4 * F, 4 * F, 3), "b1": bias(4 * F),
                "w2": cw(4 * F, 4 * F, 3), "b2": bias(4 * F),
            }
            for _ in range(num_residuals)
        ],
        "u1": (ctw(4 * F, 2 * F, 3), bias(2 * F)),
        "u2": (ctw(2 * F, F, 3), bias(F)),
        "cl": (cw(img_channels, F, 7), bias(img_channels)),
    }


def generator_forward(params, x):
    # ConvBlock(img_ch -> F, k7 s1 p3, reflect): Conv + IN + ReLU  (fused)
    h = conv2d_fused(x, *params["c1"], stride=1, padding=3, mode="relu")
    # ConvBlock(F -> 2F, k3 s2 p1, reflect)
    h = conv2d_fused(h, *params["c2"], stride=2, padding=1, mode="relu")
    # ConvBlock(2F -> 4F, k3 s2 p1, reflect)
    h = conv2d_fused(h, *params["c3"], stride=2, padding=1, mode="relu")
    # Residual blocks: x + IN(Conv(ReLU(IN(Conv(x)))))
    for r in params["res"]:
        t = conv2d_fused(h, r["w1"], r["b1"], stride=1, padding=1, mode="relu")
        h = conv2d_fused(t, r["w2"], r["b2"], stride=1, padding=1, residual=h)
    # ConvTransBlock(4F -> 2F), ConvTransBlock(2F -> F)
    h = conv_transpose2d_fused(h, *params["u1"], stride=2, padding=1,
                               output_padding=1, mode="relu")
    h = conv_transpose2d_fused(h, *params["u2"], stride=2, padding=1,
                               output_padding=1, mode="relu")
    # Final Conv(F -> img_ch, k7 s1 p3, reflect) + Tanh   (fused epilogue)
    return conv2d_fused(h, *params["cl"], stride=1, padding=3, mode="tanh")


if __name__ == "__main__":
    key = jax.random.PRNGKey(0)
    kp, kx = jax.random.split(key)

    IMG_CH, NUM_FEATURES, NUM_RESIDUALS = 3, 8, 2
    params = init_generator_params(
        kp, img_channels=IMG_CH, num_features=NUM_FEATURES,
        num_residuals=NUM_RESIDUALS,
    )
    x = jax.random.normal(kx, (2, IMG_CH, 16, 16), jnp.float32)

    fwd = jax.jit(generator_forward)
    out = fwd(params, x)
    jax.block_until_ready(out)

    assert out.shape == (2, IMG_CH, 16, 16), out.shape
    assert bool(jnp.all(jnp.isfinite(out)))
    assert bool(jnp.all(jnp.abs(out) <= 1.0))  # tanh range
    print("KERNEL_OK")
</pallas_src>

<mosaic_0001>
module attributes {stable_mosaic.version = 11 : i64} {
  func.func @_conv_in_kernel(%arg0: i32, %arg1: i32, %arg2: memref<16x256xbf16, #tpu.memory_space<vmem>>, %arg3: memref<1x256x256xbf16, #tpu.memory_space<vmem>>, %arg4: memref<16x1xf32, #tpu.memory_space<vmem>>, %arg5: memref<1x16x256xf32, #tpu.memory_space<vmem>>, %arg6: memref<16x256xf32, #tpu.memory_space<vmem>>) attributes {dimension_semantics = [#tpu.dimension_semantics<parallel>, #tpu.dimension_semantics<arbitrary>], iteration_bounds = array<i64: 2, 1>, scalar_prefetch = 0 : i64, scratch_operands = 1 : i64, tpu.core_type = #tpu.core_type<tc>, window_params = [{transform_indices = @transform_0, window_bounds = array<i64: 16, 256>}, {transform_indices = @transform_1, window_bounds = array<i64: 1, 256, 256>}, {pipeline_mode = #tpu.pipeline_mode<synchronous>, transform_indices = @transform_2, window_bounds = array<i64: 16, 1>}, {transform_indices = @transform_3, window_bounds = array<i64: 1, 16, 256>}]} {
    %c0_i32 = arith.constant 0 : i32
    %0 = arith.cmpi eq, %arg1, %c0_i32 : i32
    %1 = arith.extui %0 : i1 to i32
    %c0_i32_0 = arith.constant 0 : i32
    %2 = arith.cmpi ne, %1, %c0_i32_0 : i32
    scf.if %2 {
      %cst_11 = arith.constant 0.000000e+00 : f32
      %13 = vector.broadcast %cst_11 : f32 to vector<16x256xf32>
      %c0_12 = arith.constant 0 : index
      %c0_13 = arith.constant 0 : index
      %14 = vector.load %arg6[%c0_12, %c0_13] : memref<16x256xf32, #tpu.memory_space<vmem>>, vector<16x256xf32>
      tpu.vector_store %arg6[%c0_12, %c0_13], %13 {strides = array<i32>} : memref<16x256xf32, #tpu.memory_space<vmem>>, vector<16x256xf32>,
    } else {
    }
    %c0 = arith.constant 0 : index
    %c0_1 = arith.constant 0 : index
    %3 = vector.load %arg6[%c0, %c0_1] : memref<16x256xf32, #tpu.memory_space<vmem>>, vector<16x256xf32>
    %c0_2 = arith.constant 0 : index
    %c0_3 = arith.constant 0 : index
    %4 = vector.load %arg2[%c0_2, %c0_3] : memref<16x256xbf16, #tpu.memory_space<vmem>>, vector<16x256xbf16>
    %c0_4 = arith.constant 0 : index
    %c0_5 = arith.constant 0 : index
    %c0_6 = arith.constant 0 : index
    %5 = vector.load %arg3[%c0_4, %c0_5, %c0_6] : memref<1x256x256xbf16, #tpu.memory_space<vmem>>, vector<1x256x256xbf16>
    %6 = vector.shape_cast %5 : vector<1x256x256xbf16> to vector<256x256xbf16>
    %cst = arith.constant dense<0.000000e+00> : vector<16x256xf32>
    %7 = tpu.matmul %4, %6, %cst {dimension_numbers = #tpu.dot_dimension_numbers<[1], [0], [0], [1], [0, 0, 1, 1], [], []>} : vector<16x256xbf16>, vector<256x256xbf16>, vector<16x256xf32> -> vector<16x256xf32>
    %8 = arith.addf %3, %7 : vector<16x256xf32>
    %c0_7 = arith.constant 0 : index
    %c0_8 = arith.constant 0 : index
    %9 = vector.load %arg6[%c0_7, %c0_8] : memref<16x256xf32, #tpu.memory_space<vmem>>, vector<16x256xf32>
    tpu.vector_store %arg6[%c0_7, %c0_8], %8 {strides = array<i32>} : memref<16x256xf32, #tpu.memory_space<vmem>>, vector<16x256xf32>,
    %c0_i32_9 = arith.constant 0 : i32
    %10 = arith.cmpi eq, %arg1, %c0_i32_9 : i32
    %11 = arith.extui %10 : i1 to i32
    %c0_i32_10 = arith.constant 0 : i32
    %12 = arith.cmpi ne, %11, %c0_i32_10 : i32
    scf.if %12 {
      %c0_11 = arith.constant 0 : index
      %c0_12 = arith.constant 0 : index
      %13 = vector.load %arg6[%c0_11, %c0_12] : memref<16x256xf32, #tpu.memory_space<vmem>>, vector<16x256xf32>
      %c0_13 = arith.constant 0 : index
      %c0_14 = arith.constant 0 : index
      %14 = vector.load %arg4[%c0_13, %c0_14] : memref<16x1xf32, #tpu.memory_space<vmem>>, vector<16x1xf32>
      %15 = vector.broadcast %14 : vector<16x1xf32> to vector<16x256xf32>
      %16 = arith.addf %13, %15 : vector<16x256xf32>
      %17 = tpu.iota {dimensions = array<i32: 1>} : vector<16x256xi32>
      %c256_i32 = arith.constant 256 : i32
      %18 = vector.broadcast %c256_i32 : i32 to vector<16x256xi32>
      %19 = arith.cmpi slt, %17, %18 : vector<16x256xi32>
      %cst_15 = arith.constant 0.000000e+00 : f32
      %20 = vector.broadcast %cst_15 : f32 to vector<16x256xf32>
      %21 = arith.select %19, %16, %20 : vector<16x256xi1>, vector<16x256xf32>
      %cst_16 = arith.constant dense<0.000000e+00> : vector<16xf32>
      %22 = vector.multi_reduction <add>, %21, %cst_16 [1] : vector<16x256xf32> to vector<16xf32>
      %23 = vector.shape_cast %22 : vector<16xf32> to vector<16x1xf32>
      %cst_17 = arith.constant 3.906250e-03 : f32
      %24 = vector.broadcast %cst_17 : f32 to vector<16x1xf32>
      %25 = arith.mulf %23, %24 : vector<16x1xf32>
      %26 = arith.mulf %21, %21 : vector<16x256xf32>
      %cst_18 = arith.constant dense<0.000000e+00> : vector<16xf32>
      %27 = vector.multi_reduction <add>, %26, %cst_18 [1] : vector<16x256xf32> to vector<16xf32>
      %28 = vector.shape_cast %27 : vector<16xf32> to vector<16x1xf32>
      %cst_19 = arith.constant 3.906250e-03 : f32
      %29 = vector.broadcast %cst_19 : f32 to vector<16x1xf32>
      %30 = arith.mulf %28, %29 : vector<16x1xf32>
      %31 = arith.mulf %25, %25 : vector<16x1xf32>
      %32 = arith.subf %30, %31 : vector<16x1xf32>
      %cst_20 = arith.constant 0.000000e+00 : f32
      %33 = vector.broadcast %cst_20 : f32 to vector<16x1xf32>
      %34 = arith.maximumf %32, %33 : vector<16x1xf32>
      %35 = vector.broadcast %25 : vector<16x1xf32> to vector<16x256xf32>
      %36 = arith.subf %16, %35 : vector<16x256xf32>
      %cst_21 = arith.constant 9.99999974E-6 : f32
      %37 = vector.broadcast %cst_21 : f32 to vector<16x1xf32>
      %38 = arith.addf %34, %37 : vector<16x1xf32>
      %39 = math.rsqrt %38 : vector<16x1xf32>
      %40 = vector.broadcast %39 : vector<16x1xf32> to vector<16x256xf32>
      %41 = arith.mulf %36, %40 : vector<16x256xf32>
      %cst_22 = arith.constant 0.000000e+00 : f32
      %42 = vector.broadcast %cst_22 : f32 to vector<16x256xf32>
      %43 = arith.maximumf %41, %42 : vector<16x256xf32>
      %c0_23 = arith.constant 0 : index
      %c0_24 = arith.constant 0 : index
      %c0_25 = arith.constant 0 : index
      %44 = vector.load %arg5[%c0_23, %c0_24, %c0_25] : memref<1x16x256xf32, #tpu.memory_space<vmem>>, vector<1x16x256xf32>
      %45 = vector.shape_cast %44 : vector<1x16x256xf32> to vector<16x256xf32>
      %46 = vector.shape_cast %43 : vector<16x256xf32> to vector<1x16x256xf32>
      tpu.vector_store %arg5[%c0_23, %c0_24, %c0_25], %46 {strides = array<i32>} : memref<1x16x256xf32, #tpu.memory_space<vmem>>, vector<1x16x256xf32>,
    } else {
    }
    return
  }
  func.func @transform_0(%arg0: i32, %arg1: i32) -> (i32, i32) {
    %c0_i32 = arith.constant 0 : i32
    %c0_i32_0 = arith.constant 0 : i32
    return %c0_i32, %arg1 : i32, i32
  }
  func.func @transform_1(%arg0: i32, %arg1: i32) -> (i32, i32, i32) {
    %c0_i32 = arith.constant 0 : i32
    %c0_i32_0 = arith.constant 0 : i32
    return %arg0, %arg1, %c0_i32 : i32, i32, i32
  }
  func.func @transform_2(%arg0: i32, %arg1: i32) -> (i32, i32) {
    %c0_i32 = arith.constant 0 : i32
    %c0_i32_0 = arith.constant 0 : i32
    %c0_i32_1 = arith.constant 0 : i32
    return %c0_i32, %c0_i32_0 : i32, i32
  }
  func.func @transform_3(%arg0: i32, %arg1: i32) -> (i32, i32, i32) {
    %c0_i32 = arith.constant 0 : i32
    %c0_i32_0 = arith.constant 0 : i32
    %c0_i32_1 = arith.constant 0 : i32
    return %arg0, %c0_i32, %c0_i32_0 : i32, i32, i32
  }
}

module attributes {stable_mosaic.version = 11 : i64} {
  func.func @_conv_in_kernel(%arg0: i32, %arg1: i32, %arg2: memref<16x128xbf16, #tpu.memory_space<vmem>>, %arg3: memref<1x128x128xbf16, #tpu.memory_space<vmem>>, %arg4: memref<16x1xf32, #tpu.memory_space<vmem>>, %arg5: memref<1x16x128xf32, #tpu.memory_space<vmem>>, %arg6: memref<16x128xf32, #tpu.memory_space<vmem>>) attributes {dimension_semantics = [#tpu.dimension_semantics<parallel>, #tpu.dimension_semantics<arbitrary>], iteration_bounds = array<i64: 2, 1>, scalar_prefetch = 0 : i64, scratch_operands = 1 : i64, tpu.core_type = #tpu.core_type<tc>, window_params = [{transform_indices = @transform_0, window_bounds = array<i64: 16, 128>}, {transform_indices = @transform_1, window_bounds = array<i64: 1, 128, 128>}, {pipeline_mode = #tpu.pipeline_mode<synchronous>, transform_indices = @transform_2, window_bounds = array<i64: 16, 1>}, {transform_indices = @transform_3, window_bounds = array<i64: 1, 16, 128>}]} {
    %c0_i32 = arith.constant 0 : i32
    %0 = arith.cmpi eq, %arg1, %c0_i32 : i32
    %1 = arith.extui %0 : i1 to i32
    %c0_i32_0 = arith.constant 0 : i32
    %2 = arith.cmpi ne, %1, %c0_i32_0 : i32
    scf.if %2 {
      %cst_11 = arith.constant 0.000000e+00 : f32
      %13 = vector.broadcast %cst_11 : f32 to vector<16x128xf32>
      %c0_12 = arith.constant 0 : index
      %c0_13 = arith.constant 0 : index
      %14 = vector.load %arg6[%c0_12, %c0_13] : memref<16x128xf32, #tpu.memory_space<vmem>>, vector<16x128xf32>
      tpu.vector_store %arg6[%c0_12, %c0_13], %13 {strides = array<i32>} : memref<16x128xf32, #tpu.memory_space<vmem>>, vector<16x128xf32>,
    } else {
    }
    %c0 = arith.constant 0 : index
    %c0_1 = arith.constant 0 : index
    %3 = vector.load %arg6[%c0, %c0_1] : memref<16x128xf32, #tpu.memory_space<vmem>>, vector<16x128xf32>
    %c0_2 = arith.constant 0 : index
    %c0_3 = arith.constant 0 : index
    %4 = vector.load %arg2[%c0_2, %c0_3] : memref<16x128xbf16, #tpu.memory_space<vmem>>, vector<16x128xbf16>
    %c0_4 = arith.constant 0 : index
    %c0_5 = arith.constant 0 : index
    %c0_6 = arith.constant 0 : index
    %5 = vector.load %arg3[%c0_4, %c0_5, %c0_6] : memref<1x128x128xbf16, #tpu.memory_space<vmem>>, vector<1x128x128xbf16>
    %6 = vector.shape_cast %5 : vector<1x128x128xbf16> to vector<128x128xbf16>
    %cst = arith.constant dense<0.000000e+00> : vector<16x128xf32>
    %7 = tpu.matmul %4, %6, %cst {dimension_numbers = #tpu.dot_dimension_numbers<[1], [0], [0], [1], [0, 0, 1, 1], [], []>} : vector<16x128xbf16>, vector<128x128xbf16>, vector<16x128xf32> -> vector<16x128xf32>
    %8 = arith.addf %3, %7 : vector<16x128xf32>
    %c0_7 = arith.constant 0 : index
    %c0_8 = arith.constant 0 : index
    %9 = vector.load %arg6[%c0_7, %c0_8] : memref<16x128xf32, #tpu.memory_space<vmem>>, vector<16x128xf32>
    tpu.vector_store %arg6[%c0_7, %c0_8], %8 {strides = array<i32>} : memref<16x128xf32, #tpu.memory_space<vmem>>, vector<16x128xf32>,
    %c0_i32_9 = arith.constant 0 : i32
    %10 = arith.cmpi eq, %arg1, %c0_i32_9 : i32
    %11 = arith.extui %10 : i1 to i32
    %c0_i32_10 = arith.constant 0 : i32
    %12 = arith.cmpi ne, %11, %c0_i32_10 : i32
    scf.if %12 {
      %c0_11 = arith.constant 0 : index
      %c0_12 = arith.constant 0 : index
      %13 = vector.load %arg6[%c0_11, %c0_12] : memref<16x128xf32, #tpu.memory_space<vmem>>, vector<16x128xf32>
      %c0_13 = arith.constant 0 : index
      %c0_14 = arith.constant 0 : index
      %14 = vector.load %arg4[%c0_13, %c0_14] : memref<16x1xf32, #tpu.memory_space<vmem>>, vector<16x1xf32>
      %15 = vector.broadcast %14 : vector<16x1xf32> to vector<16x128xf32>
      %16 = arith.addf %13, %15 : vector<16x128xf32>
      %17 = tpu.iota {dimensions = array<i32: 1>} : vector<16x128xi32>
      %c64_i32 = arith.constant 64 : i32
      %18 = vector.broadcast %c64_i32 : i32 to vector<16x128xi32>
      %19 = arith.cmpi slt, %17, %18 : vector<16x128xi32>
      %cst_15 = arith.constant 0.000000e+00 : f32
      %20 = vector.broadcast %cst_15 : f32 to vector<16x128xf32>
      %21 = arith.select %19, %16, %20 : vector<16x128xi1>, vector<16x128xf32>
      %cst_16 = arith.constant dense<0.000000e+00> : vector<16xf32>
      %22 = vector.multi_reduction <add>, %21, %cst_16 [1] : vector<16x128xf32> to vector<16xf32>
      %23 = vector.shape_cast %22 : vector<16xf32> to vector<16x1xf32>
      %cst_17 = arith.constant 1.562500e-02 : f32
      %24 = vector.broadcast %cst_17 : f32 to vector<16x1xf32>
      %25 = arith.mulf %23, %24 : vector<16x1xf32>
      %26 = arith.mulf %21, %21 : vector<16x128xf32>
      %cst_18 = arith.constant dense<0.000000e+00> : vector<16xf32>
      %27 = vector.multi_reduction <add>, %26, %cst_18 [1] : vector<16x128xf32> to vector<16xf32>
      %28 = vector.shape_cast %27 : vector<16xf32> to vector<16x1xf32>
      %cst_19 = arith.constant 1.562500e-02 : f32
      %29 = vector.broadcast %cst_19 : f32 to vector<16x1xf32>
      %30 = arith.mulf %28, %29 : vector<16x1xf32>
      %31 = arith.mulf %25, %25 : vector<16x1xf32>
      %32 = arith.subf %30, %31 : vector<16x1xf32>
      %cst_20 = arith.constant 0.000000e+00 : f32
      %33 = vector.broadcast %cst_20 : f32 to vector<16x1xf32>
      %34 = arith.maximumf %32, %33 : vector<16x1xf32>
      %35 = vector.broadcast %25 : vector<16x1xf32> to vector<16x128xf32>
      %36 = arith.subf %16, %35 : vector<16x128xf32>
      %cst_21 = arith.constant 9.99999974E-6 : f32
      %37 = vector.broadcast %cst_21 : f32 to vector<16x1xf32>
      %38 = arith.addf %34, %37 : vector<16x1xf32>
      %39 = math.rsqrt %38 : vector<16x1xf32>
      %40 = vector.broadcast %39 : vector<16x1xf32> to vector<16x128xf32>
      %41 = arith.mulf %36, %40 : vector<16x128xf32>
      %cst_22 = arith.constant 0.000000e+00 : f32
      %42 = vector.broadcast %cst_22 : f32 to vector<16x128xf32>
      %43 = arith.maximumf %41, %42 : vector<16x128xf32>
      %c0_23 = arith.constant 0 : index
      %c0_24 = arith.constant 0 : index
      %c0_25 = arith.constant 0 : index
      %44 = vector.load %arg5[%c0_23, %c0_24, %c0_25] : memref<1x16x128xf32, #tpu.memory_space<vmem>>, vector<1x16x128xf32>
      %45 = vector.shape_cast %44 : vector<1x16x128xf32> to vector<16x128xf32>
      %46 = vector.shape_cast %43 : vector<16x128xf32> to vector<1x16x128xf32>
      tpu.vector_store %arg5[%c0_23, %c0_24, %c0_25], %46 {strides = array<i32>} : memref<1x16x128xf32, #tpu.memory_space<vmem>>, vector<1x16x128xf32>,
    } else {
    }
    return
  }
  func.func @transform_0(%arg0: i32, %arg1: i32) -> (i32, i32) {
    %c0_i32 = arith.constant 0 : i32
    %c0_i32_0 = arith.constant 0 : i32
    return %c0_i32, %arg1 : i32, i32
  }
  func.func @transform_1(%arg0: i32, %arg1: i32) -> (i32, i32, i32) {
    %c0_i32 = arith.constant 0 : i32
    %c0_i32_0 = arith.constant 0 : i32
    return %arg0, %arg1, %c0_i32 : i32, i32, i32
  }
  func.func @transform_2(%arg0: i32, %arg1: i32) -> (i32, i32) {
    %c0_i32 = arith.constant 0 : i32
    %c0_i32_0 = arith.constant 0 : i32
    %c0_i32_1 = arith.constant 0 : i32
    return %c0_i32, %c0_i32_0 : i32, i32
  }
  func.func @transform_3(%arg0: i32, %arg1: i32) -> (i32, i32, i32) {
    %c0_i32 = arith.constant 0 : i32
    %c0_i32_0 = arith.constant 0 : i32
    %c0_i32_1 = arith.constant 0 : i32
    return %arg0, %c0_i32, %c0_i32_0 : i32, i32, i32
  }
}

module attributes {stable_mosaic.version = 11 : i64} {
  func.func @_conv_in_kernel(%arg0: i32, %arg1: i32, %arg2: memref<32x256xbf16, #tpu.memory_space<vmem>>, %arg3: memref<1x256x128xbf16, #tpu.memory_space<vmem>>, %arg4: memref<32x1xf32, #tpu.memory_space<vmem>>, %arg5: memref<1x32x128xf32, #tpu.memory_space<vmem>>, %arg6: memref<32x128xf32, #tpu.memory_space<vmem>>) attributes {dimension_semantics = [#tpu.dimension_semantics<parallel>, #tpu.dimension_semantics<arbitrary>], iteration_bounds = array<i64: 2, 1>, scalar_prefetch = 0 : i64, scratch_operands = 1 : i64, tpu.core_type = #tpu.core_type<tc>, window_params = [{transform_indices = @transform_0, window_bounds = array<i64: 32, 256>}, {transform_indices = @transform_1, window_bounds = array<i64: 1, 256, 128>}, {pipeline_mode = #tpu.pipeline_mode<synchronous>, transform_indices = @transform_2, window_bounds = array<i64: 32, 1>}, {transform_indices = @transform_3, window_bounds = array<i64: 1, 32, 128>}]} {
    %c0_i32 = arith.constant 0 : i32
    %0 = arith.cmpi eq, %arg1, %c0_i32 : i32
    %1 = arith.extui %0 : i1 to i32
    %c0_i32_0 = arith.constant 0 : i32
    %2 = arith.cmpi ne, %1, %c0_i32_0 : i32
    scf.if %2 {
      %cst_11 = arith.constant 0.000000e+00 : f32
      %13 = vector.broadcast %cst_11 : f32 to vector<32x128xf32>
      %c0_12 = arith.constant 0 : index
      %c0_13 = arith.constant 0 : index
      %14 = vector.load %arg6[%c0_12, %c0_13] : memref<32x128xf32, #tpu.memory_space<vmem>>, vector<32x128xf32>
      tpu.vector_store %arg6[%c0_12, %c0_13], %13 {strides = array<i32>} : memref<32x128xf32, #tpu.memory_space<vmem>>, vector<32x128xf32>,
    } else {
    }
    %c0 = arith.constant 0 : index
    %c0_1 = arith.constant 0 : index
    %3 = vector.load %arg6[%c0, %c0_1] : memref<32x128xf32, #tpu.memory_space<vmem>>, vector<32x128xf32>
    %c0_2 = arith.constant 0 : index
    %c0_3 = arith.constant 0 : index
    %4 = vector.load %arg2[%c0_2, %c0_3] : memref<32x256xbf16, #tpu.memory_space<vmem>>, vector<32x256xbf16>
    %c0_4 = arith.constant 0 : index
    %c0_5 = arith.constant 0 : index
    %c0_6 = arith.constant 0 : index
    %5 = vector.load %arg3[%c0_4, %c0_5, %c0_6] : memref<1x256x128xbf16, #tpu.memory_space<vmem>>, vector<1x256x128xbf16>
    %6 = vector.shape_cast %5 : vector<1x256x128xbf16> to vector<256x128xbf16>
    %cst = arith.constant dense<0.000000e+00> : vector<32x128xf32>
    %7 = tpu.matmul %4, %6, %cst {dimension_numbers = #tpu.dot_dimension_numbers<[1], [0], [0], [1], [0, 0, 1, 1], [], []>} : vector<32x256xbf16>, vector<256x128xbf16>, vector<32x128xf32> -> vector<32x128xf32>
    %8 = arith.addf %3, %7 : vector<32x128xf32>
    %c0_7 = arith.constant 0 : index
    %c0_8 = arith.constant 0 : index
    %9 = vector.load %arg6[%c0_7, %c0_8] : memref<32x128xf32, #tpu.memory_space<vmem>>, vector<32x128xf32>
    tpu.vector_store %arg6[%c0_7, %c0_8], %8 {strides = array<i32>} : memref<32x128xf32, #tpu.memory_space<vmem>>, vector<32x128xf32>,
    %c0_i32_9 = arith.constant 0 : i32
    %10 = arith.cmpi eq, %arg1, %c0_i32_9 : i32
    %11 = arith.extui %10 : i1 to i32
    %c0_i32_10 = arith.constant 0 : i32
    %12 = arith.cmpi ne, %11, %c0_i32_10 : i32
    scf.if %12 {
      %c0_11 = arith.constant 0 : index
      %c0_12 = arith.constant 0 : index
      %13 = vector.load %arg6[%c0_11, %c0_12] : memref<32x128xf32, #tpu.memory_space<vmem>>, vector<32x128xf32>
      %c0_13 = arith.constant 0 : index
      %c0_14 = arith.constant 0 : index
      %14 = vector.load %arg4[%c0_13, %c0_14] : memref<32x1xf32, #tpu.memory_space<vmem>>, vector<32x1xf32>
      %15 = vector.broadcast %14 : vector<32x1xf32> to vector<32x128xf32>
      %16 = arith.addf %13, %15 : vector<32x128xf32>
      %17 = tpu.iota {dimensions = array<i32: 1>} : vector<32x128xi32>
      %c16_i32 = arith.constant 16 : i32
      %18 = vector.broadcast %c16_i32 : i32 to vector<32x128xi32>
      %19 = arith.cmpi slt, %17, %18 : vector<32x128xi32>
      %cst_15 = arith.constant 0.000000e+00 : f32
      %20 = vector.broadcast %cst_15 : f32 to vector<32x128xf32>
      %21 = arith.select %19, %16, %20 : vector<32x128xi1>, vector<32x128xf32>
      %cst_16 = arith.constant dense<0.000000e+00> : vector<32xf32>
      %22 = vector.multi_reduction <add>, %21, %cst_16 [1] : vector<32x128xf32> to vector<32xf32>
      %23 = vector.shape_cast %22 : vector<32xf32> to vector<32x1xf32>
      %cst_17 = arith.constant 6.250000e-02 : f32
      %24 = vector.broadcast %cst_17 : f32 to vector<32x1xf32>
      %25 = arith.mulf %23, %24 : vector<32x1xf32>
      %26 = arith.mulf %21, %21 : vector<32x128xf32>
      %cst_18 = arith.constant dense<0.000000e+00> : vector<32xf32>
      %27 = vector.multi_reduction <add>, %26, %cst_18 [1] : vector<32x128xf32> to vector<32xf32>
      %28 = vector.shape_cast %27 : vector<32xf32> to vector<32x1xf32>
      %cst_19 = arith.constant 6.250000e-02 : f32
      %29 = vector.broadcast %cst_19 : f32 to vector<32x1xf32>
      %30 = arith.mulf %28, %29 : vector<32x1xf32>
      %31 = arith.mulf %25, %25 : vector<32x1xf32>
      %32 = arith.subf %30, %31 : vector<32x1xf32>
      %cst_20 = arith.constant 0.000000e+00 : f32
      %33 = vector.broadcast %cst_20 : f32 to vector<32x1xf32>
      %34 = arith.maximumf %32, %33 : vector<32x1xf32>
      %35 = vector.broadcast %25 : vector<32x1xf32> to vector<32x128xf32>
      %36 = arith.subf %16, %35 : vector<32x128xf32>
      %cst_21 = arith.constant 9.99999974E-6 : f32
      %37 = vector.broadcast %cst_21 : f32 to vector<32x1xf32>
      %38 = arith.addf %34, %37 : vector<32x1xf32>
      %39 = math.rsqrt %38 : vector<32x1xf32>
      %40 = vector.broadcast %39 : vector<32x1xf32> to vector<32x128xf32>
      %41 = arith.mulf %36, %40 : vector<32x128xf32>
      %cst_22 = arith.constant 0.000000e+00 : f32
      %42 = vector.broadcast %cst_22 : f32 to vector<32x128xf32>
      %43 = arith.maximumf %41, %42 : vector<32x128xf32>
      %c0_23 = arith.constant 0 : index
      %c0_24 = arith.constant 0 : index
      %c0_25 = arith.constant 0 : index
      %44 = vector.load %arg5[%c0_23, %c0_24, %c0_25] : memref<1x32x128xf32, #tpu.memory_space<vmem>>, vector<1x32x128xf32>
      %45 = vector.shape_cast %44 : vector<1x32x128xf32> to vector<32x128xf32>
      %46 = vector.shape_cast %43 : vector<32x128xf32> to vector<1x32x128xf32>
      tpu.vector_store %arg5[%c0_23, %c0_24, %c0_25], %46 {strides = array<i32>} : memref<1x32x128xf32, #tpu.memory_space<vmem>>, vector<1x32x128xf32>,
    } else {
    }
    return
  }
  func.func @transform_0(%arg0: i32, %arg1: i32) -> (i32, i32) {
    %c0_i32 = arith.constant 0 : i32
    %c0_i32_0 = arith.constant 0 : i32
    return %c0_i32, %arg1 : i32, i32
  }
  func.func @transform_1(%arg0: i32, %arg1: i32) -> (i32, i32, i32) {
    %c0_i32 = arith.constant 0 : i32
    %c0_i32_0 = arith.constant 0 : i32
    return %arg0, %arg1, %c0_i32 : i32, i32, i32
  }
  func.func @transform_2(%arg0: i32, %arg1: i32) -> (i32, i32) {
    %c0_i32 = arith.constant 0 : i32
    %c0_i32_0 = arith.constant 0 : i32
    %c0_i32_1 = arith.constant 0 : i32
    return %c0_i32, %c0_i32_0 : i32, i32
  }
  func.func @transform_3(%arg0: i32, %arg1: i32) -> (i32, i32, i32) {
    %c0_i32 = arith.constant 0 : i32
    %c0_i32_0 = arith.constant 0 : i32
    %c0_i32_1 = arith.constant 0 : i32
    return %arg0, %c0_i32, %c0_i32_0 : i32, i32, i32
  }
}

module attributes {stable_mosaic.version = 11 : i64} {
  func.func @_conv_in_res_kernel(%arg0: i32, %arg1: i32, %arg2: memref<32x256xbf16, #tpu.memory_space<vmem>>, %arg3: memref<1x256x128xbf16, #tpu.memory_space<vmem>>, %arg4: memref<32x1xf32, #tpu.memory_space<vmem>>, %arg5: memref<1x32x128xf32, #tpu.memory_space<vmem>>, %arg6: memref<1x32x128xf32, #tpu.memory_space<vmem>>, %arg7: memref<32x128xf32, #tpu.memory_space<vmem>>) attributes {dimension_semantics = [#tpu.dimension_semantics<parallel>, #tpu.dimension_semantics<arbitrary>], iteration_bounds = array<i64: 2, 2>, scalar_prefetch = 0 : i64, scratch_operands = 1 : i64, tpu.core_type = #tpu.core_type<tc>, window_params = [{transform_indices = @transform_0, window_bounds = array<i64: 32, 256>}, {transform_indices = @transform_1, window_bounds = array<i64: 1, 256, 128>}, {pipeline_mode = #tpu.pipeline_mode<synchronous>, transform_indices = @transform_2, window_bounds = array<i64: 32, 1>}, {transform_indices = @transform_3, window_bounds = array<i64: 1, 32, 128>}, {transform_indices = @transform_4, window_bounds = array<i64: 1, 32, 128>}]} {
    %c0_i32 = arith.constant 0 : i32
    %0 = arith.cmpi eq, %arg1, %c0_i32 : i32
    %1 = arith.extui %0 : i1 to i32
    %c0_i32_0 = arith.constant 0 : i32
    %2 = arith.cmpi ne, %1, %c0_i32_0 : i32
    scf.if %2 {
      %cst_10 = arith.constant 0.000000e+00 : f32
      %13 = vector.broadcast %cst_10 : f32 to vector<32x128xf32>
      %c0_11 = arith.constant 0 : index
      %c0_12 = arith.constant 0 : index
      %14 = vector.load %arg7[%c0_11, %c0_12] : memref<32x128xf32, #tpu.memory_space<vmem>>, vector<32x128xf32>
      tpu.vector_store %arg7[%c0_11, %c0_12], %13 {strides = array<i32>} : memref<32x128xf32, #tpu.memory_space<vmem>>, vector<32x128xf32>,
    } else {
    }
    %c0 = arith.constant 0 : index
    %c0_1 = arith.constant 0 : index
    %3 = vector.load %arg7[%c0, %c0_1] : memref<32x128xf32, #tpu.memory_space<vmem>>, vector<32x128xf32>
    %c0_2 = arith.constant 0 : index
    %c0_3 = arith.constant 0 : index
    %4 = vector.load %arg2[%c0_2, %c0_3] : memref<32x256xbf16, #tpu.memory_space<vmem>>, vector<32x256xbf16>
    %c0_4 = arith.constant 0 : index
    %c0_5 = arith.constant 0 : index
    %c0_6 = arith.constant 0 : index
    %5 = vector.load %arg3[%c0_4, %c0_5, %c0_6] : memref<1x256x128xbf16, #tpu.memory_space<vmem>>, vector<1x256x128xbf16>
    %6 = vector.shape_cast %5 : vector<1x256x128xbf16> to vector<256x128xbf16>
    %cst = arith.constant dense<0.000000e+00> : vector<32x128xf32>
    %7 = tpu.matmul %4, %6, %cst {dimension_numbers = #tpu.dot_dimension_numbers<[1], [0], [0], [1], [0, 0, 1, 1], [], []>} : vector<32x256xbf16>, vector<256x128xbf16>, vector<32x128xf32> -> vector<32x128xf32>
    %8 = arith.addf %3, %7 : vector<32x128xf32>
    %c0_7 = arith.constant 0 : index
    %c0_8 = arith.constant 0 : index
    %9 = vector.load %arg7[%c0_7, %c0_8] : memref<32x128xf32, #tpu.memory_space<vmem>>, vector<32x128xf32>
    tpu.vector_store %arg7[%c0_7, %c0_8], %8 {strides = array<i32>} : memref<32x128xf32, #tpu.memory_space<vmem>>, vector<32x128xf32>,
    %c1_i32 = arith.constant 1 : i32
    %10 = arith.cmpi eq, %arg1, %c1_i32 : i32
    %11 = arith.extui %10 : i1 to i32
    %c0_i32_9 = arith.constant 0 : i32
    %12 = arith.cmpi ne, %11, %c0_i32_9 : i32
    scf.if %12 {
      %c0_10 = arith.constant 0 : index
      %c0_11 = arith.constant 0 : index
      %13 = vector.load %arg7[%c0_10, %c0_11] : memref<32x128xf32, #tpu.memory_space<vmem>>, vector<32x128xf32>
      %c0_12 = arith.constant 0 : index
      %c0_13 = arith.constant 0 : index
      %14 = vector.load %arg4[%c0_12, %c0_13] : memref<32x1xf32, #tpu.memory_space<vmem>>, vector<32x1xf32>
      %15 = vector.broadcast %14 : vector<32x1xf32> to vector<32x128xf32>
      %16 = arith.addf %13, %15 : vector<32x128xf32>
      %17 = tpu.iota {dimensions = array<i32: 1>} : vector<32x128xi32>
      %c16_i32 = arith.constant 16 : i32
      %18 = vector.broadcast %c16_i32 : i32 to vector<32x128xi32>
      %19 = arith.cmpi slt, %17, %18 : vector<32x128xi32>
      %cst_14 = arith.constant 0.000000e+00 : f32
      %20 = vector.broadcast %cst_14 : f32 to vector<32x128xf32>
      %21 = arith.select %19, %16, %20 : vector<32x128xi1>, vector<32x128xf32>
      %cst_15 = arith.constant dense<0.000000e+00> : vector<32xf32>
      %22 = vector.multi_reduction <add>, %21, %cst_15 [1] : vector<32x128xf32> to vector<32xf32>
      %23 = vector.shape_cast %22 : vector<32xf32> to vector<32x1xf32>
      %cst_16 = arith.constant 6.250000e-02 : f32
      %24 = vector.broadcast %cst_16 : f32 to vector<32x1xf32>
      %25 = arith.mulf %23, %24 : vector<32x1xf32>
      %26 = arith.mulf %21, %21 : vector<32x128xf32>
      %cst_17 = arith.constant dense<0.000000e+00> : vector<32xf32>
      %27 = vector.multi_reduction <add>, %26, %cst_17 [1] : vector<32x128xf32> to vector<32xf32>
      %28 = vector.shape_cast %27 : vector<32xf32> to vector<32x1xf32>
      %cst_18 = arith.constant 6.250000e-02 : f32
      %29 = vector.broadcast %cst_18 : f32 to vector<32x1xf32>
      %30 = arith.mulf %28, %29 : vector<32x1xf32>
      %31 = arith.mulf %25, %25 : vector<32x1xf32>
      %32 = arith.subf %30, %31 : vector<32x1xf32>
      %cst_19 = arith.constant 0.000000e+00 : f32
      %33 = vector.broadcast %cst_19 : f32 to vector<32x1xf32>
      %34 = arith.maximumf %32, %33 : vector<32x1xf32>
      %c0_20 = arith.constant 0 : index
      %c0_21 = arith.constant 0 : index
      %c0_22 = arith.constant 0 : index
      %35 = vector.load %arg5[%c0_20, %c0_21, %c0_22] : memref<1x32x128xf32, #tpu.memory_space<vmem>>, vector<1x32x128xf32>
      %36 = vector.shape_cast %35 : vector<1x32x128xf32> to vector<32x128xf32>
      %37 = vector.broadcast %25 : vector<32x1xf32> to vector<32x128xf32>
      %38 = arith.subf %16, %37 : vector<32x128xf32>
      %cst_23 = arith.constant 9.99999974E-6 : f32
      %39 = vector.broadcast %cst_23 : f32 to vector<32x1xf32>
      %40 = arith.addf %34, %39 : vector<32x1xf32>
      %41 = math.rsqrt %40 : vector<32x1xf32>
      %42 = vector.broadcast %41 : vector<32x1xf32> to vector<32x128xf32>
      %43 = arith.mulf %38, %42 : vector<32x128xf32>
      %44 = arith.addf %36, %43 : vector<32x128xf32>
      %c0_24 = arith.constant 0 : index
      %c0_25 = arith.constant 0 : index
      %c0_26 = arith.constant 0 : index
      %45 = vector.load %arg6[%c0_24, %c0_25, %c0_26] : memref<1x32x128xf32, #tpu.memory_space<vmem>>, vector<1x32x128xf32>
      %46 = vector.shape_cast %45 : vector<1x32x128xf32> to vector<32x128xf32>
      %47 = vector.shape_cast %44 : vector<32x128xf32> to vector<1x32x128xf32>
      tpu.vector_store %arg6[%c0_24, %c0_25, %c0_26], %47 {strides = array<i32>} : memref<1x32x128xf32, #tpu.memory_space<vmem>>, vector<1x32x128xf32>,
    } else {
    }
    return
  }
  func.func @transform_0(%arg0: i32, %arg1: i32) -> (i32, i32) {
    %c0_i32 = arith.constant 0 : i32
    %c0_i32_0 = arith.constant 0 : i32
    return %c0_i32, %arg1 : i32, i32
  }
  func.func @transform_1(%arg0: i32, %arg1: i32) -> (i32, i32, i32) {
    %c0_i32 = arith.constant 0 : i32
    %c0_i32_0 = arith.constant 0 : i32
    return %arg0, %arg1, %c0_i32 : i32, i32, i32
  }
  func.func @transform_2(%arg0: i32, %arg1: i32) -> (i32, i32) {
    %c0_i32 = arith.constant 0 : i32
    %c0_i32_0 = arith.constant 0 : i32
    %c0_i32_1 = arith.constant 0 : i32
    return %c0_i32, %c0_i32_0 : i32, i32
  }
  func.func @transform_3(%arg0: i32, %arg1: i32) -> (i32, i32, i32) {
    %c0_i32 = arith.constant 0 : i32
    %c0_i32_0 = arith.constant 0 : i32
    %c0_i32_1 = arith.constant 0 : i32
    return %arg0, %c0_i32, %c0_i32_0 : i32, i32, i32
  }
  func.func @transform_4(%arg0: i32, %arg1: i32) -> (i32, i32, i32) {
    %c0_i32 = arith.constant 0 : i32
    %c0_i32_0 = arith.constant 0 : i32
    %c0_i32_1 = arith.constant 0 : i32
    return %arg0, %c0_i32, %c0_i32_0 : i32, i32, i32
  }
}

module attributes {stable_mosaic.version = 11 : i64} {
  func.func @_conv_in_kernel(%arg0: i32, %arg1: i32, %arg2: memref<32x256xbf16, #tpu.memory_space<vmem>>, %arg3: memref<1x256x128xbf16, #tpu.memory_space<vmem>>, %arg4: memref<32x1xf32, #tpu.memory_space<vmem>>, %arg5: memref<1x32x128xf32, #tpu.memory_space<vmem>>, %arg6: memref<32x128xf32, #tpu.memory_space<vmem>>) attributes {dimension_semantics = [#tpu.dimension_semantics<parallel>, #tpu.dimension_semantics<arbitrary>], iteration_bounds = array<i64: 2, 2>, scalar_prefetch = 0 : i64, scratch_operands = 1 : i64, tpu.core_type = #tpu.core_type<tc>, window_params = [{transform_indices = @transform_0, window_bounds = array<i64: 32, 256>}, {transform_indices = @transform_1, window_bounds = array<i64: 1, 256, 128>}, {pipeline_mode = #tpu.pipeline_mode<synchronous>, transform_indices = @transform_2, window_bounds = array<i64: 32, 1>}, {transform_indices = @transform_3, window_bounds = array<i64: 1, 32, 128>}]} {
    %c0_i32 = arith.constant 0 : i32
    %0 = arith.cmpi eq, %arg1, %c0_i32 : i32
    %1 = arith.extui %0 : i1 to i32
    %c0_i32_0 = arith.constant 0 : i32
    %2 = arith.cmpi ne, %1, %c0_i32_0 : i32
    scf.if %2 {
      %cst_10 = arith.constant 0.000000e+00 : f32
      %13 = vector.broadcast %cst_10 : f32 to vector<32x128xf32>
      %c0_11 = arith.constant 0 : index
      %c0_12 = arith.constant 0 : index
      %14 = vector.load %arg6[%c0_11, %c0_12] : memref<32x128xf32, #tpu.memory_space<vmem>>, vector<32x128xf32>
      tpu.vector_store %arg6[%c0_11, %c0_12], %13 {strides = array<i32>} : memref<32x128xf32, #tpu.memory_space<vmem>>, vector<32x128xf32>,
    } else {
    }
    %c0 = arith.constant 0 : index
    %c0_1 = arith.constant 0 : index
    %3 = vector.load %arg6[%c0, %c0_1] : memref<32x128xf32, #tpu.memory_space<vmem>>, vector<32x128xf32>
    %c0_2 = arith.constant 0 : index
    %c0_3 = arith.constant 0 : index
    %4 = vector.load %arg2[%c0_2, %c0_3] : memref<32x256xbf16, #tpu.memory_space<vmem>>, vector<32x256xbf16>
    %c0_4 = arith.constant 0 : index
    %c0_5 = arith.constant 0 : index
    %c0_6 = arith.constant 0 : index
    %5 = vector.load %arg3[%c0_4, %c0_5, %c0_6] : memref<1x256x128xbf16, #tpu.memory_space<vmem>>, vector<1x256x128xbf16>
    %6 = vector.shape_cast %5 : vector<1x256x128xbf16> to vector<256x128xbf16>
    %cst = arith.constant dense<0.000000e+00> : vector<32x128xf32>
    %7 = tpu.matmul %4, %6, %cst {dimension_numbers = #tpu.dot_dimension_numbers<[1], [0], [0], [1], [0, 0, 1, 1], [], []>} : vector<32x256xbf16>, vector<256x128xbf16>, vector<32x128xf32> -> vector<32x128xf32>
    %8 = arith.addf %3, %7 : vector<32x128xf32>
    %c0_7 = arith.constant 0 : index
    %c0_8 = arith.constant 0 : index
    %9 = vector.load %arg6[%c0_7, %c0_8] : memref<32x128xf32, #tpu.memory_space<vmem>>, vector<32x128xf32>
    tpu.vector_store %arg6[%c0_7, %c0_8], %8 {strides = array<i32>} : memref<32x128xf32, #tpu.memory_space<vmem>>, vector<32x128xf32>,
    %c1_i32 = arith.constant 1 : i32
    %10 = arith.cmpi eq, %arg1, %c1_i32 : i32
    %11 = arith.extui %10 : i1 to i32
    %c0_i32_9 = arith.constant 0 : i32
    %12 = arith.cmpi ne, %11, %c0_i32_9 : i32
    scf.if %12 {
      %c0_10 = arith.constant 0 : index
      %c0_11 = arith.constant 0 : index
      %13 = vector.load %arg6[%c0_10, %c0_11] : memref<32x128xf32, #tpu.memory_space<vmem>>, vector<32x128xf32>
      %c0_12 = arith.constant 0 : index
      %c0_13 = arith.constant 0 : index
      %14 = vector.load %arg4[%c0_12, %c0_13] : memref<32x1xf32, #tpu.memory_space<vmem>>, vector<32x1xf32>
      %15 = vector.broadcast %14 : vector<32x1xf32> to vector<32x128xf32>
      %16 = arith.addf %13, %15 : vector<32x128xf32>
      %17 = tpu.iota {dimensions = array<i32: 1>} : vector<32x128xi32>
      %c16_i32 = arith.constant 16 : i32
      %18 = vector.broadcast %c16_i32 : i32 to vector<32x128xi32>
      %19 = arith.cmpi slt, %17, %18 : vector<32x128xi32>
      %cst_14 = arith.constant 0.000000e+00 : f32
      %20 = vector.broadcast %cst_14 : f32 to vector<32x128xf32>
      %21 = arith.select %19, %16, %20 : vector<32x128xi1>, vector<32x128xf32>
      %cst_15 = arith.constant dense<0.000000e+00> : vector<32xf32>
      %22 = vector.multi_reduction <add>, %21, %cst_15 [1] : vector<32x128xf32> to vector<32xf32>
      %23 = vector.shape_cast %22 : vector<32xf32> to vector<32x1xf32>
      %cst_16 = arith.constant 6.250000e-02 : f32
      %24 = vector.broadcast %cst_16 : f32 to vector<32x1xf32>
      %25 = arith.mulf %23, %24 : vector<32x1xf32>
      %26 = arith.mulf %21, %21 : vector<32x128xf32>
      %cst_17 = arith.constant dense<0.000000e+00> : vector<32xf32>
      %27 = vector.multi_reduction <add>, %26, %cst_17 [1] : vector<32x128xf32> to vector<32xf32>
      %28 = vector.shape_cast %27 : vector<32xf32> to vector<32x1xf32>
      %cst_18 = arith.constant 6.250000e-02 : f32
      %29 = vector.broadcast %cst_18 : f32 to vector<32x1xf32>
      %30 = arith.mulf %28, %29 : vector<32x1xf32>
      %31 = arith.mulf %25, %25 : vector<32x1xf32>
      %32 = arith.subf %30, %31 : vector<32x1xf32>
      %cst_19 = arith.constant 0.000000e+00 : f32
      %33 = vector.broadcast %cst_19 : f32 to vector<32x1xf32>
      %34 = arith.maximumf %32, %33 : vector<32x1xf32>
      %35 = vector.broadcast %25 : vector<32x1xf32> to vector<32x128xf32>
      %36 = arith.subf %16, %35 : vector<32x128xf32>
      %cst_20 = arith.constant 9.99999974E-6 : f32
      %37 = vector.broadcast %cst_20 : f32 to vector<32x1xf32>
      %38 = arith.addf %34, %37 : vector<32x1xf32>
      %39 = math.rsqrt %38 : vector<32x1xf32>
      %40 = vector.broadcast %39 : vector<32x1xf32> to vector<32x128xf32>
      %41 = arith.mulf %36, %40 : vector<32x128xf32>
      %cst_21 = arith.constant 0.000000e+00 : f32
      %42 = vector.broadcast %cst_21 : f32 to vector<32x128xf32>
      %43 = arith.maximumf %41, %42 : vector<32x128xf32>
      %c0_22 = arith.constant 0 : index
      %c0_23 = arith.constant 0 : index
      %c0_24 = arith.constant 0 : index
      %44 = vector.load %arg5[%c0_22, %c0_23, %c0_24] : memref<1x32x128xf32, #tpu.memory_space<vmem>>, vector<1x32x128xf32>
      %45 = vector.shape_cast %44 : vector<1x32x128xf32> to vector<32x128xf32>
      %46 = vector.shape_cast %43 : vector<32x128xf32> to vector<1x32x128xf32>
      tpu.vector_store %arg5[%c0_22, %c0_23, %c0_24], %46 {strides = array<i32>} : memref<1x32x128xf32, #tpu.memory_space<vmem>>, vector<1x32x128xf32>,
    } else {
    }
    return
  }
  func.func @transform_0(%arg0: i32, %arg1: i32) -> (i32, i32) {
    %c0_i32 = arith.constant 0 : i32
    %c0_i32_0 = arith.constant 0 : i32
    return %c0_i32, %arg1 : i32, i32
  }
  func.func @transform_1(%arg0: i32, %arg1: i32) -> (i32, i32, i32) {
    %c0_i32 = arith.constant 0 : i32
    %c0_i32_0 = arith.constant 0 : i32
    return %arg0, %arg1, %c0_i32 : i32, i32, i32
  }
  func.func @transform_2(%arg0: i32, %arg1: i32) -> (i32, i32) {
    %c0_i32 = arith.constant 0 : i32
    %c0_i32_0 = arith.constant 0 : i32
    %c0_i32_1 = arith.constant 0 : i32
    return %c0_i32, %c0_i32_0 : i32, i32
  }
  func.func @transform_3(%arg0: i32, %arg1: i32) -> (i32, i32, i32) {
    %c0_i32 = arith.constant 0 : i32
    %c0_i32_0 = arith.constant 0 : i32
    %c0_i32_1 = arith.constant 0 : i32
    return %arg0, %c0_i32, %c0_i32_0 : i32, i32, i32
  }
}

module attributes {stable_mosaic.version = 11 : i64} {
  func.func @_conv_in_kernel(%arg0: i32, %arg1: i32, %arg2: memref<16x256xbf16, #tpu.memory_space<vmem>>, %arg3: memref<1x256x128xbf16, #tpu.memory_space<vmem>>, %arg4: memref<16x1xf32, #tpu.memory_space<vmem>>, %arg5: memref<1x16x128xf32, #tpu.memory_space<vmem>>, %arg6: memref<16x128xf32, #tpu.memory_space<vmem>>) attributes {dimension_semantics = [#tpu.dimension_semantics<parallel>, #tpu.dimension_semantics<arbitrary>], iteration_bounds = array<i64: 2, 2>, scalar_prefetch = 0 : i64, scratch_operands = 1 : i64, tpu.core_type = #tpu.core_type<tc>, window_params = [{transform_indices = @transform_0, window_bounds = array<i64: 16, 256>}, {transform_indices = @transform_1, window_bounds = array<i64: 1, 256, 128>}, {pipeline_mode = #tpu.pipeline_mode<synchronous>, transform_indices = @transform_2, window_bounds = array<i64: 16, 1>}, {transform_indices = @transform_3, window_bounds = array<i64: 1, 16, 128>}]} {
    %c0_i32 = arith.constant 0 : i32
    %0 = arith.cmpi eq, %arg1, %c0_i32 : i32
    %1 = arith.extui %0 : i1 to i32
    %c0_i32_0 = arith.constant 0 : i32
    %2 = arith.cmpi ne, %1, %c0_i32_0 : i32
    scf.if %2 {
      %cst_10 = arith.constant 0.000000e+00 : f32
      %13 = vector.broadcast %cst_10 : f32 to vector<16x128xf32>
      %c0_11 = arith.constant 0 : index
      %c0_12 = arith.constant 0 : index
      %14 = vector.load %arg6[%c0_11, %c0_12] : memref<16x128xf32, #tpu.memory_space<vmem>>, vector<16x128xf32>
      tpu.vector_store %arg6[%c0_11, %c0_12], %13 {strides = array<i32>} : memref<16x128xf32, #tpu.memory_space<vmem>>, vector<16x128xf32>,
    } else {
    }
    %c0 = arith.constant 0 : index
    %c0_1 = arith.constant 0 : index
    %3 = vector.load %arg6[%c0, %c0_1] : memref<16x128xf32, #tpu.memory_space<vmem>>, vector<16x128xf32>
    %c0_2 = arith.constant 0 : index
    %c0_3 = arith.constant 0 : index
    %4 = vector.load %arg2[%c0_2, %c0_3] : memref<16x256xbf16, #tpu.memory_space<vmem>>, vector<16x256xbf16>
    %c0_4 = arith.constant 0 : index
    %c0_5 = arith.constant 0 : index
    %c0_6 = arith.constant 0 : index
    %5 = vector.load %arg3[%c0_4, %c0_5, %c0_6] : memref<1x256x128xbf16, #tpu.memory_space<vmem>>, vector<1x256x128xbf16>
    %6 = vector.shape_cast %5 : vector<1x256x128xbf16> to vector<256x128xbf16>
    %cst = arith.constant dense<0.000000e+00> : vector<16x128xf32>
    %7 = tpu.matmul %4, %6, %cst {dimension_numbers = #tpu.dot_dimension_numbers<[1], [0], [0], [1], [0, 0, 1, 1], [], []>} : vector<16x256xbf16>, vector<256x128xbf16>, vector<16x128xf32> -> vector<16x128xf32>
    %8 = arith.addf %3, %7 : vector<16x128xf32>
    %c0_7 = arith.constant 0 : index
    %c0_8 = arith.constant 0 : index
    %9 = vector.load %arg6[%c0_7, %c0_8] : memref<16x128xf32, #tpu.memory_space<vmem>>, vector<16x128xf32>
    tpu.vector_store %arg6[%c0_7, %c0_8], %8 {strides = array<i32>} : memref<16x128xf32, #tpu.memory_space<vmem>>, vector<16x128xf32>,
    %c1_i32 = arith.constant 1 : i32
    %10 = arith.cmpi eq, %arg1, %c1_i32 : i32
    %11 = arith.extui %10 : i1 to i32
    %c0_i32_9 = arith.constant 0 : i32
    %12 = arith.cmpi ne, %11, %c0_i32_9 : i32
    scf.if %12 {
      %c0_10 = arith.constant 0 : index
      %c0_11 = arith.constant 0 : index
      %13 = vector.load %arg6[%c0_10, %c0_11] : memref<16x128xf32, #tpu.memory_space<vmem>>, vector<16x128xf32>
      %c0_12 = arith.constant 0 : index
      %c0_13 = arith.constant 0 : index
      %14 = vector.load %arg4[%c0_12, %c0_13] : memref<16x1xf32, #tpu.memory_space<vmem>>, vector<16x1xf32>
      %15 = vector.broadcast %14 : vector<16x1xf32> to vector<16x128xf32>
      %16 = arith.addf %13, %15 : vector<16x128xf32>
      %17 = tpu.iota {dimensions = array<i32: 1>} : vector<16x128xi32>
      %c64_i32 = arith.constant 64 : i32
      %18 = vector.broadcast %c64_i32 : i32 to vector<16x128xi32>
      %19 = arith.cmpi slt, %17, %18 : vector<16x128xi32>
      %cst_14 = arith.constant 0.000000e+00 : f32
      %20 = vector.broadcast %cst_14 : f32 to vector<16x128xf32>
      %21 = arith.select %19, %16, %20 : vector<16x128xi1>, vector<16x128xf32>
      %cst_15 = arith.constant dense<0.000000e+00> : vector<16xf32>
      %22 = vector.multi_reduction <add>, %21, %cst_15 [1] : vector<16x128xf32> to vector<16xf32>
      %23 = vector.shape_cast %22 : vector<16xf32> to vector<16x1xf32>
      %cst_16 = arith.constant 1.562500e-02 : f32
      %24 = vector.broadcast %cst_16 : f32 to vector<16x1xf32>
      %25 = arith.mulf %23, %24 : vector<16x1xf32>
      %26 = arith.mulf %21, %21 : vector<16x128xf32>
      %cst_17 = arith.constant dense<0.000000e+00> : vector<16xf32>
      %27 = vector.multi_reduction <add>, %26, %cst_17 [1] : vector<16x128xf32> to vector<16xf32>
      %28 = vector.shape_cast %27 : vector<16xf32> to vector<16x1xf32>
      %cst_18 = arith.constant 1.562500e-02 : f32
      %29 = vector.broadcast %cst_18 : f32 to vector<16x1xf32>
      %30 = arith.mulf %28, %29 : vector<16x1xf32>
      %31 = arith.mulf %25, %25 : vector<16x1xf32>
      %32 = arith.subf %30, %31 : vector<16x1xf32>
      %cst_19 = arith.constant 0.000000e+00 : f32
      %33 = vector.broadcast %cst_19 : f32 to vector<16x1xf32>
      %34 = arith.maximumf %32, %33 : vector<16x1xf32>
      %35 = vector.broadcast %25 : vector<16x1xf32> to vector<16x128xf32>
      %36 = arith.subf %16, %35 : vector<16x128xf32>
      %cst_20 = arith.constant 9.99999974E-6 : f32
      %37 = vector.broadcast %cst_20 : f32 to vector<16x1xf32>
      %38 = arith.addf %34, %37 : vector<16x1xf32>
      %39 = math.rsqrt %38 : vector<16x1xf32>
      %40 = vector.broadcast %39 : vector<16x1xf32> to vector<16x128xf32>
      %41 = arith.mulf %36, %40 : vector<16x128xf32>
      %cst_21 = arith.constant 0.000000e+00 : f32
      %42 = vector.broadcast %cst_21 : f32 to vector<16x128xf32>
      %43 = arith.maximumf %41, %42 : vector<16x128xf32>
      %c0_22 = arith.constant 0 : index
      %c0_23 = arith.constant 0 : index
      %c0_24 = arith.constant 0 : index
      %44 = vector.load %arg5[%c0_22, %c0_23, %c0_24] : memref<1x16x128xf32, #tpu.memory_space<vmem>>, vector<1x16x128xf32>
      %45 = vector.shape_cast %44 : vector<1x16x128xf32> to vector<16x128xf32>
      %46 = vector.shape_cast %43 : vector<16x128xf32> to vector<1x16x128xf32>
      tpu.vector_store %arg5[%c0_22, %c0_23, %c0_24], %46 {strides = array<i32>} : memref<1x16x128xf32, #tpu.memory_space<vmem>>, vector<1x16x128xf32>,
    } else {
    }
    return
  }
  func.func @transform_0(%arg0: i32, %arg1: i32) -> (i32, i32) {
    %c0_i32 = arith.constant 0 : i32
    %c0_i32_0 = arith.constant 0 : i32
    return %c0_i32, %arg1 : i32, i32
  }
  func.func @transform_1(%arg0: i32, %arg1: i32) -> (i32, i32, i32) {
    %c0_i32 = arith.constant 0 : i32
    %c0_i32_0 = arith.constant 0 : i32
    return %arg0, %arg1, %c0_i32 : i32, i32, i32
  }
  func.func @transform_2(%arg0: i32, %arg1: i32) -> (i32, i32) {
    %c0_i32 = arith.constant 0 : i32
    %c0_i32_0 = arith.constant 0 : i32
    %c0_i32_1 = arith.constant 0 : i32
    return %c0_i32, %c0_i32_0 : i32, i32
  }
  func.func @transform_3(%arg0: i32, %arg1: i32) -> (i32, i32, i32) {
    %c0_i32 = arith.constant 0 : i32
    %c0_i32_0 = arith.constant 0 : i32
    %c0_i32_1 = arith.constant 0 : i32
    return %arg0, %c0_i32, %c0_i32_0 : i32, i32, i32
  }
}

module attributes {stable_mosaic.version = 11 : i64} {
  func.func @_conv_in_kernel(%arg0: i32, %arg1: i32, %arg2: memref<16x256xbf16, #tpu.memory_space<vmem>>, %arg3: memref<1x256x256xbf16, #tpu.memory_space<vmem>>, %arg4: memref<16x1xf32, #tpu.memory_space<vmem>>, %arg5: memref<1x16x256xf32, #tpu.memory_space<vmem>>, %arg6: memref<16x256xf32, #tpu.memory_space<vmem>>) attributes {dimension_semantics = [#tpu.dimension_semantics<parallel>, #tpu.dimension_semantics<arbitrary>], iteration_bounds = array<i64: 2, 2>, scalar_prefetch = 0 : i64, scratch_operands = 1 : i64, tpu.core_type = #tpu.core_type<tc>, window_params = [{transform_indices = @transform_0, window_bounds = array<i64: 16, 256>}, {transform_indices = @transform_1, window_bounds = array<i64: 1, 256, 256>}, {pipeline_mode = #tpu.pipeline_mode<synchronous>, transform_indices = @transform_2, window_bounds = array<i64: 16, 1>}, {transform_indices = @transform_3, window_bounds = array<i64: 1, 16, 256>}]} {
    %c0_i32 = arith.constant 0 : i32
    %0 = arith.cmpi eq, %arg1, %c0_i32 : i32
    %1 = arith.extui %0 : i1 to i32
    %c0_i32_0 = arith.constant 0 : i32
    %2 = arith.cmpi ne, %1, %c0_i32_0 : i32
    scf.if %2 {
      %cst_10 = arith.constant 0.000000e+00 : f32
      %13 = vector.broadcast %cst_10 : f32 to vector<16x256xf32>
      %c0_11 = arith.constant 0 : index
      %c0_12 = arith.constant 0 : index
      %14 = vector.load %arg6[%c0_11, %c0_12] : memref<16x256xf32, #tpu.memory_space<vmem>>, vector<16x256xf32>
      tpu.vector_store %arg6[%c0_11, %c0_12], %13 {strides = array<i32>} : memref<16x256xf32, #tpu.memory_space<vmem>>, vector<16x256xf32>,
    } else {
    }
    %c0 = arith.constant 0 : index
    %c0_1 = arith.constant 0 : index
    %3 = vector.load %arg6[%c0, %c0_1] : memref<16x256xf32, #tpu.memory_space<vmem>>, vector<16x256xf32>
    %c0_2 = arith.constant 0 : index
    %c0_3 = arith.constant 0 : index
    %4 = vector.load %arg2[%c0_2, %c0_3] : memref<16x256xbf16, #tpu.memory_space<vmem>>, vector<16x256xbf16>
    %c0_4 = arith.constant 0 : index
    %c0_5 = arith.constant 0 : index
    %c0_6 = arith.constant 0 : index
    %5 = vector.load %arg3[%c0_4, %c0_5, %c0_6] : memref<1x256x256xbf16, #tpu.memory_space<vmem>>, vector<1x256x256xbf16>
    %6 = vector.shape_cast %5 : vector<1x256x256xbf16> to vector<256x256xbf16>
    %cst = arith.constant dense<0.000000e+00> : vector<16x256xf32>
    %7 = tpu.matmul %4, %6, %cst {dimension_numbers = #tpu.dot_dimension_numbers<[1], [0], [0], [1], [0, 0, 1, 1], [], []>} : vector<16x256xbf16>, vector<256x256xbf16>, vector<16x256xf32> -> vector<16x256xf32>
    %8 = arith.addf %3, %7 : vector<16x256xf32>
    %c0_7 = arith.constant 0 : index
    %c0_8 = arith.constant 0 : index
    %9 = vector.load %arg6[%c0_7, %c0_8] : memref<16x256xf32, #tpu.memory_space<vmem>>, vector<16x256xf32>
    tpu.vector_store %arg6[%c0_7, %c0_8], %8 {strides = array<i32>} : memref<16x256xf32, #tpu.memory_space<vmem>>, vector<16x256xf32>,
    %c1_i32 = arith.constant 1 : i32
    %10 = arith.cmpi eq, %arg1, %c1_i32 : i32
    %11 = arith.extui %10 : i1 to i32
    %c0_i32_9 = arith.constant 0 : i32
    %12 = arith.cmpi ne, %11, %c0_i32_9 : i32
    scf.if %12 {
      %c0_10 = arith.constant 0 : index
      %c0_11 = arith.constant 0 : index
      %13 = vector.load %arg6[%c0_10, %c0_11] : memref<16x256xf32, #tpu.memory_space<vmem>>, vector<16x256xf32>
      %c0_12 = arith.constant 0 : index
      %c0_13 = arith.constant 0 : index
      %14 = vector.load %arg4[%c0_12, %c0_13] : memref<16x1xf32, #tpu.memory_space<vmem>>, vector<16x1xf32>
      %15 = vector.broadcast %14 : vector<16x1xf32> to vector<16x256xf32>
      %16 = arith.addf %13, %15 : vector<16x256xf32>
      %17 = math.tanh %16 : vector<16x256xf32>
      %c0_14 = arith.constant 0 : index
      %c0_15 = arith.constant 0 : index
      %c0_16 = arith.constant 0 : index
      %18 = vector.load %arg5[%c0_14, %c0_15, %c0_16] : memref<1x16x256xf32, #tpu.memory_space<vmem>>, vector<1x16x256xf32>
      %19 = vector.shape_cast %18 : vector<1x16x256xf32> to vector<16x256xf32>
      %20 = vector.shape_cast %17 : vector<16x256xf32> to vector<1x16x256xf32>
      tpu.vector_store %arg5[%c0_14, %c0_15, %c0_16], %20 {strides = array<i32>} : memref<1x16x256xf32, #tpu.memory_space<vmem>>, vector<1x16x256xf32>,
    } else {
    }
    return
  }
  func.func @transform_0(%arg0: i32, %arg1: i32) -> (i32, i32) {
    %c0_i32 = arith.constant 0 : i32
    %c0_i32_0 = arith.constant 0 : i32
    return %c0_i32, %arg1 : i32, i32
  }
  func.func @transform_1(%arg0: i32, %arg1: i32) -> (i32, i32, i32) {
    %c0_i32 = arith.constant 0 : i32
    %c0_i32_0 = arith.constant 0 : i32
    return %arg0, %arg1, %c0_i32 : i32, i32, i32
  }
  func.func @transform_2(%arg0: i32, %arg1: i32) -> (i32, i32) {
    %c0_i32 = arith.constant 0 : i32
    %c0_i32_0 = arith.constant 0 : i32
    %c0_i32_1 = arith.constant 0 : i32
    return %c0_i32, %c0_i32_0 : i32, i32
  }
  func.func @transform_3(%arg0: i32, %arg1: i32) -> (i32, i32, i32) {
    %c0_i32 = arith.constant 0 : i32
    %c0_i32_0 = arith.constant 0 : i32
    %c0_i32_1 = arith.constant 0 : i32
    return %arg0, %c0_i32, %c0_i32_0 : i32, i32, i32
  }
}

</mosaic_0001>

<bundles_post_ra>
// kernel: generator_forward.10
= control target key start
LH: loop header
LB: loop body
LE: loop exit
PB: predicated region body
PF: predicated region fallthrough
CT: control target
= control target key end

     0   :  { %s947_s12 = smov 0   ;;  %s949_s13 = smov 0   ;;  %s1068_s0 = inlined_call_operand.vmem [shape: bf16[16,256], index: 0, kind: input, shape index: {}]   ;;  %s1069_s1 = inlined_call_operand.vmem [shape: bf16[2,256,256], index: 1, kind: input, shape index: {}]   ;;  %s1070_s2 = inlined_call_operand.vmem [shape: f32[16,1], index: 2, kind: input, shape index: {}]   ;;  %s1071_s3 = inlined_call_operand.vmem [shape: f32[2,16,256], index: 3, kind: output, shape index: {}]  }
   0x1   :  { %s951_s14 = smov 0  }
   0x2 LB: > { %s25_s15 = sadd.s32 1, %s920_s13  ;;  %p693_p0 = scmp.ge.s32.totalorder %s924_s14, 1  ;;  %s924_s14 = sphi %s951_s14, %s13_s14   ;;  %s920_s13 = sphi %s949_s13, %s1073_s13   ;;  %s916_s12 = sphi %s947_s12, %s1072_s12  }
   0x3   : > { %p27_p1 = scmp.ge.s32.totalorder %s25_s15, 2  ;;  %p168_p2 = scmp.lt.s32.totalorder %s924_s14, 3 }
   0x5   : > { %s1075_s15 = smov (%p27_p1, %s25_s15), 0  ;;  %p169_p3 = pnand %p693_p0, %p168_p2 }
   0x6   : > { %p209_p4 = scmp.lt.s32.totalorder (!%p169_p3), %s916_s12, 1 }
   0x7   : > { %172 = sbr.rel (%p169_p3) target bundleno = 347 (0x15b), region = 32 }
   0xc   : > { %s1077_s12 = smov (!%p209_p4, %s916_s12), 1 }
   0xd   : > { %s836_s16 = sshll.u32 %s1077_s12, 8  ;;  %s837_s5 = sshll.u32 %s1077_s12, 5 }
   0xe   : > { %s971_s19 = scalar_lea.vmem %s1069_s1, %s836_s16  ;;  %s223_s8 = scalar_lea.vmem %s1071_s3, %s837_s5 }
   0xf   : > { %v764_v0 = vld [vmem:[%s971_s19 + $0x70] sm:$0xf]  ;;  %v855_v1 = vld [vmem:[%s971_s19 + $0x74] sm:$0xf0]  ;;  %v854_v5 = vld [vmem:[%s971_s19 + $0x74] sm:$0xf] }
  0x10   : > { %v828_v2 = vld [vmem:[%s971_s19 + $0xf0] sm:$0xf]  ;;  %v765_v3 = vor.u32 %v855_v1, %v764_v0  ;;  %v871_v4 = vld [vmem:[%s971_s19 + $0xf4] sm:$0xf0]  ;;  %v766_v6 = vld [vmem:[%s971_s19 + $0x78] sm:$0xf0] }
  0x11   : > { %v829_v7 = vor.u32 %v871_v4, %v828_v2  ;;  %v769_v8 = vor.u32 %v854_v5, %v766_v6  ;;  %v870_v9 = vld [vmem:[%s971_s19 + $0xf4] sm:$0xf]  ;;  %v830_v10 = vld [vmem:[%s971_s19 + $0xf8] sm:$0xf0]  ;;  %v756_v11 = vld [vmem:[%s971_s19 + $0x60] sm:$0xf] }
  0x12   : > { %440 = vmatpush.bf16.msra.mxu0 %v765_v3  ;;  %v833_v12 = vor.u32 %v870_v9, %v830_v10  ;;  %v853_v13 = vld [vmem:[%s971_s19 + $0x64] sm:$0xf0]  ;;  %v820_v14 = vld [vmem:[%s971_s19 + $0xe0] sm:$0xf]  ;;  %v852_v18 = vld [vmem:[%s971_s19 + $0x64] sm:$0xf] }
  0x13   : > { %v869_v15 = vld [vmem:[%s971_s19 + $0xe4] sm:$0xf0]  ;;  %454 = vmatpush.bf16.msra.mxu1 %v829_v7  ;;  %468 = vmatpush.bf16.msra.mxu2 %v769_v8  ;;  %v757_v16 = vor.u32 %v853_v13, %v756_v11  ;;  %v758_v19 = vld [vmem:[%s971_s19 + $0x68] sm:$0xf0]  ;;  %v868_v20 = vld [vmem:[%s971_s19 + $0xe4] sm:$0xf] }
  0x14   : > { %v821_v17 = vor.u32 %v869_v15, %v820_v14  ;;  %482 = vmatpush.bf16.msra.mxu3 %v833_v12  ;;  %v761_v21 = vor.u32 %v852_v18, %v758_v19  ;;  %v822_v22 = vld [vmem:[%s971_s19 + $0xe8] sm:$0xf0]  ;;  %v748_v23 = vld [vmem:[%s971_s19 + $0x50] sm:$0xf]  ;;  %v851_v24 = vld [vmem:[%s971_s19 + $0x54] sm:$0xf0] }
  0x15   : > { %v825_v25 = vor.u32 %v868_v20, %v822_v22  ;;  %v812_v26 = vld [vmem:[%s971_s19 + $0xd0] sm:$0xf]  ;;  %v867_v27 = vld [vmem:[%s971_s19 + $0xd4] sm:$0xf0]  ;;  %v850_v28 = vld [vmem:[%s971_s19 + $0x54] sm:$0xf]  ;;  %v749_v29 = vor.u32 %v851_v24, %v748_v23 }
  0x16   : > { %441 = vmatpush.bf16.msra.mxu0 %v757_v16  ;;  %v750_v30 = vld [vmem:[%s971_s19 + $0x58] sm:$0xf0]  ;;  %v866_v31 = vld [vmem:[%s971_s19 + $0xd4] sm:$0xf]  ;;  %v813_v33 = vor.u32 %v867_v27, %v812_v26  ;;  %v740_v35 = vld [vmem:[%s971_s19 + $0x40] sm:$0xf] }
  0x17   : > { %v814_v32 = vld [vmem:[%s971_s19 + $0xd8] sm:$0xf0]  ;;  %455 = vmatpush.bf16.msra.mxu1 %v821_v17  ;;  %469 = vmatpush.bf16.msra.mxu2 %v761_v21  ;;  %v753_v34 = vor.u32 %v850_v28, %v750_v30  ;;  %v849_v36 = vld [vmem:[%s971_s19 + $0x44] sm:$0xf0]  ;;  %v804_v37 = vld [vmem:[%s971_s19 + $0xc0] sm:$0xf] }
  0x18   : > { %483 = vmatpush.bf16.msra.mxu3 %v825_v25  ;;  %v817_v38 = vor.u32 %v866_v31, %v814_v32  ;;  %v865_v39 = vld [vmem:[%s971_s19 + $0xc4] sm:$0xf0]  ;;  %v848_v40 = vld [vmem:[%s971_s19 + $0x44] sm:$0xf]  ;;  %v742_v41 = vld [vmem:[%s971_s19 + $0x48] sm:$0xf0]  ;;  %v741_v44 = vor.u32 %v849_v36, %v740_v35 }
  0x19   : > { %v864_v42 = vld [vmem:[%s971_s19 + $0xc4] sm:$0xf]  ;;  %v806_v43 = vld [vmem:[%s971_s19 + $0xc8] sm:$0xf0]  ;;  %v805_v45 = vor.u32 %v865_v39, %v804_v37  ;;  %v745_v46 = vor.u32 %v848_v40, %v742_v41  ;;  %v732_v47 = vld [vmem:[%s971_s19 + $0x30] sm:$0xf] }
  0x1a   : > { %442 = vmatpush.bf16.msra.mxu0 %v749_v29  ;;  %v847_v48 = vld [vmem:[%s971_s19 + $0x34] sm:$0xf0]  ;;  %v796_v49 = vld [vmem:[%s971_s19 + $0xb0] sm:$0xf]  ;;  %v809_v50 = vor.u32 %v864_v42, %v806_v43  ;;  %v846_v52 = vld [vmem:[%s971_s19 + $0x34] sm:$0xf] }
  0x1b   : > { %456 = vmatpush.bf16.msra.mxu1 %v813_v33  ;;  %470 = vmatpush.bf16.msra.mxu2 %v753_v34  ;;  %v863_v51 = vld [vmem:[%s971_s19 + $0xb4] sm:$0xf0]  ;;  %v734_v53 = vld [vmem:[%s971_s19 + $0x38] sm:$0xf0]  ;;  %v862_v54 = vld [vmem:[%s971_s19 + $0xb4] sm:$0xf]  ;;  %v733_v56 = vor.u32 %v847_v48, %v732_v47 }
  0x1c   : > { %484 = vmatpush.bf16.msra.mxu3 %v817_v38  ;;  %v798_v55 = vld [vmem:[%s971_s19 + $0xb8] sm:$0xf0]  ;;  %v797_v57 = vor.u32 %v863_v51, %v796_v49  ;;  %v737_v58 = vor.u32 %v846_v52, %v734_v53  ;;  %v724_v59 = vld [vmem:[%s971_s19 + $0x20] sm:$0xf]  ;;  %v845_v60 = vld [vmem:[%s971_s19 + $0x24] sm:$0xf0] }
  0x1d   : > { %v788_v61 = vld [vmem:[%s971_s19 + $0xa0] sm:$0xf]  ;;  %v801_v62 = vor.u32 %v862_v54, %v798_v55  ;;  %v861_v63 = vld [vmem:[%s971_s19 + $0xa4] sm:$0xf0]  ;;  %v844_v0 = vld [vmem:[%s971_s19 + $0x24] sm:$0xf]  ;;  %v725_v4 = vor.u32 %v845_v60, %v724_v59 }
  0x1e   : > { %443 = vmatpush.bf16.msra.mxu0 %v741_v44  ;;  %v726_v1 = vld [vmem:[%s971_s19 + $0x28] sm:$0xf0]  ;;  %v860_v2 = vld [vmem:[%s971_s19 + $0xa4] sm:$0xf]  ;;  %v789_v5 = vor.u32 %v861_v63, %v788_v61  ;;  %v716_v7 = vld [vmem:[%s971_s19 + $0x10] sm:$0xf] }
  0x1f   : > { %457 = vmatpush.bf16.msra.mxu1 %v805_v45  ;;  %471 = vmatpush.bf16.msra.mxu2 %v745_v46  ;;  %v790_v3 = vld [vmem:[%s971_s19 + $0xa8] sm:$0xf0]  ;;  %v729_v6 = vor.u32 %v844_v0, %v726_v1  ;;  %v843_v8 = vld [vmem:[%s971_s19 + $0x14] sm:$0xf0]  ;;  %v780_v9 = vld [vmem:[%s971_s19 + $0x90] sm:$0xf] }
  0x20   : > { %485 = vmatpush.bf16.msra.mxu3 %v809_v50  ;;  %v793_v10 = vor.u32 %v860_v2, %v790_v3  ;;  %v859_v11 = vld [vmem:[%s971_s19 + $0x94] sm:$0xf0]  ;;  %v842_v12 = vld [vmem:[%s971_s19 + $0x14] sm:$0xf]  ;;  %v718_v13 = vld [vmem:[%s971_s19 + $0x18] sm:$0xf0]  ;;  %v717_v17 = vor.u32 %v843_v8, %v716_v7 }
  0x21   : > { %v858_v14 = vld [vmem:[%s971_s19 + $0x94] sm:$0xf]  ;;  %v782_v15 = vld [vmem:[%s971_s19 + $0x98] sm:$0xf0]  ;;  %v511_v16 = vld [vmem:[%s1070_s2] sm:$0xff]  ;;  %v926_v18 = vmov 0   ;;  %v781_v19 = vor.u32 %v859_v11, %v780_v9  ;;  %v721_v20 = vor.u32 %v842_v12, %v718_v13 }
  0x22   : > { %444 = vmatpush.bf16.msra.mxu0 %v733_v56  ;;  %897 = vset.pattern.permute.xlu0 %v926_v18  ;;  %v708_v21 = vld [vmem:[%s971_s19] sm:$0xf]  ;;  %v841_v22 = vld [vmem:[%s971_s19 + $0x4] sm:$0xf0]  ;;  %v785_v24 = vor.u32 %v858_v14, %v782_v15  ;;  %v840_v26 = vld [vmem:[%s971_s19 + $0x4] sm:$0xf] }
  0x23   : > { %458 = vmatpush.bf16.msra.mxu1 %v797_v57  ;;  %472 = vmatpush.bf16.msra.mxu2 %v737_v58  ;;  %v772_v23 = vld [vmem:[%s971_s19 + $0x80] sm:$0xf]  ;;  %v857_v25 = vld [vmem:[%s971_s19 + $0x84] sm:$0xf0]  ;;  %v710_v27 = vld [vmem:[%s971_s19 + $0x8] sm:$0xf0]  ;;  %v709_v30 = vor.u32 %v841_v22, %v708_v21 }
  0x24   : > { %486 = vmatpush.bf16.msra.mxu3 %v801_v62  ;;  %515 = vperm.xlu0 %897, %v511_v16   ;;  %v856_v28 = vld [vmem:[%s971_s19 + $0x84] sm:$0xf]  ;;  %v774_v29 = vld [vmem:[%s971_s19 + $0x88] sm:$0xf0]  ;;  %v700_v31 = vld [vmem:[%s1068_s0] sm:$0xf]  ;;  %v773_v33 = vor.u32 %v857_v25, %v772_v23  ;;  %v713_v34 = vor.u32 %v840_v26, %v710_v27 }
  0x25   : > { %v839_v32 = vld [vmem:[%s1068_s0 + $0x4] sm:$0xf0]  ;;  %v838_v35 = vld [vmem:[%s1068_s0 + $0x4] sm:$0xf]  ;;  %v702_v36 = vld [vmem:[%s1068_s0 + $0x8] sm:$0xf0]  ;;  %v777_v37 = vor.u32 %v856_v28, %v774_v29 }
  0x26   : > { %445 = vmatpush.bf16.msra.mxu0 %v725_v4  ;;  %v701_v38 = vor.u32 %v839_v32, %v700_v31  ;;  %v512_v39 = vld [vmem:[%s1070_s2 + $0x8] sm:$0xff]  ;;  %v705_v40 = vor.u32 %v838_v35, %v702_v36 }
  0x27   : > { %459 = vmatpush.bf16.msra.mxu1 %v789_v5  ;;  %473 = vmatpush.bf16.msra.mxu2 %v729_v6 }
  0x28   : > { %487 = vmatpush.bf16.msra.mxu3 %v793_v10 }
  0x2a   : > { %446 = vmatpush.bf16.msra.mxu0 %v717_v17 }
  0x2b   : > { %460 = vmatpush.bf16.msra.mxu1 %v781_v19  ;;  %474 = vmatpush.bf16.msra.mxu2 %v721_v20 }
  0x2c   : > { %488 = vmatpush.bf16.msra.mxu3 %v785_v24  ;;  %520 = vperm.xlu0 %897, %v512_v39  }
  0x2e   : > { %447 = vmatpush.bf16.msra.mxu0 %v709_v30 }
  0x2f   : > { %461 = vmatpush.bf16.msra.mxu1 %v773_v33  ;;  %475 = vmatpush.bf16.msra.mxu2 %v713_v34 }
  0x30   : > { %489 = vmatpush.bf16.msra.mxu3 %v777_v37 }
  0x31   : > { %448 = vmatmul.bf16.vlgmr.msra.gmra.mxu0 %v701_v38 }
  0x32   : > { %462 = vmatmul.bf16.vlgmr.msra.gmra.mxu1 %v705_v40  ;;  %476 = vmatmul.bf16.vlgmr.msra.gmra.mxu2 %v701_v38 }
  0x33   : > { %490 = vmatmul.bf16.vlgmr.msra.gmra.mxu3 %v705_v40 }
  0x96   : > { %v516_v44 = vpop.permute.xlu0 %515 }
  0x9e   : > { %v521_v58 = vpop.permute.xlu0 %520 }
  0xae   : > { %v449_v41 = vpop.f32.mrf.mxu0 }
  0xaf   : > { %v463_v42 = vpop.f32.mrf.mxu1 }
  0xb0   : > { %v464_v43 = vadd.f32 %v463_v42, %v449_v41 }
  0xb2   : > { %v523_v45 = vadd.f32 %v516_v44, %v464_v43 }
  0xb4   : > { %v544_v52 = vmul.f32 %v523_v45, %v523_v45 }
  0xb5   : > { %v477_v46 = vpop.f32.mrf.mxu2 }
  0xb6   : > { %v491_v47 = vpop.f32.mrf.mxu3  ;;  %v451_v49 = vpop.f32.mrf.mxu0 }
  0xb7   : > { %v492_v48 = vadd.f32 %v491_v47, %v477_v46  ;;  %v465_v50 = vpop.f32.mrf.mxu1 }
  0xb8   : > { %v466_v53 = vadd.f32 %v465_v50, %v451_v49 }
  0xb9   : > { %v524_v51 = vadd.f32 %v516_v44, %v492_v48 }
  0xba   : > { %v525_v60 = vadd.f32 %v521_v58, %v466_v53 }
  0xbb   : > { %v536_v54 = vadd.f32 %v524_v51, %v523_v45  ;;  %v545_v55 = vmul.f32 %v524_v51, %v524_v51 }
  0xbc   : > { %v546_v0 = vmul.f32 %v525_v60, %v525_v60 }
  0xbd   : > { %537 = vadd.xlane.f32.xlu1 %v536_v54  ;;  %v479_v56 = vpop.f32.mrf.mxu2  ;;  %v548_v57 = vadd.f32 %v545_v55, %v544_v52 }
  0xbe   : > { %v493_v59 = vpop.f32.mrf.mxu3 }
  0xbf   : > { %v494_v61 = vadd.f32 %v493_v59, %v479_v56  ;;  %549 = vadd.xlane.f32.xlu2 %v548_v57 }
  0xc1   : > { %v526_v62 = vadd.f32 %v521_v58, %v494_v61 }
  0xc3   : > { %v539_v63 = vadd.f32 %v526_v62, %v525_v60  ;;  %v547_v1 = vmul.f32 %v526_v62, %v526_v62 }
  0xc5   : > { %540 = vadd.xlane.f32.xlu1 %v539_v63  ;;  %v551_v2 = vadd.f32 %v547_v1, %v546_v0 }
  0xc7   : > { %552 = vadd.xlane.f32.xlu2 %v551_v2 }
 0x130   : > { %v538_v3 = vpop.xlane.xlu1 %537 }
 0x131   : > { %v542_v4 = vmul.f32 0.00390625, %v538_v3 }
 0x132   : > { %v550_v5 = vpop.xlane.xlu2 %549 }
 0x133   : > { %v554_v6 = vmul.f32 0.00390625, %v550_v5  ;;  %v556_v7 = vmul.f32 %v542_v4, %v542_v4  ;;  %v562_v26 = vsub.f32 %v523_v45, %v542_v4  ;;  %v563_v27 = vsub.f32 %v524_v51, %v542_v4 }
 0x135   : > { %v558_v8 = vsub.f32 %v554_v6, %v556_v7 }
 0x137   : > { %v560_v9 = vmax.f32 %v558_v8, 0.0 }
 0x138   : > { %v541_v10 = vpop.xlane.xlu1 %540 }
 0x139   : > { %v566_v11 = vadd.f32 1e-05, %v560_v9  ;;  %v543_v12 = vmul.f32 0.00390625, %v541_v10 }
 0x13a   : > { %v553_v13 = vpop.xlane.xlu2 %552 }
 0x13b   : > { %898 = vrsqrt.f32 %v566_v11  ;;  %v555_v14 = vmul.f32 0.00390625, %v553_v13  ;;  %v557_v15 = vmul.f32 %v543_v12, %v543_v12  ;;  %vm574_vm1 = vweird.f32 %v566_v11 }
 0x13c   : > { %v564_v38 = vsub.f32 %v525_v60, %v543_v12  ;;  %v565_v39 = vsub.f32 %v526_v62, %v543_v12 }
 0x13d   : > { %v559_v16 = vsub.f32 %v555_v14, %v557_v15 }
 0x13f   : > { %v561_v17 = vmax.f32 %v559_v16, 0.0 }
 0x141   : > { %v899_v18 = vpop.eup %898  ;;  %v567_v20 = vadd.f32 1e-05, %v561_v17 }
 0x142   : > { %v569_v19 = vmul.f32 %v899_v18, %v566_v11  ;;  %vm575_vm0 = vweird.f32 %v899_v18 }
 0x143   : > { %900 = vrsqrt.f32 %v567_v20  ;;  %vm576_vm2 = vmor %vm574_vm1, %vm575_vm0  ;;  %vm584_vm4 = vweird.f32 %v567_v20 }
 0x144   : > { %v570_v21 = vmul.f32 %v899_v18, %v569_v19 }
 0x146   : > { %v571_v22 = vmul.f32 0.5, %v570_v21 }
 0x148   : > { %v572_v23 = vsub.f32 1.5, %v571_v22 }
 0x149   : > { %v901_v24 = vpop.eup %900 }
 0x14a   : > { %v573_v25 = vmul.f32 %v899_v18, %v572_v23  ;;  %v579_v28 = vmul.f32 %v901_v24, %v567_v20  ;;  %vm585_vm3 = vweird.f32 %v901_v24 }
 0x14b   : > { %vm586_vm5 = vmor %vm584_vm4, %vm585_vm3 }
 0x14c   : > { %v577_v29 = vsel %vm576_vm2, %v899_v18, %v573_v25  ;;  %v580_v32 = vmul.f32 %v901_v24, %v579_v28 }
 0x14d   : > { %v588_v30 = vmul.f32 %v577_v29, %v562_v26  ;;  %v589_v31 = vmul.f32 %v577_v29, %v563_v27 }
 0x14e   : > { %v581_v35 = vmul.f32 0.5, %v580_v32 }
 0x14f   : > { %v592_v33 = vmax.f32 %v588_v30, 0.0  ;;  %v593_v34 = vmax.f32 %v589_v31, 0.0 }
 0x150   : > { %v582_v36 = vsub.f32 1.5, %v581_v35 }
 0x151   : > { %596 = vst [vmem:[%s223_s8] sm:$0xff] %v592_v33 }
 0x152   : > { %597 = vst [vmem:[%s223_s8 + $0x8] sm:$0xff] %v593_v34  ;;  %v583_v37 = vmul.f32 %v901_v24, %v582_v36 }
 0x154   : > { %v587_v40 = vsel %vm586_vm5, %v901_v24, %v583_v37 }
 0x155   : > { %v590_v41 = vmul.f32 %v587_v40, %v564_v38  ;;  %v591_v42 = vmul.f32 %v587_v40, %v565_v39 }
 0x157   : > { %v594_v43 = vmax.f32 %v590_v41, 0.0  ;;  %v595_v44 = vmax.f32 %v591_v42, 0.0 }
 0x159   : > { %598 = vst [vmem:[%s223_s8 + $0x10] sm:$0xff] %v594_v43 }
 0x15a   : > { %599 = vst [vmem:[%s223_s8 + $0x18] sm:$0xff] %v595_v44 }
 0x15b PF: > { %s13_s14 = sadd.s32 1, %s924_s14   ;;  %s1072_s12 = smov %s920_s13 }
 0x15c   : > { %p10_p5 = scmp.ge.s32.totalorder %s13_s14, 4   ;;  %s1073_s13 = smov %s1075_s15 }
 0x15e   :  { %12 = sbr.rel (!%p10_p5) target bundleno = 2 (0x2), region = 73 }

// kernel: generator_forward.11
= control target key start
LH: loop header
LB: loop body
LE: loop exit
PB: predicated region body
PF: predicated region fallthrough
CT: control target
= control target key end

     0   :  { %s607_s12 = smov 0   ;;  %s609_s13 = smov 0   ;;  %s653_s0 = inlined_call_operand.vmem [shape: bf16[16,128], index: 0, kind: input, shape index: {}]   ;;  %s654_s1 = inlined_call_operand.vmem [shape: bf16[2,128,128], index: 1, kind: input, shape index: {}]   ;;  %s655_s2 = inlined_call_operand.vmem [shape: f32[16,1], index: 2, kind: input, shape index: {}]   ;;  %s656_s3 = inlined_call_operand.vmem [shape: f32[2,16,128], index: 3, kind: output, shape index: {}]  }
   0x1   :  { %s611_s14 = smov 0  }
   0x2 LB: > { %s25_s15 = sadd.s32 1, %s580_s13  ;;  %p478_p0 = scmp.ge.s32.totalorder %s584_s14, 1  ;;  %s584_s14 = sphi %s611_s14, %s13_s14   ;;  %s580_s13 = sphi %s609_s13, %s658_s13   ;;  %s576_s12 = sphi %s607_s12, %s657_s12  }
   0x3   : > { %p27_p1 = scmp.ge.s32.totalorder %s25_s15, 2  ;;  %p165_p2 = scmp.lt.s32.totalorder %s584_s14, 3 }
   0x5   : > { %s660_s15 = smov (%p27_p1, %s25_s15), 0  ;;  %p166_p3 = pnand %p478_p0, %p165_p2 }
   0x6   : > { %p202_p4 = scmp.lt.s32.totalorder (!%p166_p3), %s576_s12, 1 }
   0x7   : > { %169 = sbr.rel (%p166_p3) target bundleno = 333 (0x14d), region = 32 }
   0xc   : > { %s662_s12 = smov (!%p202_p4, %s576_s12), 1  ;;  %v586_v2 = vmov 0   ;;  %v319_v3 = vld [vmem:[%s655_s2] sm:$0xff]  ;;  %v320_v5 = vld [vmem:[%s655_s2 + $0x8] sm:$0xff]  ;;  %v333_v12 = vlaneseq }
   0xd   : > { %s521_s16 = sshll.u32 %s662_s12, 6  ;;  %557 = vset.pattern.permute.xlu0 %v586_v2  ;;  %v523_v11 = vld [vmem:[%s653_s0] sm:$0xff]  ;;  %s522_s26 = sshll.u32 %s662_s12, 4 }
   0xe   : > { %s209_s19 = scalar_lea.vmem %s654_s1, %s521_s16  ;;  %323 = vperm.xlu0 %557, %v319_v3   ;;  %v334_v13 = vand.u32 127, %v333_v12  ;;  %s215_s29 = scalar_lea.vmem %s656_s3, %s522_s26 }
   0xf   : > { %v531_v0 = vld [vmem:[%s209_s19 + $0x38] sm:$0xff]  ;;  %v530_v1 = vld [vmem:[%s209_s19 + $0x30] sm:$0xff]  ;;  %v529_v4 = vld [vmem:[%s209_s19 + $0x28] sm:$0xff] }
  0x10   : > { %296 = vmatpush.bf16.msra.mxu0 %v531_v0  ;;  %v528_v6 = vld [vmem:[%s209_s19 + $0x20] sm:$0xff]  ;;  %v527_v7 = vld [vmem:[%s209_s19 + $0x18] sm:$0xff]  ;;  %v526_v8 = vld [vmem:[%s209_s19 + $0x10] sm:$0xff]  ;;  %vm335_vm0 = vcmp.lt.s32.totalorder %v334_v13, 64 }
  0x11   : > { %v525_v9 = vld [vmem:[%s209_s19 + $0x8] sm:$0xff]  ;;  %v524_v10 = vld [vmem:[%s209_s19] sm:$0xff] }
  0x14   : > { %297 = vmatpush.bf16.msra.mxu0 %v530_v1 }
  0x16   : > { %328 = vperm.xlu0 %557, %v320_v5  }
  0x18   : > { %298 = vmatpush.bf16.msra.mxu0 %v529_v4 }
  0x1c   : > { %299 = vmatpush.bf16.msra.mxu0 %v528_v6 }
  0x20   : > { %300 = vmatpush.bf16.msra.mxu0 %v527_v7 }
  0x24   : > { %301 = vmatpush.bf16.msra.mxu0 %v526_v8 }
  0x28   : > { %302 = vmatpush.bf16.msra.mxu0 %v525_v9 }
  0x2c   : > { %303 = vmatpush.bf16.msra.mxu0 %v524_v10 }
  0x2f   : > { %304 = vmatmul.bf16.vlgmr.msra.gmra.mxu0 %v523_v11 }
  0x80   : > { %v324_v14 = vpop.permute.xlu0 %323 }
  0x88   : > { %v329_v19 = vpop.permute.xlu0 %328 }
  0xac   : > { %v305_v15 = vpop.f32.mrf.mxu0 }
  0xad   : > { %v331_v16 = vadd.f32 %v324_v14, %v305_v15 }
  0xaf   : > { %v336_v17 = vsel %vm335_vm0, %v331_v16, 0.0 }
  0xb0   : > { %338 = vadd.xlane.f32.xlu1 %v336_v17  ;;  %v344_v18 = vmul.f32 %v336_v17, %v336_v17 }
  0xb2   : > { %346 = vadd.xlane.f32.xlu2 %v344_v18 }
  0xb4   : > { %v307_v20 = vpop.f32.mrf.mxu0 }
  0xb5   : > { %v332_v21 = vadd.f32 %v329_v19, %v307_v20 }
  0xb7   : > { %v337_v22 = vsel %vm335_vm0, %v332_v21, 0.0 }
  0xb8   : > { %340 = vadd.xlane.f32.xlu1 %v337_v22  ;;  %v345_v23 = vmul.f32 %v337_v22, %v337_v22 }
  0xba   : > { %348 = vadd.xlane.f32.xlu2 %v345_v23 }
 0x123   : > { %v339_v24 = vpop.xlane.xlu1 %338 }
 0x124   : > { %v342_v25 = vmul.f32 0.015625, %v339_v24 }
 0x125   : > { %v347_v26 = vpop.xlane.xlu2 %346 }
 0x126   : > { %v352_v27 = vmul.f32 %v342_v25, %v342_v25  ;;  %v350_v28 = vmul.f32 0.015625, %v347_v26  ;;  %v358_v47 = vsub.f32 %v331_v16, %v342_v25 }
 0x128   : > { %v354_v29 = vsub.f32 %v350_v28, %v352_v27 }
 0x12a   : > { %v356_v30 = vmax.f32 %v354_v29, 0.0 }
 0x12b   : > { %v341_v31 = vpop.xlane.xlu1 %340 }
 0x12c   : > { %v360_v32 = vadd.f32 1e-05, %v356_v30  ;;  %v343_v33 = vmul.f32 0.015625, %v341_v31 }
 0x12d   : > { %v349_v34 = vpop.xlane.xlu2 %348 }
 0x12e   : > { %558 = vrsqrt.f32 %v360_v32  ;;  %v353_v35 = vmul.f32 %v343_v33, %v343_v33  ;;  %v351_v36 = vmul.f32 0.015625, %v349_v34  ;;  %vm368_vm2 = vweird.f32 %v360_v32 }
 0x12f   : > { %v359_v56 = vsub.f32 %v332_v21, %v343_v33 }
 0x130   : > { %v355_v37 = vsub.f32 %v351_v36, %v353_v35 }
 0x132   : > { %v357_v38 = vmax.f32 %v355_v37, 0.0 }
 0x134   : > { %v559_v39 = vpop.eup %558  ;;  %v361_v41 = vadd.f32 1e-05, %v357_v38 }
 0x135   : > { %v363_v40 = vmul.f32 %v559_v39, %v360_v32  ;;  %vm369_vm1 = vweird.f32 %v559_v39 }
 0x136   : > { %560 = vrsqrt.f32 %v361_v41  ;;  %vm370_vm3 = vmor %vm368_vm2, %vm369_vm1  ;;  %vm378_vm5 = vweird.f32 %v361_v41 }
 0x137   : > { %v364_v42 = vmul.f32 %v559_v39, %v363_v40 }
 0x139   : > { %v365_v43 = vmul.f32 0.5, %v364_v42 }
 0x13b   : > { %v366_v44 = vsub.f32 1.5, %v365_v43 }
 0x13c   : > { %v561_v45 = vpop.eup %560 }
 0x13d   : > { %v367_v46 = vmul.f32 %v559_v39, %v366_v44  ;;  %v373_v48 = vmul.f32 %v561_v45, %v361_v41  ;;  %vm379_vm4 = vweird.f32 %v561_v45 }
 0x13e   : > { %vm380_vm6 = vmor %vm378_vm5, %vm379_vm4 }
 0x13f   : > { %v371_v49 = vsel %vm370_vm3, %v559_v39, %v367_v46  ;;  %v374_v51 = vmul.f32 %v561_v45, %v373_v48 }
 0x140   : > { %v382_v50 = vmul.f32 %v371_v49, %v358_v47 }
 0x141   : > { %v375_v53 = vmul.f32 0.5, %v374_v51 }
 0x142   : > { %v384_v52 = vmax.f32 %v382_v50, 0.0 }
 0x143   : > { %v376_v54 = vsub.f32 1.5, %v375_v53 }
 0x144   : > { %386 = vst [vmem:[%s215_s29] sm:$0xff] %v384_v52 }
 0x145   : > { %v377_v55 = vmul.f32 %v561_v45, %v376_v54 }
 0x147   : > { %v381_v57 = vsel %vm380_vm6, %v561_v45, %v377_v55 }
 0x148   : > { %v383_v58 = vmul.f32 %v381_v57, %v359_v56 }
 0x14a   : > { %v385_v59 = vmax.f32 %v383_v58, 0.0 }
 0x14c   : > { %387 = vst [vmem:[%s215_s29 + $0x8] sm:$0xff] %v385_v59 }
 0x14d PF: > { %s13_s14 = sadd.s32 1, %s584_s14   ;;  %s657_s12 = smov %s580_s13 }
 0x14e   : > { %p10_p5 = scmp.ge.s32.totalorder %s13_s14, 4   ;;  %s658_s13 = smov %s660_s15 }
 0x150   :  { %12 = sbr.rel (!%p10_p5) target bundleno = 2 (0x2), region = 73 }

// kernel: generator_forward.12
= control target key start
LH: loop header
LB: loop body
LE: loop exit
PB: predicated region body
PF: predicated region fallthrough
CT: control target
= control target key end

     0   :  { %s868_s12 = smov 0   ;;  %s870_s13 = smov 0   ;;  %s990_s0 = inlined_call_operand.vmem [shape: bf16[32,256], index: 0, kind: input, shape index: {}]   ;;  %s991_s1 = inlined_call_operand.vmem [shape: bf16[2,256,128], index: 1, kind: input, shape index: {}]   ;;  %s992_s2 = inlined_call_operand.vmem [shape: f32[32,1], index: 2, kind: input, shape index: {}]   ;;  %s993_s3 = inlined_call_operand.vmem [shape: f32[2,32,128], index: 3, kind: output, shape index: {}]  }
   0x1   :  { %s872_s14 = smov 0  }
   0x2 LB: > { %s25_s15 = sadd.s32 1, %s841_s13  ;;  %p663_p0 = scmp.ge.s32.totalorder %s845_s14, 1  ;;  %s845_s14 = sphi %s872_s14, %s13_s14   ;;  %s841_s13 = sphi %s870_s13, %s995_s13   ;;  %s837_s12 = sphi %s868_s12, %s994_s12  }
   0x3   : > { %p27_p1 = scmp.ge.s32.totalorder %s25_s15, 2  ;;  %p167_p2 = scmp.lt.s32.totalorder %s845_s14, 3 }
   0x5   : > { %s997_s15 = smov (%p27_p1, %s25_s15), 0  ;;  %p168_p3 = pnand %p663_p0, %p167_p2 }
   0x6   : > { %p207_p4 = scmp.lt.s32.totalorder (!%p168_p3), %s837_s12, 1 }
   0x7   : > { %171 = sbr.rel (%p168_p3) target bundleno = 366 (0x16e), region = 32 }
   0xc   : > { %s999_s12 = smov (!%p207_p4, %s837_s12), 1  ;;  %v847_v4 = vmov 0   ;;  %v438_v7 = vld [vmem:[%s992_s2] sm:$0xff]  ;;  %v440_v8 = vld [vmem:[%s992_s2 + $0x10] sm:$0xff]  ;;  %v439_v11 = vld [vmem:[%s992_s2 + $0x8] sm:$0xff]  ;;  %v466_v33 = vlaneseq }
   0xd   : > { %s750_s16 = sshll.u32 %s999_s12, 7  ;;  %813 = vset.pattern.permute.xlu0 %v847_v4  ;;  %814 = vset.pattern.permute.xlu1 %v847_v4  ;;  %v441_v12 = vld [vmem:[%s992_s2 + $0x18] sm:$0xff]  ;;  %v670_v19 = vld [vmem:[%s990_s0] sm:$0xf]  ;;  %v753_v21 = vld [vmem:[%s990_s0 + $0x4] sm:$0xf0] }
   0xe   : > { %s892_s19 = scalar_lea.vmem %s991_s1, %s750_s16  ;;  %444 = vperm.xlu0 %813, %v438_v7   ;;  %454 = vperm.xlu1 %814, %v440_v8   ;;  %v678_v22 = vld [vmem:[%s990_s0 + $0x10] sm:$0xf]  ;;  %v755_v24 = vld [vmem:[%s990_s0 + $0x14] sm:$0xf0]  ;;  %v752_v25 = vld [vmem:[%s990_s0 + $0x4] sm:$0xf]  ;;  %v671_v29 = vor.u32 %v753_v21, %v670_v19 }
   0xf   : > { %v763_v0 = vld [vmem:[%s892_s19 + $0x38] sm:$0xff]  ;;  %v762_v2 = vld [vmem:[%s892_s19 + $0x30] sm:$0xff]  ;;  %v761_v5 = vld [vmem:[%s892_s19 + $0x28] sm:$0xff]  ;;  %v679_v30 = vor.u32 %v755_v24, %v678_v22  ;;  %v467_v34 = vand.u32 127, %v466_v33  ;;  %s751_s21 = sshll.u32 %s999_s12, 5 }
  0x10   : > { %v771_v1 = vld [vmem:[%s892_s19 + $0x78] sm:$0xff]  ;;  %385 = vmatpush.bf16.msra.mxu0 %v763_v0  ;;  %772 = vmatpush.bf16.msra.mxu2 %v763_v0  ;;  %v770_v3 = vld [vmem:[%s892_s19 + $0x70] sm:$0xff]  ;;  %v769_v6 = vld [vmem:[%s892_s19 + $0x68] sm:$0xff]  ;;  %s971_s24 = scalar_lea.vmem %s993_s3, %s751_s21 }
  0x11   : > { %404 = vmatpush.bf16.msra.mxu1 %v771_v1  ;;  %780 = vmatpush.bf16.msra.mxu3 %v771_v1  ;;  %v760_v9 = vld [vmem:[%s892_s19 + $0x20] sm:$0xff]  ;;  %v759_v13 = vld [vmem:[%s892_s19 + $0x18] sm:$0xff]  ;;  %v758_v15 = vld [vmem:[%s892_s19 + $0x10] sm:$0xff]  ;;  %vm468_vm0 = vcmp.lt.s32.totalorder %v467_v34, 16 }
  0x12   : > { %v768_v10 = vld [vmem:[%s892_s19 + $0x60] sm:$0xff]  ;;  %v767_v14 = vld [vmem:[%s892_s19 + $0x58] sm:$0xff]  ;;  %v766_v16 = vld [vmem:[%s892_s19 + $0x50] sm:$0xff] }
  0x13   : > { %v757_v17 = vld [vmem:[%s892_s19 + $0x8] sm:$0xff]  ;;  %v756_v20 = vld [vmem:[%s892_s19] sm:$0xff]  ;;  %v754_v27 = vld [vmem:[%s990_s0 + $0x14] sm:$0xf] }
  0x14   : > { %386 = vmatpush.bf16.msra.mxu0 %v762_v2  ;;  %773 = vmatpush.bf16.msra.mxu2 %v762_v2  ;;  %v765_v18 = vld [vmem:[%s892_s19 + $0x48] sm:$0xff]  ;;  %v764_v23 = vld [vmem:[%s892_s19 + $0x40] sm:$0xff]  ;;  %v680_v28 = vld [vmem:[%s990_s0 + $0x18] sm:$0xf0] }
  0x15   : > { %405 = vmatpush.bf16.msra.mxu1 %v770_v3  ;;  %781 = vmatpush.bf16.msra.mxu3 %v770_v3  ;;  %v672_v26 = vld [vmem:[%s990_s0 + $0x8] sm:$0xf0]  ;;  %v683_v32 = vor.u32 %v754_v27, %v680_v28 }
  0x16   : > { %449 = vperm.xlu0 %813, %v439_v11   ;;  %459 = vperm.xlu1 %814, %v441_v12   ;;  %v675_v31 = vor.u32 %v752_v25, %v672_v26 }
  0x18   : > { %387 = vmatpush.bf16.msra.mxu0 %v761_v5  ;;  %774 = vmatpush.bf16.msra.mxu2 %v761_v5 }
  0x19   : > { %406 = vmatpush.bf16.msra.mxu1 %v769_v6  ;;  %782 = vmatpush.bf16.msra.mxu3 %v769_v6 }
  0x1c   : > { %388 = vmatpush.bf16.msra.mxu0 %v760_v9  ;;  %775 = vmatpush.bf16.msra.mxu2 %v760_v9 }
  0x1d   : > { %407 = vmatpush.bf16.msra.mxu1 %v768_v10  ;;  %783 = vmatpush.bf16.msra.mxu3 %v768_v10 }
  0x20   : > { %389 = vmatpush.bf16.msra.mxu0 %v759_v13  ;;  %776 = vmatpush.bf16.msra.mxu2 %v759_v13 }
  0x21   : > { %408 = vmatpush.bf16.msra.mxu1 %v767_v14  ;;  %784 = vmatpush.bf16.msra.mxu3 %v767_v14 }
  0x24   : > { %390 = vmatpush.bf16.msra.mxu0 %v758_v15  ;;  %777 = vmatpush.bf16.msra.mxu2 %v758_v15 }
  0x25   : > { %409 = vmatpush.bf16.msra.mxu1 %v766_v16  ;;  %785 = vmatpush.bf16.msra.mxu3 %v766_v16 }
  0x28   : > { %391 = vmatpush.bf16.msra.mxu0 %v757_v17  ;;  %778 = vmatpush.bf16.msra.mxu2 %v757_v17 }
  0x29   : > { %410 = vmatpush.bf16.msra.mxu1 %v765_v18  ;;  %786 = vmatpush.bf16.msra.mxu3 %v765_v18 }
  0x2c   : > { %392 = vmatpush.bf16.msra.mxu0 %v756_v20  ;;  %779 = vmatpush.bf16.msra.mxu2 %v756_v20 }
  0x2d   : > { %411 = vmatpush.bf16.msra.mxu1 %v764_v23  ;;  %787 = vmatpush.bf16.msra.mxu3 %v764_v23 }
  0x2f   : > { %393 = vmatmul.bf16.vlgmr.msra.gmra.mxu0 %v671_v29  ;;  %398 = vmatmul.bf16.vlgmr.msra.gmra.mxu2 %v679_v30 }
  0x30   : > { %412 = vmatmul.bf16.vlgmr.msra.gmra.mxu1 %v675_v31  ;;  %417 = vmatmul.bf16.vlgmr.msra.gmra.mxu3 %v683_v32 }
  0x80   : > { %v445_v36 = vpop.permute.xlu0 %444  ;;  %v455_v40 = vpop.permute.xlu1 %454 }
  0x88   : > { %v450_v49 = vpop.permute.xlu0 %449  ;;  %v460_v55 = vpop.permute.xlu1 %459 }
  0xac   : > { %v394_v35 = vpop.f32.mrf.mxu0 }
  0xad   : > { %v413_v37 = vpop.f32.mrf.mxu1 }
  0xae   : > { %v414_v38 = vadd.f32 %v413_v37, %v394_v35 }
  0xb0   : > { %v946_v39 = vadd.f32 %v445_v36, %v414_v38 }
  0xb2   : > { %v399_v41 = vpop.f32.mrf.mxu2  ;;  %v469_v42 = vsel %vm468_vm0, %v946_v39, 0.0 }
  0xb3   : > { %v418_v43 = vpop.f32.mrf.mxu3  ;;  %473 = vadd.xlane.f32.xlu2 %v469_v42  ;;  %v485_v59 = vmul.f32 %v469_v42, %v469_v42 }
  0xb4   : > { %v419_v44 = vadd.f32 %v418_v43, %v399_v41  ;;  %v396_v45 = vpop.f32.mrf.mxu0 }
  0xb5   : > { %v415_v46 = vpop.f32.mrf.mxu1 }
  0xb6   : > { %v950_v47 = vadd.f32 %v455_v40, %v419_v44  ;;  %v416_v48 = vadd.f32 %v415_v46, %v396_v45 }
  0xb8   : > { %v471_v50 = vsel %vm468_vm0, %v950_v47, 0.0  ;;  %v954_v51 = vadd.f32 %v450_v49, %v416_v48 }
  0xb9   : > { %477 = vadd.xlane.f32.xlu0 %v471_v50  ;;  %v487_v61 = vmul.f32 %v471_v50, %v471_v50 }
  0xba   : > { %v401_v52 = vpop.f32.mrf.mxu2  ;;  %v470_v53 = vsel %vm468_vm0, %v954_v51, 0.0 }
  0xbb   : > { %v420_v54 = vpop.f32.mrf.mxu3  ;;  %475 = vadd.xlane.f32.xlu2 %v470_v53  ;;  %v486_v60 = vmul.f32 %v470_v53, %v470_v53 }
  0xbc   : > { %v421_v56 = vadd.f32 %v420_v54, %v401_v52 }
  0xbe   : > { %v958_v57 = vadd.f32 %v460_v55, %v421_v56 }
  0xc0   : > { %v472_v58 = vsel %vm468_vm0, %v958_v57, 0.0 }
  0xc1   : > { %479 = vadd.xlane.f32.xlu1 %v472_v58  ;;  %v488_v62 = vmul.f32 %v472_v58, %v472_v58 }
  0xc3   : > { %489 = vadd.xlane.f32.xlu2 %v485_v59 }
  0xcb   : > { %491 = vadd.xlane.f32.xlu2 %v486_v60 }
  0xd3   : > { %493 = vadd.xlane.f32.xlu2 %v487_v61 }
  0xdb   : > { %495 = vadd.xlane.f32.xlu2 %v488_v62 }
 0x126   : > { %v474_v63 = vpop.xlane.xlu2 %473 }
 0x127   : > { %v481_v1 = vmul.f32 0.0625, %v474_v63 }
 0x129   : > { %v501_v3 = vmul.f32 %v481_v1, %v481_v1  ;;  %v513_v34 = vsub.f32 %v946_v39, %v481_v1 }
 0x12c   : > { %v478_v12 = vpop.xlane.xlu0 %477 }
 0x12d   : > { %v962_v14 = vmul.f32 0.0625, %v478_v12 }
 0x12e   : > { %v476_v0 = vpop.xlane.xlu2 %475 }
 0x12f   : > { %v482_v6 = vmul.f32 0.0625, %v476_v0  ;;  %v503_v17 = vmul.f32 %v962_v14, %v962_v14  ;;  %v515_v62 = vsub.f32 %v950_v47, %v962_v14 }
 0x131   : > { %v502_v10 = vmul.f32 %v482_v6, %v482_v6  ;;  %v514_v50 = vsub.f32 %v954_v51, %v482_v6 }
 0x134   : > { %v480_v24 = vpop.xlane.xlu1 %479 }
 0x135   : > { %v484_v29 = vmul.f32 0.0625, %v480_v24 }
 0x136   : > { %v490_v2 = vpop.xlane.xlu2 %489 }
 0x137   : > { %v497_v4 = vmul.f32 0.0625, %v490_v2  ;;  %v504_v35 = vmul.f32 %v484_v29, %v484_v29 }
 0x139   : > { %v505_v5 = vsub.f32 %v497_v4, %v501_v3 }
 0x13b   : > { %v509_v7 = vmax.f32 %v505_v5, 0.0  ;;  %v516_v5 = vsub.f32 %v958_v57, %v484_v29 }
 0x13d   : > { %v517_v8 = vadd.f32 1e-05, %v509_v7 }
 0x13e   : > { %v492_v9 = vpop.xlane.xlu2 %491 }
 0x13f   : > { %815 = vrsqrt.f32 %v517_v8  ;;  %v498_v11 = vmul.f32 0.0625, %v492_v9  ;;  %vm527_vm2 = vweird.f32 %v517_v8 }
 0x141   : > { %v506_v13 = vsub.f32 %v498_v11, %v502_v10 }
 0x143   : > { %v510_v15 = vmax.f32 %v506_v13, 0.0 }
 0x145   : > { %v816_v16 = vpop.eup %815  ;;  %v518_v18 = vadd.f32 1e-05, %v510_v15 }
 0x146   : > { %v522_v19 = vmul.f32 %v816_v16, %v517_v8  ;;  %v494_v20 = vpop.xlane.xlu2 %493  ;;  %vm528_vm1 = vweird.f32 %v816_v16 }
 0x147   : > { %817 = vrsqrt.f32 %v518_v18  ;;  %v499_v21 = vmul.f32 0.0625, %v494_v20  ;;  %vm529_vm3 = vmor %vm527_vm2, %vm528_vm1  ;;  %vm537_vm5 = vweird.f32 %v518_v18 }
 0x148   : > { %v523_v22 = vmul.f32 %v816_v16, %v522_v19 }
 0x149   : > { %v507_v23 = vsub.f32 %v499_v21, %v503_v17 }
 0x14a   : > { %v524_v25 = vmul.f32 0.5, %v523_v22 }
 0x14b   : > { %v511_v26 = vmax.f32 %v507_v23, 0.0 }
 0x14c   : > { %v525_v27 = vsub.f32 1.5, %v524_v25 }
 0x14d   : > { %v818_v28 = vpop.eup %817  ;;  %v519_v30 = vadd.f32 1e-05, %v511_v26 }
 0x14e   : > { %v526_v31 = vmul.f32 %v816_v16, %v525_v27  ;;  %v532_v32 = vmul.f32 %v818_v28, %v518_v18  ;;  %v496_v33 = vpop.xlane.xlu2 %495  ;;  %vm538_vm4 = vweird.f32 %v818_v28 }
 0x14f   : > { %819 = vrsqrt.f32 %v519_v30  ;;  %v500_v36 = vmul.f32 0.0625, %v496_v33  ;;  %vm539_vm6 = vmor %vm537_vm5, %vm538_vm4  ;;  %vm547_vm8 = vweird.f32 %v519_v30 }
 0x150   : > { %v530_v37 = vsel %vm529_vm3, %v816_v16, %v526_v31  ;;  %v533_v38 = vmul.f32 %v818_v28, %v532_v32 }
 0x151   : > { %v561_v40 = vmul.f32 %v530_v37, %v513_v34  ;;  %v508_v41 = vsub.f32 %v500_v36, %v504_v35 }
 0x152   : > { %v534_v42 = vmul.f32 0.5, %v533_v38 }
 0x153   : > { %v565_v43 = vmax.f32 %v561_v40, 0.0  ;;  %v512_v44 = vmax.f32 %v508_v41, 0.0 }
 0x154   : > { %v535_v45 = vsub.f32 1.5, %v534_v42 }
 0x155   : > { %v820_v39 = vpop.eup %819  ;;  %569 = vst [vmem:[%s971_s24] sm:$0xff] %v565_v43  ;;  %v520_v46 = vadd.f32 1e-05, %v512_v44 }
 0x156   : > { %v536_v48 = vmul.f32 %v818_v28, %v535_v45  ;;  %v542_v49 = vmul.f32 %v820_v39, %v519_v30  ;;  %vm548_vm7 = vweird.f32 %v820_v39 }
 0x157   : > { %821 = vrsqrt.f32 %v520_v46  ;;  %vm549_vm9 = vmor %vm547_vm8, %vm548_vm7  ;;  %vm557_vm11 = vweird.f32 %v520_v46 }
 0x158   : > { %v540_v52 = vsel %vm539_vm6, %v818_v28, %v536_v48  ;;  %v543_v53 = vmul.f32 %v820_v39, %v542_v49 }
 0x159   : > { %v562_v54 = vmul.f32 %v540_v52, %v514_v50 }
 0x15a   : > { %v544_v55 = vmul.f32 0.5, %v543_v53 }
 0x15b   : > { %v566_v56 = vmax.f32 %v562_v54, 0.0 }
 0x15c   : > { %v545_v58 = vsub.f32 1.5, %v544_v55 }
 0x15d   : > { %v822_v59 = vpop.eup %821  ;;  %570 = vst [vmem:[%s971_s24 + $0x8] sm:$0xff] %v566_v56 }
 0x15e   : > { %v546_v60 = vmul.f32 %v820_v39, %v545_v58  ;;  %v552_v61 = vmul.f32 %v822_v59, %v520_v46  ;;  %vm558_vm10 = vweird.f32 %v822_v59 }
 0x15f   : > { %vm559_vm12 = vmor %vm557_vm11, %vm558_vm10 }
 0x160   : > { %v550_v51 = vsel %vm549_vm9, %v820_v39, %v546_v60  ;;  %v553_v63 = vmul.f32 %v822_v59, %v552_v61 }
 0x161   : > { %v563_v0 = vmul.f32 %v550_v51, %v515_v62 }
 0x162   : > { %v554_v1 = vmul.f32 0.5, %v553_v63 }
 0x163   : > { %v567_v2 = vmax.f32 %v563_v0, 0.0 }
 0x164   : > { %v555_v3 = vsub.f32 1.5, %v554_v1 }
 0x165   : > { %571 = vst [vmem:[%s971_s24 + $0x10] sm:$0xff] %v567_v2 }
 0x166   : > { %v556_v4 = vmul.f32 %v822_v59, %v555_v3 }
 0x168   : > { %v560_v6 = vsel %vm559_vm12, %v822_v59, %v556_v4 }
 0x169   : > { %v564_v7 = vmul.f32 %v560_v6, %v516_v5 }
 0x16b   : > { %v568_v8 = vmax.f32 %v564_v7, 0.0 }
 0x16d   : > { %572 = vst [vmem:[%s971_s24 + $0x18] sm:$0xff] %v568_v8 }
 0x16e PF: > { %s13_s14 = sadd.s32 1, %s845_s14   ;;  %s994_s12 = smov %s841_s13 }
 0x16f   : > { %p10_p5 = scmp.ge.s32.totalorder %s13_s14, 4   ;;  %s995_s13 = smov %s997_s15 }
 0x171   :  { %12 = sbr.rel (!%p10_p5) target bundleno = 2 (0x2), region = 73 }

// kernel: generator_forward.14
= control target key start
LH: loop header
LB: loop body
LE: loop exit
PB: predicated region body
PF: predicated region fallthrough
CT: control target
= control target key end

     0   :  { %s1064_s15 = smov 0   ;;  %s1066_s16 = smov 0   ;;  %s1232_s0 = inlined_call_operand.vmem [shape: bf16[32,512], index: 0, kind: input, shape index: {}]   ;;  %s1233_s1 = inlined_call_operand.vmem [shape: bf16[2,512,128], index: 1, kind: input, shape index: {}]   ;;  %s1234_s2 = inlined_call_operand.vmem [shape: f32[32,1], index: 2, kind: input, shape index: {}]   ;;  %s1235_s3 = inlined_call_operand.vmem [shape: f32[2,32,128], index: 3, kind: input, shape index: {}]   ;;  %s1236_s4 = inlined_call_operand.vmem [shape: f32[2,32,128], index: 4, kind: output, shape index: {}]  }
   0x1   :  { %s1068_s17 = smov 0   ;;  %s1070_s18 = smov 0  }
   0x2   :  { %s1072_s19 = smov 0   ;;  %s1074_s20 = smov 0  }
   0x3   :  { %s1076_s21 = smov 0  }
   0x4 LB: > { %s23_s22 = sadd.s32 1, %s1027_s19  ;;  %s26_s23 = sadd.s32 1, %s1031_s20  ;;  %s1035_s21 = sphi %s1076_s21, %s14_s21   ;;  %s1031_s20 = sphi %s1074_s20, %s1242_s20   ;;  %s1027_s19 = sphi %s1072_s19, %s1241_s19   ;;  %s1023_s18 = sphi %s1070_s18, %s1240_s18   ;;  %s1019_s17 = sphi %s1068_s17, %s1239_s17   ;;  %s1015_s16 = sphi %s1066_s16, %s1238_s16   ;;  %s1011_s15 = sphi %s1064_s15, %s1237_s15  }
   0x5   : > { %p24_p0 = scmp.ge.s32.totalorder %s23_s22, 2  ;;  %s33_s24 = sadd.s32 1, %s1015_s16 }
   0x6   : > { %p40_p1 = scmp.ne.s32.totalorder %s1015_s16, %s1011_s15  ;;  %p41_p2 = scmp.eq.s32.totalorder %s1035_s21, 0 }
   0x7   : > { %s1244_s22 = smov (%p24_p0, %s23_s22), 0  ;;  %s1246_s23 = smov (!%p24_p0, %s26_s23), %s1031_s20 }
   0x8   : > { %s30_s25 = ssub.s32 %s1027_s19, %s1244_s22  ;;  %p42_p3 = por %p41_p2, %p40_p1 }
   0x9   : > { %p28_p4 = scmp.ge.s32.totalorder %s1246_s23, 2  ;;  %p31_p5 = scmp.eq.s32.totalorder %s30_s25, 0 }
   0xa   : > { %p777_p6 = scmp.ge.s32.totalorder %s1035_s21, 4 }
   0xb   : > { %s1248_s23 = smov (%p28_p4, %s1246_s23), 0 }
   0xc   : > { %s1113_s26 = scalar_select %p31_p5, %s1015_s16, %s33_s24  }
   0xd   : > { %170 = sbr.rel (%p777_p6) target bundleno = 26 (0x1a), region = 20 }
  0x12   : > { %173 = sbr.rel (!%p42_p3) target bundleno = 26 (0x1a), region = 24  ;;  %s175_s27 = sand.u32 (%p42_p3), 1, %s1015_s16  }
  0x13   : > { %s874_s28 = sshll.u32 (%p42_p3), %s1027_s19, 3  ;;  %s778_s29 = sshll.u32 (%p42_p3), %s175_s27, 5 }
  0x14   : > { %s180_s6 = scalar_lea.vmem (%p42_p3), %s1232_s0, %s874_s28  ;;  %s177_s7 = scalar_lea.vmem (%p42_p3), [#allocation3], %s778_s29 }
  0x15   : > { %v215_v0 = vld [vmem:[%s180_s6] sm:$0xff] (%p42_p3)  ;;  %v217_v1 = vld [vmem:[%s180_s6 + $0x10] sm:$0xff] (%p42_p3) }
  0x16   : > { %v219_v2 = vld [vmem:[%s180_s6 + $0x20] sm:$0xff] (%p42_p3)  ;;  %216 = vst [vmem:[%s177_s7] sm:$0xff] (%p42_p3), %v215_v0  ;;  %v221_v3 = vld [vmem:[%s180_s6 + $0x30] sm:$0xff] (%p42_p3) }
  0x17   : > { %218 = vst [vmem:[%s177_s7 + $0x8] sm:$0xff] %v217_v1 }
  0x18   : > { %220 = vst [vmem:[%s177_s7 + $0x10] sm:$0xff] %v219_v2 }
  0x19   : > { %222 = vst [vmem:[%s177_s7 + $0x18] sm:$0xff] %v221_v3 }
  0x1a PF: > { %p781_p7 = scmp.ge.s32.totalorder %s1035_s21, 1  ;;  %p248_p8 = scmp.lt.s32.totalorder %s1035_s21, 5 }
  0x1c   : > { %p249_p9 = pnand %p781_p7, %p248_p8 }
  0x1d   : > { %s255_s8 = sand.u32 (!%p249_p9), 1, %s1011_s15   ;;  %s783_s9 = sshll.u32 (!%p249_p9), %s1019_s17, 5 }
  0x1e   : > { %252 = sbr.rel (%p249_p9) target bundleno = 534 (0x216), region = 70  ;;  %s782_s10 = sshll.u32 (!%p249_p9), %s255_s8, 5 }
  0x1f   : > { %p296_p10 = scmp.lt.s32.totalorder (!%p249_p9), %s1023_s18, 1  ;;  %p298_p11 = scmp.lt.s32.totalorder (!%p249_p9), %s783_s9, 63 }
  0x20   : > { %s1142_s7 = scalar_lea.vmem (!%p249_p9), [#allocation3], %s782_s10  ;;  %p790_p12 = scmp.ne.s32.totalorder (!%p249_p9), %s1019_s17, 0 }
  0x23   : > { %s1250_s18 = smov (!%p296_p10, %s1023_s18), 1  ;;  %s1252_s9 = smov (!%p298_p11, %s783_s9), 63 }
  0x24   : > { %s784_s11 = sshll.u32 %s1250_s18, 6  ;;  %s875_s12 = sshll.u32 %s1250_s18, 5 }
  0x25   : > { %s301_s13 = sadd.s32 %s784_s11, %s1252_s9  ;;  %s1130_s25 = scalar_lea.vmem %s1235_s3, %s875_s12 }
  0x26   : > { %s785_s27 = sshll.u32 %s301_s13, 2  ;;  %s1135_s30 = scalar_lea.vmem %s1236_s4, %s875_s12 }
  0x27   : > { %s1140_s6 = scalar_lea.vmem %s1233_s1, %s785_s27  ;;  %318 = sbr.rel (%p790_p12) target bundleno = 49 (0x31), region = 78 }
  0x2c   : > { %v1037_v4 = vmov 0.0  }
  0x2d   : > { %319 = vst [vmem:[#allocation2 + $0x10] sm:$0xff] %v1037_v4 }
  0x2e   : > { %320 = vst [vmem:[#allocation2] sm:$0xff] %v1037_v4 }
  0x2f   : > { %321 = vst [vmem:[#allocation2 + $0x18] sm:$0xff] %v1037_v4 }
  0x30   : > { %322 = vst [vmem:[#allocation2 + $0x8] sm:$0xff] %v1037_v4 }
  0x31 PF: > { %v888_v5 = vld [vmem:[%s1140_s6 + $0x38] sm:$0xff]  ;;  %v887_v7 = vld [vmem:[%s1140_s6 + $0x30] sm:$0xff]  ;;  %v886_v9 = vld [vmem:[%s1140_s6 + $0x28] sm:$0xff]  ;;  %p871_p13 = scmp.ne.s32.totalorder %s1019_s17, 1 }
  0x32   : > { %v896_v6 = vld [vmem:[%s1140_s6 + $0x78] sm:$0xff]  ;;  %479 = vmatpush.bf16.msra.mxu0 %v888_v5  ;;  %897 = vmatpush.bf16.msra.mxu2 %v888_v5  ;;  %v895_v8 = vld [vmem:[%s1140_s6 + $0x70] sm:$0xff]  ;;  %v894_v10 = vld [vmem:[%s1140_s6 + $0x68] sm:$0xff] }
  0x33   : > { %498 = vmatpush.bf16.msra.mxu1 %v896_v6  ;;  %905 = vmatpush.bf16.msra.mxu3 %v896_v6  ;;  %v885_v11 = vld [vmem:[%s1140_s6 + $0x20] sm:$0xff]  ;;  %v884_v13 = vld [vmem:[%s1140_s6 + $0x18] sm:$0xff]  ;;  %v883_v15 = vld [vmem:[%s1140_s6 + $0x10] sm:$0xff] }
  0x34   : > { %v893_v12 = vld [vmem:[%s1140_s6 + $0x60] sm:$0xff]  ;;  %v892_v14 = vld [vmem:[%s1140_s6 + $0x58] sm:$0xff]  ;;  %v891_v16 = vld [vmem:[%s1140_s6 + $0x50] sm:$0xff] }
  0x35   : > { %v882_v17 = vld [vmem:[%s1140_s6 + $0x8] sm:$0xff]  ;;  %v881_v19 = vld [vmem:[%s1140_s6] sm:$0xff]  ;;  %v801_v23 = vld [vmem:[%s1142_s7 + $0x10] sm:$0xf] }
  0x36   : > { %480 = vmatpush.bf16.msra.mxu0 %v887_v7  ;;  %898 = vmatpush.bf16.msra.mxu2 %v887_v7  ;;  %v890_v18 = vld [vmem:[%s1140_s6 + $0x48] sm:$0xff]  ;;  %v889_v20 = vld [vmem:[%s1140_s6 + $0x40] sm:$0xff]  ;;  %v880_v24 = vld [vmem:[%s1142_s7 + $0x14] sm:$0xf0] }
  0x37   : > { %499 = vmatpush.bf16.msra.mxu1 %v895_v8  ;;  %906 = vmatpush.bf16.msra.mxu3 %v895_v8  ;;  %v793_v21 = vld [vmem:[%s1142_s7] sm:$0xf]  ;;  %v878_v22 = vld [vmem:[%s1142_s7 + $0x4] sm:$0xf0]  ;;  %v877_v25 = vld [vmem:[%s1142_s7 + $0x4] sm:$0xf]  ;;  %v802_v30 = vor.u32 %v880_v24, %v801_v23 }
  0x38   : > { %v795_v26 = vld [vmem:[%s1142_s7 + $0x8] sm:$0xf0]  ;;  %v879_v27 = vld [vmem:[%s1142_s7 + $0x14] sm:$0xf]  ;;  %v803_v28 = vld [vmem:[%s1142_s7 + $0x18] sm:$0xf0]  ;;  %v794_v29 = vor.u32 %v878_v22, %v793_v21 }
  0x39   : > { %v798_v31 = vor.u32 %v877_v25, %v795_v26  ;;  %v806_v32 = vor.u32 %v879_v27, %v803_v28  ;;  %v323_v34 = vld [vmem:[#allocation2 + $0x10] sm:$0xff]  ;;  %v325_v39 = vld [vmem:[#allocation2 + $0x18] sm:$0xff]  ;;  %v324_v43 = vld [vmem:[#allocation2] sm:$0xff] }
  0x3a   : > { %481 = vmatpush.bf16.msra.mxu0 %v886_v9  ;;  %899 = vmatpush.bf16.msra.mxu2 %v886_v9  ;;  %v326_v49 = vld [vmem:[#allocation2 + $0x8] sm:$0xff] }
  0x3b   : > { %500 = vmatpush.bf16.msra.mxu1 %v894_v10  ;;  %907 = vmatpush.bf16.msra.mxu3 %v894_v10 }
  0x3e   : > { %482 = vmatpush.bf16.msra.mxu0 %v885_v11  ;;  %900 = vmatpush.bf16.msra.mxu2 %v885_v11 }
  0x3f   : > { %501 = vmatpush.bf16.msra.mxu1 %v893_v12  ;;  %908 = vmatpush.bf16.msra.mxu3 %v893_v12 }
  0x42   : > { %483 = vmatpush.bf16.msra.mxu0 %v884_v13  ;;  %901 = vmatpush.bf16.msra.mxu2 %v884_v13 }
  0x43   : > { %502 = vmatpush.bf16.msra.mxu1 %v892_v14  ;;  %909 = vmatpush.bf16.msra.mxu3 %v892_v14 }
  0x46   : > { %484 = vmatpush.bf16.msra.mxu0 %v883_v15  ;;  %902 = vmatpush.bf16.msra.mxu2 %v883_v15 }
  0x47   : > { %503 = vmatpush.bf16.msra.mxu1 %v891_v16  ;;  %910 = vmatpush.bf16.msra.mxu3 %v891_v16 }
  0x4a   : > { %485 = vmatpush.bf16.msra.mxu0 %v882_v17  ;;  %903 = vmatpush.bf16.msra.mxu2 %v882_v17 }
  0x4b   : > { %504 = vmatpush.bf16.msra.mxu1 %v890_v18  ;;  %911 = vmatpush.bf16.msra.mxu3 %v890_v18 }
  0x4e   : > { %486 = vmatpush.bf16.msra.mxu0 %v881_v19  ;;  %904 = vmatpush.bf16.msra.mxu2 %v881_v19 }
  0x4f   : > { %505 = vmatpush.bf16.msra.mxu1 %v889_v20  ;;  %912 = vmatpush.bf16.msra.mxu3 %v889_v20 }
  0x51   : > { %487 = vmatmul.bf16.vlgmr.msra.gmra.mxu0 %v794_v29  ;;  %492 = vmatmul.bf16.vlgmr.msra.gmra.mxu2 %v802_v30 }
  0x52   : > { %506 = vmatmul.bf16.vlgmr.msra.gmra.mxu1 %v798_v31  ;;  %511 = vmatmul.bf16.vlgmr.msra.gmra.mxu3 %v806_v32 }
  0xce   : > { %v488_v33 = vpop.f32.mrf.mxu0 }
  0xcf   : > { %v507_v35 = vpop.f32.mrf.mxu1 }
  0xd0   : > { %v508_v36 = vadd.f32 %v507_v35, %v488_v33 }
  0xd2   : > { %v517_v37 = vadd.f32 %v508_v36, %v323_v34 }
  0xd4   : > { %521 = vst [vmem:[#allocation2 + $0x10] sm:$0xff] %v517_v37  ;;  %v493_v38 = vpop.f32.mrf.mxu2 }
  0xd5   : > { %v512_v40 = vpop.f32.mrf.mxu3 }
  0xd6   : > { %v513_v41 = vadd.f32 %v512_v40, %v493_v38  ;;  %v490_v42 = vpop.f32.mrf.mxu0 }
  0xd7   : > { %v509_v44 = vpop.f32.mrf.mxu1 }
  0xd8   : > { %v519_v45 = vadd.f32 %v513_v41, %v325_v39  ;;  %v510_v46 = vadd.f32 %v509_v44, %v490_v42 }
  0xda   : > { %523 = vst [vmem:[#allocation2 + $0x18] sm:$0xff] %v519_v45  ;;  %v518_v47 = vadd.f32 %v510_v46, %v324_v43 }
  0xdc   : > { %522 = vst [vmem:[#allocation2] sm:$0xff] %v518_v47  ;;  %v495_v48 = vpop.f32.mrf.mxu2 }
  0xdd   : > { %v514_v50 = vpop.f32.mrf.mxu3 }
  0xde   : > { %v515_v51 = vadd.f32 %v514_v50, %v495_v48  ;;  %528 = sbr.rel (%p871_p13) target bundleno = 534 (0x216), region = 82 }
  0xe0   : > { %v520_v52 = vadd.f32 %v515_v51, %v326_v49 }
  0xe2   : > { %524 = vst [vmem:[#allocation2 + $0x8] sm:$0xff] %v520_v52 }
  0xe3   : > { %v535_v53 = vld [vmem:[%s1234_s2 + $0x10] sm:$0xff]  ;;  %v533_v54 = vld [vmem:[%s1234_s2] sm:$0xff]  ;;  %v1038_v55 = vmov 0   ;;  %v536_v56 = vld [vmem:[%s1234_s2 + $0x18] sm:$0xff]  ;;  %v561_v58 = vlaneseq }
  0xe4   : > { %972 = vset.pattern.permute.xlu1 %v1038_v55  ;;  %971 = vset.pattern.permute.xlu0 %v1038_v55  ;;  %v534_v57 = vld [vmem:[%s1234_s2 + $0x8] sm:$0xff]  ;;  %v531_v60 = vld [vmem:[#allocation2 + $0x18] sm:$0xff]  ;;  %v529_v61 = vld [vmem:[#allocation2 + $0x10] sm:$0xff] }
  0xe5   : > { %549 = vperm.xlu1 %972, %v535_v53   ;;  %539 = vperm.xlu0 %971, %v533_v54   ;;  %v562_v59 = vand.u32 127, %v561_v58  ;;  %v530_v5 = vld [vmem:[#allocation2] sm:$0xff] }
  0xe6   : > { %v608_v54 = vld [vmem:[%s1130_s25] sm:$0xff] }
  0xe7   : > { %vm563_vm0 = vcmp.lt.s32.totalorder %v562_v59, 16 }
  0xe9   : > { %v532_v4 = vld [vmem:[#allocation2 + $0x8] sm:$0xff] }
  0xed   : > { %554 = vperm.xlu1 %972, %v536_v56   ;;  %544 = vperm.xlu0 %971, %v534_v57  }
 0x157   : > { %v550_v62 = vpop.permute.xlu1 %549  ;;  %v540_v63 = vpop.permute.xlu0 %539 }
 0x158   : > { %v1182_v0 = vadd.f32 %v550_v62, %v531_v60  ;;  %v1184_v1 = vadd.f32 %v540_v63, %v529_v61 }
 0x15a   : > { %v566_v2 = vsel %vm563_vm0, %v1182_v0, 0.0  ;;  %v564_v3 = vsel %vm563_vm0, %v1184_v1, 0.0 }
 0x15b   : > { %572 = vadd.xlane.f32.xlu0 %v566_v2  ;;  %568 = vadd.xlane.f32.xlu2 %v564_v3  ;;  %v580_v12 = vmul.f32 %v564_v3, %v564_v3  ;;  %v582_v14 = vmul.f32 %v566_v2, %v566_v2 }
 0x15f   : > { %v555_v6 = vpop.permute.xlu1 %554  ;;  %v545_v7 = vpop.permute.xlu0 %544 }
 0x160   : > { %v1188_v8 = vadd.f32 %v555_v6, %v532_v4  ;;  %v1190_v9 = vadd.f32 %v545_v7, %v530_v5  ;;  %v609_v5 = vld [vmem:[%s1130_s25 + $0x8] sm:$0xff] }
 0x162   : > { %v567_v10 = vsel %vm563_vm0, %v1188_v8, 0.0  ;;  %v565_v11 = vsel %vm563_vm0, %v1190_v9, 0.0 }
 0x163   : > { %574 = vadd.xlane.f32.xlu1 %v567_v10  ;;  %570 = vadd.xlane.f32.xlu2 %v565_v11  ;;  %v581_v13 = vmul.f32 %v565_v11, %v565_v11  ;;  %v583_v15 = vmul.f32 %v567_v10, %v567_v10 }
 0x16b   : > { %584 = vadd.xlane.f32.xlu2 %v580_v12 }
 0x173   : > { %586 = vadd.xlane.f32.xlu2 %v581_v13 }
 0x17b   : > { %588 = vadd.xlane.f32.xlu2 %v582_v14 }
 0x183   : > { %590 = vadd.xlane.f32.xlu2 %v583_v15 }
 0x1ce   : > { %v569_v16 = vpop.xlane.xlu2 %568  ;;  %v573_v29 = vpop.xlane.xlu0 %572 }
 0x1cf   : > { %v576_v18 = vmul.f32 0.0625, %v569_v16  ;;  %v1194_v31 = vmul.f32 0.0625, %v573_v29 }
 0x1d1   : > { %v596_v20 = vmul.f32 %v576_v18, %v576_v18  ;;  %v598_v34 = vmul.f32 %v1194_v31, %v1194_v31  ;;  %v612_v51 = vsub.f32 %v1184_v1, %v576_v18 }
 0x1d6   : > { %v571_v17 = vpop.xlane.xlu2 %570  ;;  %v575_v41 = vpop.xlane.xlu1 %574 }
 0x1d7   : > { %v577_v23 = vmul.f32 0.0625, %v571_v17  ;;  %v579_v46 = vmul.f32 0.0625, %v575_v41  ;;  %v610_v17 = vld [vmem:[%s1130_s25 + $0x10] sm:$0xff] }
 0x1d9   : > { %v597_v27 = vmul.f32 %v577_v23, %v577_v23  ;;  %v599_v52 = vmul.f32 %v579_v46, %v579_v46  ;;  %v613_v4 = vsub.f32 %v1190_v9, %v577_v23  ;;  %v614_v9 = vsub.f32 %v1182_v0, %v1194_v31 }
 0x1de   : > { %v585_v19 = vpop.xlane.xlu2 %584 }
 0x1df   : > { %v592_v21 = vmul.f32 0.0625, %v585_v19 }
 0x1e1   : > { %v600_v22 = vsub.f32 %v592_v21, %v596_v20 }
 0x1e3   : > { %v604_v24 = vmax.f32 %v600_v22, 0.0 }
 0x1e5   : > { %v616_v25 = vadd.f32 1e-05, %v604_v24 }
 0x1e6   : > { %v587_v26 = vpop.xlane.xlu2 %586 }
 0x1e7   : > { %973 = vrsqrt.f32 %v616_v25  ;;  %v593_v28 = vmul.f32 0.0625, %v587_v26  ;;  %vm626_vm2 = vweird.f32 %v616_v25  ;;  %v611_v26 = vld [vmem:[%s1130_s25 + $0x18] sm:$0xff] }
 0x1e9   : > { %v601_v30 = vsub.f32 %v593_v28, %v597_v27 }
 0x1eb   : > { %v605_v32 = vmax.f32 %v601_v30, 0.0 }
 0x1ed   : > { %v974_v33 = vpop.eup %973  ;;  %v617_v35 = vadd.f32 1e-05, %v605_v32 }
 0x1ee   : > { %v621_v36 = vmul.f32 %v974_v33, %v616_v25  ;;  %v589_v37 = vpop.xlane.xlu2 %588  ;;  %vm627_vm1 = vweird.f32 %v974_v33  ;;  %v615_v25 = vsub.f32 %v1188_v8, %v579_v46 }
 0x1ef   : > { %975 = vrsqrt.f32 %v617_v35  ;;  %v594_v38 = vmul.f32 0.0625, %v589_v37  ;;  %vm628_vm3 = vmor %vm626_vm2, %vm627_vm1  ;;  %vm636_vm5 = vweird.f32 %v617_v35 }
 0x1f0   : > { %v622_v39 = vmul.f32 %v974_v33, %v621_v36 }
 0x1f1   : > { %v602_v40 = vsub.f32 %v594_v38, %v598_v34 }
 0x1f2   : > { %v623_v42 = vmul.f32 0.5, %v622_v39 }
 0x1f3   : > { %v606_v43 = vmax.f32 %v602_v40, 0.0 }
 0x1f4   : > { %v624_v44 = vsub.f32 1.5, %v623_v42 }
 0x1f5   : > { %v976_v45 = vpop.eup %975  ;;  %v618_v47 = vadd.f32 1e-05, %v606_v43 }
 0x1f6   : > { %v625_v48 = vmul.f32 %v974_v33, %v624_v44  ;;  %v631_v49 = vmul.f32 %v976_v45, %v617_v35  ;;  %v591_v50 = vpop.xlane.xlu2 %590  ;;  %vm637_vm4 = vweird.f32 %v976_v45 }
 0x1f7   : > { %977 = vrsqrt.f32 %v618_v47  ;;  %v595_v53 = vmul.f32 0.0625, %v591_v50  ;;  %vm638_vm6 = vmor %vm636_vm5, %vm637_vm4  ;;  %vm646_vm8 = vweird.f32 %v618_v47 }
 0x1f8   : > { %v629_v55 = vsel %vm628_vm3, %v974_v33, %v625_v48  ;;  %v632_v56 = vmul.f32 %v976_v45, %v631_v49 }
 0x1f9   : > { %v660_v57 = vmul.f32 %v629_v55, %v612_v51  ;;  %v603_v58 = vsub.f32 %v595_v53, %v599_v52 }
 0x1fa   : > { %v633_v59 = vmul.f32 0.5, %v632_v56 }
 0x1fb   : > { %v664_v60 = vadd.f32 %v660_v57, %v608_v54  ;;  %v607_v61 = vmax.f32 %v603_v58, 0.0 }
 0x1fc   : > { %v634_v62 = vsub.f32 1.5, %v633_v59 }
 0x1fd   : > { %v978_v63 = vpop.eup %977  ;;  %668 = vst [vmem:[%s1135_s30] sm:$0xff] %v664_v60  ;;  %v619_v2 = vadd.f32 1e-05, %v607_v61 }
 0x1fe   : > { %v635_v1 = vmul.f32 %v976_v45, %v634_v62  ;;  %v641_v3 = vmul.f32 %v978_v63, %v618_v47  ;;  %vm647_vm7 = vweird.f32 %v978_v63 }
 0x1ff   : > { %979 = vrsqrt.f32 %v619_v2  ;;  %vm648_vm9 = vmor %vm646_vm8, %vm647_vm7  ;;  %vm656_vm11 = vweird.f32 %v619_v2 }
 0x200   : > { %v639_v6 = vsel %vm638_vm6, %v976_v45, %v635_v1  ;;  %v642_v7 = vmul.f32 %v978_v63, %v641_v3 }
 0x201   : > { %v661_v10 = vmul.f32 %v639_v6, %v613_v4 }
 0x202   : > { %v643_v11 = vmul.f32 0.5, %v642_v7 }
 0x203   : > { %v665_v12 = vadd.f32 %v661_v10, %v609_v5 }
 0x204   : > { %v644_v13 = vsub.f32 1.5, %v643_v11 }
 0x205   : > { %v980_v14 = vpop.eup %979  ;;  %669 = vst [vmem:[%s1135_s30 + $0x8] sm:$0xff] %v665_v12 }
 0x206   : > { %v645_v15 = vmul.f32 %v978_v63, %v644_v13  ;;  %v651_v16 = vmul.f32 %v980_v14, %v619_v2  ;;  %vm657_vm10 = vweird.f32 %v980_v14 }
 0x207   : > { %vm658_vm12 = vmor %vm656_vm11, %vm657_vm10 }
 0x208   : > { %v649_v18 = vsel %vm648_vm9, %v978_v63, %v645_v15  ;;  %v652_v19 = vmul.f32 %v980_v14, %v651_v16 }
 0x209   : > { %v662_v20 = vmul.f32 %v649_v18, %v614_v9 }
 0x20a   : > { %v653_v21 = vmul.f32 0.5, %v652_v19 }
 0x20b   : > { %v666_v22 = vadd.f32 %v662_v20, %v610_v17 }
 0x20c   : > { %v654_v23 = vsub.f32 1.5, %v653_v21 }
 0x20d   : > { %670 = vst [vmem:[%s1135_s30 + $0x10] sm:$0xff] %v666_v22 }
 0x20e   : > { %v655_v24 = vmul.f32 %v980_v14, %v654_v23 }
 0x210   : > { %v659_v27 = vsel %vm658_vm12, %v980_v14, %v655_v24 }
 0x211   : > { %v663_v28 = vmul.f32 %v659_v27, %v615_v25 }
 0x213   : > { %v667_v0 = vadd.f32 %v663_v28, %v611_v26 }
 0x215   : > { %671 = vst [vmem:[%s1135_s30 + $0x18] sm:$0xff] %v667_v0 }
 0x216 PF: > { %s14_s21 = sadd.s32 1, %s1035_s21   ;;  %s1237_s15 = smov %s1015_s16 }
 0x217   : > { %p11_p0 = scmp.ge.s32.totalorder %s14_s21, 6   ;;  %s1238_s16 = smov %s1113_s26 }
 0x218   : > { %s1239_s17 = smov %s1027_s19  ;;  %s1240_s18 = smov %s1031_s20 }
 0x219   : > { %s1241_s19 = smov %s1244_s22  ;;  %s1242_s20 = smov %s1248_s23 }
 0x21a   :  { %13 = sbr.rel (!%p11_p0) target bundleno = 4 (0x4), region = 123 }

// kernel: generator_forward.13
= control target key start
LH: loop header
LB: loop body
LE: loop exit
PB: predicated region body
PF: predicated region fallthrough
CT: control target
= control target key end

     0   :  { %s993_s12 = smov 0   ;;  %s995_s13 = smov 0   ;;  %s1152_s0 = inlined_call_operand.vmem [shape: bf16[32,512], index: 0, kind: input, shape index: {}]   ;;  %s1153_s1 = inlined_call_operand.vmem [shape: bf16[2,512,128], index: 1, kind: input, shape index: {}]   ;;  %s1154_s2 = inlined_call_operand.vmem [shape: f32[32,1], index: 2, kind: input, shape index: {}]   ;;  %s1155_s3 = inlined_call_operand.vmem [shape: f32[2,32,128], index: 3, kind: output, shape index: {}]  }
   0x1   :  { %s997_s14 = smov 0   ;;  %s999_s15 = smov 0  }
   0x2   :  { %s1001_s16 = smov 0   ;;  %s1003_s17 = smov 0  }
   0x3   :  { %s1005_s18 = smov 0  }
   0x4 LB: > { %s22_s19 = sadd.s32 1, %s961_s16  ;;  %s25_s20 = sadd.s32 1, %s965_s17  ;;  %s969_s18 = sphi %s1005_s18, %s13_s18   ;;  %s965_s17 = sphi %s1003_s17, %s1161_s17   ;;  %s961_s16 = sphi %s1001_s16, %s1160_s16   ;;  %s957_s15 = sphi %s999_s15, %s1159_s15   ;;  %s953_s14 = sphi %s997_s14, %s1158_s14   ;;  %s949_s13 = sphi %s995_s13, %s1157_s13   ;;  %s945_s12 = sphi %s993_s12, %s1156_s12  }
   0x5   : > { %p23_p0 = scmp.ge.s32.totalorder %s22_s19, 2  ;;  %s32_s21 = sadd.s32 1, %s949_s13 }
   0x6   : > { %p39_p1 = scmp.ne.s32.totalorder %s949_s13, %s945_s12  ;;  %p40_p2 = scmp.eq.s32.totalorder %s969_s18, 0 }
   0x7   : > { %s1163_s19 = smov (%p23_p0, %s22_s19), 0  ;;  %s1165_s20 = smov (!%p23_p0, %s25_s20), %s965_s17 }
   0x8   : > { %s29_s22 = ssub.s32 %s961_s16, %s1163_s19  ;;  %p41_p3 = por %p40_p2, %p39_p1 }
   0x9   : > { %p27_p4 = scmp.ge.s32.totalorder %s1165_s20, 2  ;;  %p30_p5 = scmp.eq.s32.totalorder %s29_s22, 0 }
   0xa   : > { %p714_p6 = scmp.ge.s32.totalorder %s969_s18, 4 }
   0xb   : > { %s1167_s20 = smov (%p27_p4, %s1165_s20), 0 }
   0xc   : > { %s1042_s23 = scalar_select %p30_p5, %s949_s13, %s32_s21  }
   0xd   : > { %143 = sbr.rel (%p714_p6) target bundleno = 26 (0x1a), region = 20 }
  0x12   : > { %146 = sbr.rel (!%p41_p3) target bundleno = 26 (0x1a), region = 24  ;;  %s148_s24 = sand.u32 (%p41_p3), 1, %s949_s13  }
  0x13   : > { %s809_s25 = sshll.u32 (%p41_p3), %s961_s16, 3  ;;  %s715_s26 = sshll.u32 (%p41_p3), %s148_s24, 5 }
  0x14   : > { %s153_s29 = scalar_lea.vmem (%p41_p3), %s1152_s0, %s809_s25  ;;  %s150_s30 = scalar_lea.vmem (%p41_p3), [#allocation3], %s715_s26 }
  0x15   : > { %v188_v0 = vld [vmem:[%s153_s29] sm:$0xff] (%p41_p3)  ;;  %v190_v1 = vld [vmem:[%s153_s29 + $0x10] sm:$0xff] (%p41_p3) }
  0x16   : > { %v192_v2 = vld [vmem:[%s153_s29 + $0x20] sm:$0xff] (%p41_p3)  ;;  %189 = vst [vmem:[%s150_s30] sm:$0xff] (%p41_p3), %v188_v0  ;;  %v194_v3 = vld [vmem:[%s153_s29 + $0x30] sm:$0xff] (%p41_p3) }
  0x17   : > { %191 = vst [vmem:[%s150_s30 + $0x8] sm:$0xff] %v190_v1 }
  0x18   : > { %193 = vst [vmem:[%s150_s30 + $0x10] sm:$0xff] %v192_v2 }
  0x19   : > { %195 = vst [vmem:[%s150_s30 + $0x18] sm:$0xff] %v194_v3 }
  0x1a PF: > { %p718_p7 = scmp.ge.s32.totalorder %s969_s18, 1  ;;  %p213_p8 = scmp.lt.s32.totalorder %s969_s18, 5 }
  0x1c   : > { %p214_p9 = pnand %p718_p7, %p213_p8 }
  0x1d   : > { %s220_s4 = sand.u32 (!%p214_p9), 1, %s945_s12   ;;  %s720_s5 = sshll.u32 (!%p214_p9), %s953_s14, 5 }
  0x1e   : > { %217 = sbr.rel (%p214_p9) target bundleno = 533 (0x215), region = 66  ;;  %s719_s6 = sshll.u32 (!%p214_p9), %s220_s4, 5 }
  0x1f   : > { %p254_p10 = scmp.lt.s32.totalorder (!%p214_p9), %s957_s15, 1  ;;  %p256_p11 = scmp.lt.s32.totalorder (!%p214_p9), %s720_s5, 63 }
  0x20   : > { %s1066_s12 = scalar_lea.vmem (!%p214_p9), [#allocation3], %s719_s6  ;;  %p725_p12 = scmp.ne.s32.totalorder (!%p214_p9), %s953_s14, 0 }
  0x23   : > { %s1169_s15 = smov (!%p254_p10, %s957_s15), 1  ;;  %s1171_s5 = smov (!%p256_p11, %s720_s5), 63 }
  0x24   : > { %s721_s7 = sshll.u32 %s1169_s15, 6  ;;  %s810_s8 = sshll.u32 %s1169_s15, 5 }
  0x25   : > { %s259_s9 = sadd.s32 %s721_s7, %s1171_s5  ;;  %s1059_s21 = scalar_lea.vmem %s1155_s3, %s810_s8 }
  0x26   : > { %s722_s22 = sshll.u32 %s259_s9, 2  ;;  %271 = sbr.rel (%p725_p12) target bundleno = 48 (0x30), region = 74 }
  0x27   : > { %s1064_s26 = scalar_lea.vmem %s1153_s1, %s722_s22 }
  0x2b   : > { %v971_v4 = vmov 0.0  }
  0x2c   : > { %272 = vst [vmem:[#allocation2 + $0x10] sm:$0xff] %v971_v4 }
  0x2d   : > { %273 = vst [vmem:[#allocation2] sm:$0xff] %v971_v4 }
  0x2e   : > { %274 = vst [vmem:[#allocation2 + $0x18] sm:$0xff] %v971_v4 }
  0x2f   : > { %275 = vst [vmem:[#allocation2 + $0x8] sm:$0xff] %v971_v4 }
  0x30 PF: > { %v822_v5 = vld [vmem:[%s1064_s26 + $0x38] sm:$0xff]  ;;  %v821_v7 = vld [vmem:[%s1064_s26 + $0x30] sm:$0xff]  ;;  %v820_v9 = vld [vmem:[%s1064_s26 + $0x28] sm:$0xff]  ;;  %p806_p13 = scmp.ne.s32.totalorder %s953_s14, 1 }
  0x31   : > { %v830_v6 = vld [vmem:[%s1064_s26 + $0x78] sm:$0xff]  ;;  %432 = vmatpush.bf16.msra.mxu0 %v822_v5  ;;  %831 = vmatpush.bf16.msra.mxu2 %v822_v5  ;;  %v829_v8 = vld [vmem:[%s1064_s26 + $0x70] sm:$0xff]  ;;  %v828_v10 = vld [vmem:[%s1064_s26 + $0x68] sm:$0xff] }
  0x32   : > { %451 = vmatpush.bf16.msra.mxu1 %v830_v6  ;;  %839 = vmatpush.bf16.msra.mxu3 %v830_v6  ;;  %v819_v11 = vld [vmem:[%s1064_s26 + $0x20] sm:$0xff]  ;;  %v818_v13 = vld [vmem:[%s1064_s26 + $0x18] sm:$0xff]  ;;  %v817_v15 = vld [vmem:[%s1064_s26 + $0x10] sm:$0xff] }
  0x33   : > { %v827_v12 = vld [vmem:[%s1064_s26 + $0x60] sm:$0xff]  ;;  %v826_v14 = vld [vmem:[%s1064_s26 + $0x58] sm:$0xff]  ;;  %v825_v16 = vld [vmem:[%s1064_s26 + $0x50] sm:$0xff] }
  0x34   : > { %v816_v17 = vld [vmem:[%s1064_s26 + $0x8] sm:$0xff]  ;;  %v815_v19 = vld [vmem:[%s1064_s26] sm:$0xff]  ;;  %v736_v23 = vld [vmem:[%s1066_s12 + $0x10] sm:$0xf] }
  0x35   : > { %433 = vmatpush.bf16.msra.mxu0 %v821_v7  ;;  %832 = vmatpush.bf16.msra.mxu2 %v821_v7  ;;  %v824_v18 = vld [vmem:[%s1064_s26 + $0x48] sm:$0xff]  ;;  %v823_v20 = vld [vmem:[%s1064_s26 + $0x40] sm:$0xff]  ;;  %v814_v24 = vld [vmem:[%s1066_s12 + $0x14] sm:$0xf0] }
  0x36   : > { %452 = vmatpush.bf16.msra.mxu1 %v829_v8  ;;  %840 = vmatpush.bf16.msra.mxu3 %v829_v8  ;;  %v728_v21 = vld [vmem:[%s1066_s12] sm:$0xf]  ;;  %v812_v22 = vld [vmem:[%s1066_s12 + $0x4] sm:$0xf0]  ;;  %v811_v25 = vld [vmem:[%s1066_s12 + $0x4] sm:$0xf]  ;;  %v737_v30 = vor.u32 %v814_v24, %v736_v23 }
  0x37   : > { %v730_v26 = vld [vmem:[%s1066_s12 + $0x8] sm:$0xf0]  ;;  %v813_v27 = vld [vmem:[%s1066_s12 + $0x14] sm:$0xf]  ;;  %v738_v28 = vld [vmem:[%s1066_s12 + $0x18] sm:$0xf0]  ;;  %v729_v29 = vor.u32 %v812_v22, %v728_v21 }
  0x38   : > { %v733_v31 = vor.u32 %v811_v25, %v730_v26  ;;  %v741_v32 = vor.u32 %v813_v27, %v738_v28  ;;  %v276_v34 = vld [vmem:[#allocation2 + $0x10] sm:$0xff]  ;;  %v278_v39 = vld [vmem:[#allocation2 + $0x18] sm:$0xff]  ;;  %v277_v43 = vld [vmem:[#allocation2] sm:$0xff] }
  0x39   : > { %434 = vmatpush.bf16.msra.mxu0 %v820_v9  ;;  %833 = vmatpush.bf16.msra.mxu2 %v820_v9  ;;  %v279_v49 = vld [vmem:[#allocation2 + $0x8] sm:$0xff] }
  0x3a   : > { %453 = vmatpush.bf16.msra.mxu1 %v828_v10  ;;  %841 = vmatpush.bf16.msra.mxu3 %v828_v10 }
  0x3d   : > { %435 = vmatpush.bf16.msra.mxu0 %v819_v11  ;;  %834 = vmatpush.bf16.msra.mxu2 %v819_v11 }
  0x3e   : > { %454 = vmatpush.bf16.msra.mxu1 %v827_v12  ;;  %842 = vmatpush.bf16.msra.mxu3 %v827_v12 }
  0x41   : > { %436 = vmatpush.bf16.msra.mxu0 %v818_v13  ;;  %835 = vmatpush.bf16.msra.mxu2 %v818_v13 }
  0x42   : > { %455 = vmatpush.bf16.msra.mxu1 %v826_v14  ;;  %843 = vmatpush.bf16.msra.mxu3 %v826_v14 }
  0x45   : > { %437 = vmatpush.bf16.msra.mxu0 %v817_v15  ;;  %836 = vmatpush.bf16.msra.mxu2 %v817_v15 }
  0x46   : > { %456 = vmatpush.bf16.msra.mxu1 %v825_v16  ;;  %844 = vmatpush.bf16.msra.mxu3 %v825_v16 }
  0x49   : > { %438 = vmatpush.bf16.msra.mxu0 %v816_v17  ;;  %837 = vmatpush.bf16.msra.mxu2 %v816_v17 }
  0x4a   : > { %457 = vmatpush.bf16.msra.mxu1 %v824_v18  ;;  %845 = vmatpush.bf16.msra.mxu3 %v824_v18 }
  0x4d   : > { %439 = vmatpush.bf16.msra.mxu0 %v815_v19  ;;  %838 = vmatpush.bf16.msra.mxu2 %v815_v19 }
  0x4e   : > { %458 = vmatpush.bf16.msra.mxu1 %v823_v20  ;;  %846 = vmatpush.bf16.msra.mxu3 %v823_v20 }
  0x50   : > { %440 = vmatmul.bf16.vlgmr.msra.gmra.mxu0 %v729_v29  ;;  %445 = vmatmul.bf16.vlgmr.msra.gmra.mxu2 %v737_v30 }
  0x51   : > { %459 = vmatmul.bf16.vlgmr.msra.gmra.mxu1 %v733_v31  ;;  %464 = vmatmul.bf16.vlgmr.msra.gmra.mxu3 %v741_v32 }
  0xcd   : > { %v441_v33 = vpop.f32.mrf.mxu0 }
  0xce   : > { %v460_v35 = vpop.f32.mrf.mxu1 }
  0xcf   : > { %v461_v36 = vadd.f32 %v460_v35, %v441_v33 }
  0xd1   : > { %v470_v37 = vadd.f32 %v461_v36, %v276_v34 }
  0xd3   : > { %474 = vst [vmem:[#allocation2 + $0x10] sm:$0xff] %v470_v37  ;;  %v446_v38 = vpop.f32.mrf.mxu2 }
  0xd4   : > { %v465_v40 = vpop.f32.mrf.mxu3 }
  0xd5   : > { %v466_v41 = vadd.f32 %v465_v40, %v446_v38  ;;  %v443_v42 = vpop.f32.mrf.mxu0 }
  0xd6   : > { %v462_v44 = vpop.f32.mrf.mxu1 }
  0xd7   : > { %v472_v45 = vadd.f32 %v466_v41, %v278_v39  ;;  %v463_v46 = vadd.f32 %v462_v44, %v443_v42 }
  0xd9   : > { %476 = vst [vmem:[#allocation2 + $0x18] sm:$0xff] %v472_v45  ;;  %v471_v47 = vadd.f32 %v463_v46, %v277_v43 }
  0xdb   : > { %475 = vst [vmem:[#allocation2] sm:$0xff] %v471_v47  ;;  %v448_v48 = vpop.f32.mrf.mxu2 }
  0xdc   : > { %v467_v50 = vpop.f32.mrf.mxu3 }
  0xdd   : > { %v468_v51 = vadd.f32 %v467_v50, %v448_v48  ;;  %481 = sbr.rel (%p806_p13) target bundleno = 533 (0x215), region = 78 }
  0xdf   : > { %v473_v52 = vadd.f32 %v468_v51, %v279_v49 }
  0xe1   : > { %477 = vst [vmem:[#allocation2 + $0x8] sm:$0xff] %v473_v52 }
  0xe2   : > { %v488_v53 = vld [vmem:[%s1154_s2 + $0x10] sm:$0xff]  ;;  %v486_v54 = vld [vmem:[%s1154_s2] sm:$0xff]  ;;  %v972_v55 = vmov 0   ;;  %v489_v56 = vld [vmem:[%s1154_s2 + $0x18] sm:$0xff]  ;;  %v514_v58 = vlaneseq }
  0xe3   : > { %906 = vset.pattern.permute.xlu1 %v972_v55  ;;  %905 = vset.pattern.permute.xlu0 %v972_v55  ;;  %v487_v57 = vld [vmem:[%s1154_s2 + $0x8] sm:$0xff]  ;;  %v484_v60 = vld [vmem:[#allocation2 + $0x18] sm:$0xff]  ;;  %v482_v61 = vld [vmem:[#allocation2 + $0x10] sm:$0xff] }
  0xe4   : > { %502 = vperm.xlu1 %906, %v488_v53   ;;  %492 = vperm.xlu0 %905, %v486_v54   ;;  %v515_v59 = vand.u32 127, %v514_v58  ;;  %v483_v5 = vld [vmem:[#allocation2] sm:$0xff] }
  0xe6   : > { %vm516_vm0 = vcmp.lt.s32.totalorder %v515_v59, 16 }
  0xe8   : > { %v485_v4 = vld [vmem:[#allocation2 + $0x8] sm:$0xff] }
  0xec   : > { %507 = vperm.xlu1 %906, %v489_v56   ;;  %497 = vperm.xlu0 %905, %v487_v57  }
 0x156   : > { %v503_v62 = vpop.permute.xlu1 %502  ;;  %v493_v63 = vpop.permute.xlu0 %492 }
 0x157   : > { %v1106_v0 = vadd.f32 %v503_v62, %v484_v60  ;;  %v1108_v1 = vadd.f32 %v493_v63, %v482_v61 }
 0x159   : > { %v519_v2 = vsel %vm516_vm0, %v1106_v0, 0.0  ;;  %v517_v3 = vsel %vm516_vm0, %v1108_v1, 0.0 }
 0x15a   : > { %525 = vadd.xlane.f32.xlu0 %v519_v2  ;;  %521 = vadd.xlane.f32.xlu2 %v517_v3  ;;  %v533_v12 = vmul.f32 %v517_v3, %v517_v3  ;;  %v535_v14 = vmul.f32 %v519_v2, %v519_v2 }
 0x15e   : > { %v508_v6 = vpop.permute.xlu1 %507  ;;  %v498_v7 = vpop.permute.xlu0 %497 }
 0x15f   : > { %v1112_v8 = vadd.f32 %v508_v6, %v485_v4  ;;  %v1114_v9 = vadd.f32 %v498_v7, %v483_v5 }
 0x161   : > { %v520_v10 = vsel %vm516_vm0, %v1112_v8, 0.0  ;;  %v518_v11 = vsel %vm516_vm0, %v1114_v9, 0.0 }
 0x162   : > { %527 = vadd.xlane.f32.xlu1 %v520_v10  ;;  %523 = vadd.xlane.f32.xlu2 %v518_v11  ;;  %v534_v13 = vmul.f32 %v518_v11, %v518_v11  ;;  %v536_v15 = vmul.f32 %v520_v10, %v520_v10 }
 0x16a   : > { %537 = vadd.xlane.f32.xlu2 %v533_v12 }
 0x172   : > { %539 = vadd.xlane.f32.xlu2 %v534_v13 }
 0x17a   : > { %541 = vadd.xlane.f32.xlu2 %v535_v14 }
 0x182   : > { %543 = vadd.xlane.f32.xlu2 %v536_v15 }
 0x1cd   : > { %v522_v16 = vpop.xlane.xlu2 %521  ;;  %v526_v29 = vpop.xlane.xlu0 %525 }
 0x1ce   : > { %v529_v18 = vmul.f32 0.0625, %v522_v16  ;;  %v1118_v31 = vmul.f32 0.0625, %v526_v29 }
 0x1d0   : > { %v549_v20 = vmul.f32 %v529_v18, %v529_v18  ;;  %v551_v34 = vmul.f32 %v1118_v31, %v1118_v31  ;;  %v561_v51 = vsub.f32 %v1108_v1, %v529_v18  ;;  %v563_v15 = vsub.f32 %v1106_v0, %v1118_v31 }
 0x1d5   : > { %v524_v17 = vpop.xlane.xlu2 %523  ;;  %v528_v41 = vpop.xlane.xlu1 %527 }
 0x1d6   : > { %v530_v23 = vmul.f32 0.0625, %v524_v17  ;;  %v532_v46 = vmul.f32 0.0625, %v528_v41 }
 0x1d8   : > { %v550_v27 = vmul.f32 %v530_v23, %v530_v23  ;;  %v552_v52 = vmul.f32 %v532_v46, %v532_v46  ;;  %v562_v3 = vsub.f32 %v1114_v9, %v530_v23 }
 0x1dd   : > { %v538_v19 = vpop.xlane.xlu2 %537 }
 0x1de   : > { %v545_v21 = vmul.f32 0.0625, %v538_v19 }
 0x1e0   : > { %v553_v22 = vsub.f32 %v545_v21, %v549_v20 }
 0x1e2   : > { %v557_v24 = vmax.f32 %v553_v22, 0.0  ;;  %v564_v22 = vsub.f32 %v1112_v8, %v532_v46 }
 0x1e4   : > { %v565_v25 = vadd.f32 1e-05, %v557_v24 }
 0x1e5   : > { %v540_v26 = vpop.xlane.xlu2 %539 }
 0x1e6   : > { %907 = vrsqrt.f32 %v565_v25  ;;  %v546_v28 = vmul.f32 0.0625, %v540_v26  ;;  %vm575_vm2 = vweird.f32 %v565_v25 }
 0x1e8   : > { %v554_v30 = vsub.f32 %v546_v28, %v550_v27 }
 0x1ea   : > { %v558_v32 = vmax.f32 %v554_v30, 0.0 }
 0x1ec   : > { %v908_v33 = vpop.eup %907  ;;  %v566_v35 = vadd.f32 1e-05, %v558_v32 }
 0x1ed   : > { %v570_v36 = vmul.f32 %v908_v33, %v565_v25  ;;  %v542_v37 = vpop.xlane.xlu2 %541  ;;  %vm576_vm1 = vweird.f32 %v908_v33 }
 0x1ee   : > { %909 = vrsqrt.f32 %v566_v35  ;;  %v547_v38 = vmul.f32 0.0625, %v542_v37  ;;  %vm577_vm3 = vmor %vm575_vm2, %vm576_vm1  ;;  %vm585_vm5 = vweird.f32 %v566_v35 }
 0x1ef   : > { %v571_v39 = vmul.f32 %v908_v33, %v570_v36 }
 0x1f0   : > { %v555_v40 = vsub.f32 %v547_v38, %v551_v34 }
 0x1f1   : > { %v572_v42 = vmul.f32 0.5, %v571_v39 }
 0x1f2   : > { %v559_v43 = vmax.f32 %v555_v40, 0.0 }
 0x1f3   : > { %v573_v44 = vsub.f32 1.5, %v572_v42 }
 0x1f4   : > { %v910_v45 = vpop.eup %909  ;;  %v567_v47 = vadd.f32 1e-05, %v559_v43 }
 0x1f5   : > { %v574_v48 = vmul.f32 %v908_v33, %v573_v44  ;;  %v580_v49 = vmul.f32 %v910_v45, %v566_v35  ;;  %v544_v50 = vpop.xlane.xlu2 %543  ;;  %vm586_vm4 = vweird.f32 %v910_v45 }
 0x1f6   : > { %911 = vrsqrt.f32 %v567_v47  ;;  %v548_v53 = vmul.f32 0.0625, %v544_v50  ;;  %vm587_vm6 = vmor %vm585_vm5, %vm586_vm4  ;;  %vm595_vm8 = vweird.f32 %v567_v47 }
 0x1f7   : > { %v578_v54 = vsel %vm577_vm3, %v908_v33, %v574_v48  ;;  %v581_v55 = vmul.f32 %v910_v45, %v580_v49 }
 0x1f8   : > { %v609_v56 = vmul.f32 %v578_v54, %v561_v51  ;;  %v556_v57 = vsub.f32 %v548_v53, %v552_v52 }
 0x1f9   : > { %v582_v58 = vmul.f32 0.5, %v581_v55 }
 0x1fa   : > { %v613_v59 = vmax.f32 %v609_v56, 0.0  ;;  %v560_v60 = vmax.f32 %v556_v57, 0.0 }
 0x1fb   : > { %v583_v61 = vsub.f32 1.5, %v582_v58 }
 0x1fc   : > { %v912_v62 = vpop.eup %911  ;;  %617 = vst [vmem:[%s1059_s21] sm:$0xff] %v613_v59  ;;  %v568_v63 = vadd.f32 1e-05, %v560_v60 }
 0x1fd   : > { %v584_v2 = vmul.f32 %v910_v45, %v583_v61  ;;  %v590_v1 = vmul.f32 %v912_v62, %v567_v47  ;;  %vm596_vm7 = vweird.f32 %v912_v62 }
 0x1fe   : > { %913 = vrsqrt.f32 %v568_v63  ;;  %vm597_vm9 = vmor %vm595_vm8, %vm596_vm7  ;;  %vm605_vm11 = vweird.f32 %v568_v63 }
 0x1ff   : > { %v588_v4 = vsel %vm587_vm6, %v910_v45, %v584_v2  ;;  %v591_v5 = vmul.f32 %v912_v62, %v590_v1 }
 0x200   : > { %v610_v6 = vmul.f32 %v588_v4, %v562_v3 }
 0x201   : > { %v592_v7 = vmul.f32 0.5, %v591_v5 }
 0x202   : > { %v614_v10 = vmax.f32 %v610_v6, 0.0 }
 0x203   : > { %v593_v11 = vsub.f32 1.5, %v592_v7 }
 0x204   : > { %v914_v12 = vpop.eup %913  ;;  %618 = vst [vmem:[%s1059_s21 + $0x8] sm:$0xff] %v614_v10 }
 0x205   : > { %v594_v13 = vmul.f32 %v912_v62, %v593_v11  ;;  %v600_v14 = vmul.f32 %v914_v12, %v568_v63  ;;  %vm606_vm10 = vweird.f32 %v914_v12 }
 0x206   : > { %vm607_vm12 = vmor %vm605_vm11, %vm606_vm10 }
 0x207   : > { %v598_v9 = vsel %vm597_vm9, %v912_v62, %v594_v13  ;;  %v601_v16 = vmul.f32 %v914_v12, %v600_v14 }
 0x208   : > { %v611_v17 = vmul.f32 %v598_v9, %v563_v15 }
 0x209   : > { %v602_v18 = vmul.f32 0.5, %v601_v16 }
 0x20a   : > { %v615_v19 = vmax.f32 %v611_v17, 0.0 }
 0x20b   : > { %v603_v20 = vsub.f32 1.5, %v602_v18 }
 0x20c   : > { %619 = vst [vmem:[%s1059_s21 + $0x10] sm:$0xff] %v615_v19 }
 0x20d   : > { %v604_v21 = vmul.f32 %v914_v12, %v603_v20 }
 0x20f   : > { %v608_v23 = vsel %vm607_vm12, %v914_v12, %v604_v21 }
 0x210   : > { %v612_v24 = vmul.f32 %v608_v23, %v564_v22 }
 0x212   : > { %v616_v25 = vmax.f32 %v612_v24, 0.0 }
 0x214   : > { %620 = vst [vmem:[%s1059_s21 + $0x18] sm:$0xff] %v616_v25 }
 0x215 PF: > { %s13_s18 = sadd.s32 1, %s969_s18   ;;  %s1156_s12 = smov %s949_s13 }
 0x216   : > { %p10_p0 = scmp.ge.s32.totalorder %s13_s18, 6   ;;  %s1157_s13 = smov %s1042_s23 }
 0x217   : > { %s1158_s14 = smov %s961_s16  ;;  %s1159_s15 = smov %s965_s17 }
 0x218   : > { %s1160_s16 = smov %s1163_s19  ;;  %s1161_s17 = smov %s1167_s20 }
 0x219   :  { %12 = sbr.rel (!%p10_p0) target bundleno = 4 (0x4), region = 116 }

// kernel: generator_forward.17
= control target key start
LH: loop header
LB: loop body
LE: loop exit
PB: predicated region body
PF: predicated region fallthrough
CT: control target
= control target key end

     0   :  { %s856_s12 = smov 0   ;;  %s858_s13 = smov 0   ;;  %s982_s0 = inlined_call_operand.vmem [shape: bf16[16,512], index: 0, kind: input, shape index: {}]   ;;  %s983_s1 = inlined_call_operand.vmem [shape: bf16[2,512,128], index: 1, kind: input, shape index: {}]   ;;  %s984_s2 = inlined_call_operand.vmem [shape: f32[16,1], index: 2, kind: input, shape index: {}]   ;;  %s985_s3 = inlined_call_operand.vmem [shape: f32[2,16,128], index: 3, kind: output, shape index: {}]  }
   0x1   :  { %s860_s14 = smov 0   ;;  %s862_s15 = smov 0  }
   0x2   :  { %s864_s16 = smov 0   ;;  %s866_s17 = smov 0  }
   0x3   :  { %s868_s18 = smov 0  }
   0x4 LB: > { %s22_s19 = sadd.s32 1, %s824_s16  ;;  %s25_s20 = sadd.s32 1, %s828_s17  ;;  %s832_s18 = sphi %s868_s18, %s13_s18   ;;  %s828_s17 = sphi %s866_s17, %s991_s17   ;;  %s824_s16 = sphi %s864_s16, %s990_s16   ;;  %s820_s15 = sphi %s862_s15, %s989_s15   ;;  %s816_s14 = sphi %s860_s14, %s988_s14   ;;  %s812_s13 = sphi %s858_s13, %s987_s13   ;;  %s808_s12 = sphi %s856_s12, %s986_s12  }
   0x5   : > { %p23_p0 = scmp.ge.s32.totalorder %s22_s19, 2  ;;  %s32_s21 = sadd.s32 1, %s812_s13 }
   0x6   : > { %p39_p1 = scmp.ne.s32.totalorder %s812_s13, %s808_s12  ;;  %p40_p2 = scmp.eq.s32.totalorder %s832_s18, 0 }
   0x7   : > { %s993_s19 = smov (%p23_p0, %s22_s19), 0  ;;  %s995_s20 = smov (!%p23_p0, %s25_s20), %s828_s17 }
   0x8   : > { %s29_s22 = ssub.s32 %s824_s16, %s993_s19  ;;  %p41_p3 = por %p40_p2, %p39_p1 }
   0x9   : > { %p27_p4 = scmp.ge.s32.totalorder %s995_s20, 2  ;;  %p30_p5 = scmp.eq.s32.totalorder %s29_s22, 0 }
   0xa   : > { %p608_p6 = scmp.ge.s32.totalorder %s832_s18, 4 }
   0xb   : > { %s997_s20 = smov (%p27_p4, %s995_s20), 0 }
   0xc   : > { %s905_s23 = scalar_select %p30_p5, %s812_s13, %s32_s21  }
   0xd   : > { %143 = sbr.rel (%p608_p6) target bundleno = 24 (0x18), region = 20 }
  0x12   : > { %146 = sbr.rel (!%p41_p3) target bundleno = 24 (0x18), region = 24  ;;  %s148_s24 = sand.u32 (%p41_p3), 1, %s812_s13  }
  0x13   : > { %s695_s25 = sshll.u32 (%p41_p3), %s824_s16, 3  ;;  %s609_s26 = sshll.u32 (%p41_p3), %s148_s24, 4 }
  0x14   : > { %s153_s29 = scalar_lea.vmem (%p41_p3), %s982_s0, %s695_s25  ;;  %s150_s30 = scalar_lea.vmem (%p41_p3), [#allocation3], %s609_s26 }
  0x15   : > { %v184_v0 = vld [vmem:[%s153_s29] sm:$0xff] (%p41_p3)  ;;  %v186_v1 = vld [vmem:[%s153_s29 + $0x10] sm:$0xff] (%p41_p3) }
  0x16   : > { %185 = vst [vmem:[%s150_s30] sm:$0xff] (%p41_p3), %v184_v0 }
  0x17   : > { %187 = vst [vmem:[%s150_s30 + $0x8] sm:$0xff] %v186_v1 }
  0x18 PF: > { %p612_p7 = scmp.ge.s32.totalorder %s832_s18, 1  ;;  %p205_p8 = scmp.lt.s32.totalorder %s832_s18, 5 }
  0x1a   : > { %p206_p9 = pnand %p612_p7, %p205_p8 }
  0x1b   : > { %s212_s4 = sand.u32 (!%p206_p9), 1, %s808_s12   ;;  %s614_s5 = sshll.u32 (!%p206_p9), %s816_s14, 5 }
  0x1c   : > { %209 = sbr.rel (%p206_p9) target bundleno = 493 (0x1ed), region = 66  ;;  %s613_s6 = sshll.u32 (!%p206_p9), %s212_s4, 4 }
  0x1d   : > { %p246_p10 = scmp.lt.s32.totalorder (!%p206_p9), %s820_s15, 1  ;;  %p248_p11 = scmp.lt.s32.totalorder (!%p206_p9), %s614_s5, 63 }
  0x1e   : > { %s929_s12 = scalar_lea.vmem (!%p206_p9), [#allocation3], %s613_s6  ;;  %p619_p12 = scmp.ne.s32.totalorder (!%p206_p9), %s816_s14, 0 }
  0x21   : > { %s999_s15 = smov (!%p246_p10, %s820_s15), 1  ;;  %s1001_s5 = smov (!%p248_p11, %s614_s5), 63 }
  0x22   : > { %s615_s7 = sshll.u32 %s999_s15, 6  ;;  %s696_s8 = sshll.u32 %s999_s15, 4 }
  0x23   : > { %s251_s9 = sadd.s32 %s615_s7, %s1001_s5  ;;  %s922_s21 = scalar_lea.vmem %s985_s3, %s696_s8 }
  0x24   : > { %s616_s22 = sshll.u32 %s251_s9, 2  ;;  %263 = sbr.rel (%p619_p12) target bundleno = 44 (0x2c), region = 74 }
  0x25   : > { %s927_s26 = scalar_lea.vmem %s983_s1, %s616_s22 }
  0x29   : > { %v834_v2 = vmov 0.0  }
  0x2a   : > { %264 = vst [vmem:[#allocation2] sm:$0xff] %v834_v2 }
  0x2b   : > { %265 = vst [vmem:[#allocation2 + $0x8] sm:$0xff] %v834_v2 }
  0x2c PF: > { %v706_v3 = vld [vmem:[%s927_s26 + $0x38] sm:$0xff]  ;;  %v705_v5 = vld [vmem:[%s927_s26 + $0x30] sm:$0xff]  ;;  %v704_v7 = vld [vmem:[%s927_s26 + $0x28] sm:$0xff]  ;;  %p692_p13 = scmp.ne.s32.totalorder %s816_s14, 1 }
  0x2d   : > { %v714_v4 = vld [vmem:[%s927_s26 + $0x78] sm:$0xff]  ;;  %408 = vmatpush.bf16.msra.mxu0 %v706_v3  ;;  %v713_v6 = vld [vmem:[%s927_s26 + $0x70] sm:$0xff]  ;;  %v712_v8 = vld [vmem:[%s927_s26 + $0x68] sm:$0xff] }
  0x2e   : > { %422 = vmatpush.bf16.msra.mxu1 %v714_v4  ;;  %v703_v9 = vld [vmem:[%s927_s26 + $0x20] sm:$0xff]  ;;  %v702_v11 = vld [vmem:[%s927_s26 + $0x18] sm:$0xff]  ;;  %v701_v13 = vld [vmem:[%s927_s26 + $0x10] sm:$0xff] }
  0x2f   : > { %v711_v10 = vld [vmem:[%s927_s26 + $0x60] sm:$0xff]  ;;  %v710_v12 = vld [vmem:[%s927_s26 + $0x58] sm:$0xff]  ;;  %v709_v14 = vld [vmem:[%s927_s26 + $0x50] sm:$0xff] }
  0x30   : > { %v700_v15 = vld [vmem:[%s927_s26 + $0x8] sm:$0xff]  ;;  %v699_v17 = vld [vmem:[%s927_s26] sm:$0xff] }
  0x31   : > { %409 = vmatpush.bf16.msra.mxu0 %v705_v5  ;;  %v708_v16 = vld [vmem:[%s927_s26 + $0x48] sm:$0xff]  ;;  %v707_v18 = vld [vmem:[%s927_s26 + $0x40] sm:$0xff] }
  0x32   : > { %423 = vmatpush.bf16.msra.mxu1 %v713_v6  ;;  %v622_v19 = vld [vmem:[%s929_s12] sm:$0xf]  ;;  %v698_v20 = vld [vmem:[%s929_s12 + $0x4] sm:$0xf0]  ;;  %v697_v21 = vld [vmem:[%s929_s12 + $0x4] sm:$0xf] }
  0x33   : > { %v624_v22 = vld [vmem:[%s929_s12 + $0x8] sm:$0xf0]  ;;  %v623_v23 = vor.u32 %v698_v20, %v622_v19  ;;  %v266_v26 = vld [vmem:[#allocation2] sm:$0xff] }
  0x34   : > { %v627_v24 = vor.u32 %v697_v21, %v624_v22  ;;  %v267_v31 = vld [vmem:[#allocation2 + $0x8] sm:$0xff] }
  0x35   : > { %410 = vmatpush.bf16.msra.mxu0 %v704_v7 }
  0x36   : > { %424 = vmatpush.bf16.msra.mxu1 %v712_v8 }
  0x39   : > { %411 = vmatpush.bf16.msra.mxu0 %v703_v9 }
  0x3a   : > { %425 = vmatpush.bf16.msra.mxu1 %v711_v10 }
  0x3d   : > { %412 = vmatpush.bf16.msra.mxu0 %v702_v11 }
  0x3e   : > { %426 = vmatpush.bf16.msra.mxu1 %v710_v12 }
  0x41   : > { %413 = vmatpush.bf16.msra.mxu0 %v701_v13 }
  0x42   : > { %427 = vmatpush.bf16.msra.mxu1 %v709_v14 }
  0x45   : > { %414 = vmatpush.bf16.msra.mxu0 %v700_v15 }
  0x46   : > { %428 = vmatpush.bf16.msra.mxu1 %v708_v16 }
  0x49   : > { %415 = vmatpush.bf16.msra.mxu0 %v699_v17 }
  0x4a   : > { %429 = vmatpush.bf16.msra.mxu1 %v707_v18 }
  0x4c   : > { %416 = vmatmul.bf16.vlgmr.msra.gmra.mxu0 %v623_v23 }
  0x4d   : > { %430 = vmatmul.bf16.vlgmr.msra.gmra.mxu1 %v627_v24 }
  0xc9   : > { %v417_v25 = vpop.f32.mrf.mxu0 }
  0xca   : > { %v431_v27 = vpop.f32.mrf.mxu1 }
  0xcb   : > { %v432_v28 = vadd.f32 %v431_v27, %v417_v25 }
  0xcd   : > { %v436_v29 = vadd.f32 %v432_v28, %v266_v26 }
  0xcf   : > { %438 = vst [vmem:[#allocation2] sm:$0xff] %v436_v29 }
  0xd1   : > { %v419_v30 = vpop.f32.mrf.mxu0 }
  0xd2   : > { %v433_v32 = vpop.f32.mrf.mxu1 }
  0xd3   : > { %v434_v33 = vadd.f32 %v433_v32, %v419_v30  ;;  %443 = sbr.rel (%p692_p13) target bundleno = 493 (0x1ed), region = 78 }
  0xd5   : > { %v437_v34 = vadd.f32 %v434_v33, %v267_v31 }
  0xd7   : > { %439 = vst [vmem:[#allocation2 + $0x8] sm:$0xff] %v437_v34 }
  0xd8   : > { %v446_v35 = vld [vmem:[%s984_s2] sm:$0xff]  ;;  %v835_v36 = vmov 0   ;;  %v447_v37 = vld [vmem:[%s984_s2 + $0x8] sm:$0xff]  ;;  %v460_v38 = vlaneseq }
  0xd9   : > { %773 = vset.pattern.permute.xlu0 %v835_v36  ;;  %v444_v40 = vld [vmem:[#allocation2] sm:$0xff] }
  0xda   : > { %450 = vperm.xlu0 %773, %v446_v35   ;;  %v461_v39 = vand.u32 127, %v460_v38 }
  0xdc   : > { %vm462_vm0 = vcmp.lt.s32.totalorder %v461_v39, 64 }
  0xde   : > { %v445_v45 = vld [vmem:[#allocation2 + $0x8] sm:$0xff] }
  0xe2   : > { %455 = vperm.xlu0 %773, %v447_v37  }
 0x14c   : > { %v451_v41 = vpop.permute.xlu0 %450 }
 0x14d   : > { %v458_v42 = vadd.f32 %v451_v41, %v444_v40 }
 0x14f   : > { %v463_v43 = vsel %vm462_vm0, %v458_v42, 0.0 }
 0x150   : > { %465 = vadd.xlane.f32.xlu1 %v463_v43  ;;  %v471_v44 = vmul.f32 %v463_v43, %v463_v43 }
 0x152   : > { %473 = vadd.xlane.f32.xlu2 %v471_v44 }
 0x154   : > { %v456_v46 = vpop.permute.xlu0 %455 }
 0x155   : > { %v459_v47 = vadd.f32 %v456_v46, %v445_v45 }
 0x157   : > { %v464_v48 = vsel %vm462_vm0, %v459_v47, 0.0 }
 0x158   : > { %467 = vadd.xlane.f32.xlu1 %v464_v48  ;;  %v472_v49 = vmul.f32 %v464_v48, %v464_v48 }
 0x15a   : > { %475 = vadd.xlane.f32.xlu2 %v472_v49 }
 0x1c3   : > { %v466_v50 = vpop.xlane.xlu1 %465 }
 0x1c4   : > { %v469_v51 = vmul.f32 0.015625, %v466_v50 }
 0x1c5   : > { %v474_v52 = vpop.xlane.xlu2 %473 }
 0x1c6   : > { %v479_v53 = vmul.f32 %v469_v51, %v469_v51  ;;  %v477_v54 = vmul.f32 0.015625, %v474_v52  ;;  %v485_v9 = vsub.f32 %v458_v42, %v469_v51 }
 0x1c8   : > { %v481_v55 = vsub.f32 %v477_v54, %v479_v53 }
 0x1ca   : > { %v483_v56 = vmax.f32 %v481_v55, 0.0 }
 0x1cb   : > { %v468_v57 = vpop.xlane.xlu1 %467 }
 0x1cc   : > { %v487_v58 = vadd.f32 1e-05, %v483_v56  ;;  %v470_v59 = vmul.f32 0.015625, %v468_v57 }
 0x1cd   : > { %v476_v60 = vpop.xlane.xlu2 %475 }
 0x1ce   : > { %774 = vrsqrt.f32 %v487_v58  ;;  %v480_v61 = vmul.f32 %v470_v59, %v470_v59  ;;  %v478_v62 = vmul.f32 0.015625, %v476_v60  ;;  %vm495_vm2 = vweird.f32 %v487_v58 }
 0x1cf   : > { %v486_v18 = vsub.f32 %v459_v47, %v470_v59 }
 0x1d0   : > { %v482_v63 = vsub.f32 %v478_v62, %v480_v61 }
 0x1d2   : > { %v484_v0 = vmax.f32 %v482_v63, 0.0 }
 0x1d4   : > { %v775_v1 = vpop.eup %774  ;;  %v488_v3 = vadd.f32 1e-05, %v484_v0 }
 0x1d5   : > { %v490_v2 = vmul.f32 %v775_v1, %v487_v58  ;;  %vm496_vm1 = vweird.f32 %v775_v1 }
 0x1d6   : > { %776 = vrsqrt.f32 %v488_v3  ;;  %vm497_vm3 = vmor %vm495_vm2, %vm496_vm1  ;;  %vm505_vm5 = vweird.f32 %v488_v3 }
 0x1d7   : > { %v491_v4 = vmul.f32 %v775_v1, %v490_v2 }
 0x1d9   : > { %v492_v5 = vmul.f32 0.5, %v491_v4 }
 0x1db   : > { %v493_v6 = vsub.f32 1.5, %v492_v5 }
 0x1dc   : > { %v777_v7 = vpop.eup %776 }
 0x1dd   : > { %v494_v8 = vmul.f32 %v775_v1, %v493_v6  ;;  %v500_v10 = vmul.f32 %v777_v7, %v488_v3  ;;  %vm506_vm4 = vweird.f32 %v777_v7 }
 0x1de   : > { %vm507_vm6 = vmor %vm505_vm5, %vm506_vm4 }
 0x1df   : > { %v498_v11 = vsel %vm497_vm3, %v775_v1, %v494_v8  ;;  %v501_v13 = vmul.f32 %v777_v7, %v500_v10 }
 0x1e0   : > { %v509_v12 = vmul.f32 %v498_v11, %v485_v9 }
 0x1e1   : > { %v502_v15 = vmul.f32 0.5, %v501_v13 }
 0x1e2   : > { %v511_v14 = vmax.f32 %v509_v12, 0.0 }
 0x1e3   : > { %v503_v16 = vsub.f32 1.5, %v502_v15 }
 0x1e4   : > { %513 = vst [vmem:[%s922_s21] sm:$0xff] %v511_v14 }
 0x1e5   : > { %v504_v17 = vmul.f32 %v777_v7, %v503_v16 }
 0x1e7   : > { %v508_v19 = vsel %vm507_vm6, %v777_v7, %v504_v17 }
 0x1e8   : > { %v510_v20 = vmul.f32 %v508_v19, %v486_v18 }
 0x1ea   : > { %v512_v21 = vmax.f32 %v510_v20, 0.0 }
 0x1ec   : > { %514 = vst [vmem:[%s922_s21 + $0x8] sm:$0xff] %v512_v21 }
 0x1ed PF: > { %s13_s18 = sadd.s32 1, %s832_s18   ;;  %s986_s12 = smov %s812_s13 }
 0x1ee   : > { %p10_p0 = scmp.ge.s32.totalorder %s13_s18, 6   ;;  %s987_s13 = smov %s905_s23 }
 0x1ef   : > { %s988_s14 = smov %s824_s16  ;;  %s989_s15 = smov %s828_s17 }
 0x1f0   : > { %s990_s16 = smov %s993_s19  ;;  %s991_s17 = smov %s997_s20 }
 0x1f1   :  { %12 = sbr.rel (!%p10_p0) target bundleno = 4 (0x4), region = 116 }

// kernel: generator_forward.19
= control target key start
LH: loop header
LB: loop body
LE: loop exit
PB: predicated region body
PF: predicated region fallthrough
CT: control target
= control target key end

     0   :  { %s1004_s12 = smov 0   ;;  %s1006_s13 = smov 0   ;;  %s1180_s0 = inlined_call_operand.vmem [shape: bf16[16,512], index: 0, kind: input, shape index: {}]   ;;  %s1181_s1 = inlined_call_operand.vmem [shape: bf16[2,512,256], index: 1, kind: input, shape index: {}]   ;;  %s1182_s2 = inlined_call_operand.vmem [shape: f32[16,1], index: 2, kind: input, shape index: {}]   ;;  %s1183_s3 = inlined_call_operand.vmem [shape: f32[2,16,256], index: 3, kind: output, shape index: {}]  }
   0x1   :  { %s1008_s14 = smov 0   ;;  %s1010_s15 = smov 0  }
   0x2   :  { %s1012_s16 = smov 0   ;;  %s1014_s17 = smov 0  }
   0x3   :  { %s1016_s18 = smov 0  }
   0x4 LB: > { %s22_s19 = sadd.s32 1, %s972_s16  ;;  %s25_s20 = sadd.s32 1, %s976_s17  ;;  %s980_s18 = sphi %s1016_s18, %s13_s18   ;;  %s976_s17 = sphi %s1014_s17, %s1189_s17   ;;  %s972_s16 = sphi %s1012_s16, %s1188_s16   ;;  %s968_s15 = sphi %s1010_s15, %s1187_s15   ;;  %s964_s14 = sphi %s1008_s14, %s1186_s14   ;;  %s960_s13 = sphi %s1006_s13, %s1185_s13   ;;  %s956_s12 = sphi %s1004_s12, %s1184_s12  }
   0x5   : > { %p23_p0 = scmp.ge.s32.totalorder %s22_s19, 2  ;;  %s32_s21 = sadd.s32 1, %s960_s13 }
   0x6   : > { %p39_p1 = scmp.ne.s32.totalorder %s960_s13, %s956_s12  ;;  %p40_p2 = scmp.eq.s32.totalorder %s980_s18, 0 }
   0x7   : > { %s1191_s19 = smov (%p23_p0, %s22_s19), 0  ;;  %s1193_s20 = smov (!%p23_p0, %s25_s20), %s976_s17 }
   0x8   : > { %s29_s22 = ssub.s32 %s972_s16, %s1191_s19  ;;  %p41_p3 = por %p40_p2, %p39_p1 }
   0x9   : > { %p27_p4 = scmp.ge.s32.totalorder %s1193_s20, 2  ;;  %p30_p5 = scmp.eq.s32.totalorder %s29_s22, 0 }
   0xa   : > { %p671_p6 = scmp.ge.s32.totalorder %s980_s18, 4 }
   0xb   : > { %s1195_s20 = smov (%p27_p4, %s1193_s20), 0 }
   0xc   : > { %s1053_s23 = scalar_select %p30_p5, %s960_s13, %s32_s21  }
   0xd   : > { %143 = sbr.rel (%p671_p6) target bundleno = 24 (0x18), region = 20 }
  0x12   : > { %146 = sbr.rel (!%p41_p3) target bundleno = 24 (0x18), region = 24  ;;  %s148_s24 = sand.u32 (%p41_p3), 1, %s960_s13  }
  0x13   : > { %s823_s25 = sshll.u32 (%p41_p3), %s972_s16, 3  ;;  %s672_s26 = sshll.u32 (%p41_p3), %s148_s24, 4 }
  0x14   : > { %s153_s29 = scalar_lea.vmem (%p41_p3), %s1180_s0, %s823_s25  ;;  %s150_s30 = scalar_lea.vmem (%p41_p3), [#allocation3], %s672_s26 }
  0x15   : > { %v184_v0 = vld [vmem:[%s153_s29] sm:$0xff] (%p41_p3)  ;;  %v186_v1 = vld [vmem:[%s153_s29 + $0x10] sm:$0xff] (%p41_p3) }
  0x16   : > { %185 = vst [vmem:[%s150_s30] sm:$0xff] (%p41_p3), %v184_v0 }
  0x17   : > { %187 = vst [vmem:[%s150_s30 + $0x8] sm:$0xff] %v186_v1 }
  0x18 PF: > { %p675_p7 = scmp.ge.s32.totalorder %s980_s18, 1  ;;  %p206_p8 = scmp.lt.s32.totalorder %s980_s18, 5 }
  0x1a   : > { %p207_p9 = pnand %p675_p7, %p206_p8 }
  0x1b   : > { %s213_s4 = sand.u32 (!%p207_p9), 1, %s956_s12   ;;  %s677_s5 = sshll.u32 (!%p207_p9), %s964_s14, 5 }
  0x1c   : > { %210 = sbr.rel (%p207_p9) target bundleno = 363 (0x16b), region = 66  ;;  %s676_s6 = sshll.u32 (!%p207_p9), %s213_s4, 4 }
  0x1d   : > { %p248_p10 = scmp.lt.s32.totalorder (!%p207_p9), %s968_s15, 1  ;;  %p250_p11 = scmp.lt.s32.totalorder (!%p207_p9), %s677_s5, 63 }
  0x1e   : > { %s1077_s27 = scalar_lea.vmem (!%p207_p9), [#allocation3], %s676_s6  ;;  %p683_p12 = scmp.ne.s32.totalorder (!%p207_p9), %s964_s14, 0 }
  0x21   : > { %s1197_s15 = smov (!%p248_p10, %s968_s15), 1  ;;  %s1199_s5 = smov (!%p250_p11, %s677_s5), 63 }
  0x22   : > { %s679_s7 = sshll.u32 %s1197_s15, 7  ;;  %s824_s8 = sshll.u32 %s1197_s15, 5 }
  0x23   : > { %s678_s9 = sshll.u32 %s1199_s5, 1  ;;  %s1070_s21 = scalar_lea.vmem %s1183_s3, %s824_s8 }
  0x24   : > { %s254_s22 = sadd.s32 %s679_s7, %s678_s9  ;;  %266 = sbr.rel (%p683_p12) target bundleno = 46 (0x2e), region = 74 }
  0x25   : > { %s680_s24 = sshll.u32 %s254_s22, 2 }
  0x26   : > { %s1075_s12 = scalar_lea.vmem %s1181_s1, %s680_s24 }
  0x29   : > { %v982_v2 = vmov 0.0  }
  0x2a   : > { %267 = vst [vmem:[#allocation2 + $0x10] sm:$0xff] %v982_v2 }
  0x2b   : > { %268 = vst [vmem:[#allocation2] sm:$0xff] %v982_v2 }
  0x2c   : > { %269 = vst [vmem:[#allocation2 + $0x18] sm:$0xff] %v982_v2 }
  0x2d   : > { %270 = vst [vmem:[#allocation2 + $0x8] sm:$0xff] %v982_v2 }
  0x2e PF: > { %v750_v3 = vld [vmem:[%s1075_s12 + $0x70] sm:$0xf]  ;;  %v842_v4 = vld [vmem:[%s1075_s12 + $0x74] sm:$0xf0]  ;;  %v841_v8 = vld [vmem:[%s1075_s12 + $0x74] sm:$0xf] }
  0x2f   : > { %v814_v5 = vld [vmem:[%s1075_s12 + $0xf0] sm:$0xf]  ;;  %v751_v6 = vor.u32 %v842_v4, %v750_v3  ;;  %v858_v7 = vld [vmem:[%s1075_s12 + $0xf4] sm:$0xf0]  ;;  %v752_v9 = vld [vmem:[%s1075_s12 + $0x78] sm:$0xf0] }
  0x30   : > { %v815_v10 = vor.u32 %v858_v7, %v814_v5  ;;  %v755_v11 = vor.u32 %v841_v8, %v752_v9  ;;  %v857_v12 = vld [vmem:[%s1075_s12 + $0xf4] sm:$0xf]  ;;  %v816_v13 = vld [vmem:[%s1075_s12 + $0xf8] sm:$0xf0]  ;;  %v742_v14 = vld [vmem:[%s1075_s12 + $0x60] sm:$0xf] }
  0x31   : > { %479 = vmatpush.bf16.msra.mxu0 %v751_v6  ;;  %v819_v15 = vor.u32 %v857_v12, %v816_v13  ;;  %v840_v16 = vld [vmem:[%s1075_s12 + $0x64] sm:$0xf0]  ;;  %v806_v17 = vld [vmem:[%s1075_s12 + $0xe0] sm:$0xf]  ;;  %v839_v21 = vld [vmem:[%s1075_s12 + $0x64] sm:$0xf] }
  0x32   : > { %v856_v18 = vld [vmem:[%s1075_s12 + $0xe4] sm:$0xf0]  ;;  %493 = vmatpush.bf16.msra.mxu1 %v815_v10  ;;  %507 = vmatpush.bf16.msra.mxu2 %v755_v11  ;;  %v743_v19 = vor.u32 %v840_v16, %v742_v14  ;;  %v744_v22 = vld [vmem:[%s1075_s12 + $0x68] sm:$0xf0]  ;;  %v855_v23 = vld [vmem:[%s1075_s12 + $0xe4] sm:$0xf] }
  0x33   : > { %v807_v20 = vor.u32 %v856_v18, %v806_v17  ;;  %521 = vmatpush.bf16.msra.mxu3 %v819_v15  ;;  %v747_v24 = vor.u32 %v839_v21, %v744_v22  ;;  %v808_v25 = vld [vmem:[%s1075_s12 + $0xe8] sm:$0xf0]  ;;  %v734_v26 = vld [vmem:[%s1075_s12 + $0x50] sm:$0xf]  ;;  %v838_v27 = vld [vmem:[%s1075_s12 + $0x54] sm:$0xf0] }
  0x34   : > { %v811_v28 = vor.u32 %v855_v23, %v808_v25  ;;  %v798_v29 = vld [vmem:[%s1075_s12 + $0xd0] sm:$0xf]  ;;  %v854_v30 = vld [vmem:[%s1075_s12 + $0xd4] sm:$0xf0]  ;;  %v837_v31 = vld [vmem:[%s1075_s12 + $0x54] sm:$0xf]  ;;  %v735_v32 = vor.u32 %v838_v27, %v734_v26 }
  0x35   : > { %480 = vmatpush.bf16.msra.mxu0 %v743_v19  ;;  %v736_v33 = vld [vmem:[%s1075_s12 + $0x58] sm:$0xf0]  ;;  %v853_v34 = vld [vmem:[%s1075_s12 + $0xd4] sm:$0xf]  ;;  %v799_v36 = vor.u32 %v854_v30, %v798_v29  ;;  %v726_v38 = vld [vmem:[%s1075_s12 + $0x40] sm:$0xf] }
  0x36   : > { %v800_v35 = vld [vmem:[%s1075_s12 + $0xd8] sm:$0xf0]  ;;  %494 = vmatpush.bf16.msra.mxu1 %v807_v20  ;;  %508 = vmatpush.bf16.msra.mxu2 %v747_v24  ;;  %v739_v37 = vor.u32 %v837_v31, %v736_v33  ;;  %v836_v39 = vld [vmem:[%s1075_s12 + $0x44] sm:$0xf0]  ;;  %v790_v40 = vld [vmem:[%s1075_s12 + $0xc0] sm:$0xf] }
  0x37   : > { %522 = vmatpush.bf16.msra.mxu3 %v811_v28  ;;  %v803_v41 = vor.u32 %v853_v34, %v800_v35  ;;  %v852_v42 = vld [vmem:[%s1075_s12 + $0xc4] sm:$0xf0]  ;;  %v835_v43 = vld [vmem:[%s1075_s12 + $0x44] sm:$0xf]  ;;  %v728_v44 = vld [vmem:[%s1075_s12 + $0x48] sm:$0xf0]  ;;  %v727_v47 = vor.u32 %v836_v39, %v726_v38 }
  0x38   : > { %v851_v45 = vld [vmem:[%s1075_s12 + $0xc4] sm:$0xf]  ;;  %v792_v46 = vld [vmem:[%s1075_s12 + $0xc8] sm:$0xf0]  ;;  %v791_v48 = vor.u32 %v852_v42, %v790_v40  ;;  %v731_v49 = vor.u32 %v835_v43, %v728_v44  ;;  %v718_v50 = vld [vmem:[%s1075_s12 + $0x30] sm:$0xf] }
  0x39   : > { %481 = vmatpush.bf16.msra.mxu0 %v735_v32  ;;  %v834_v51 = vld [vmem:[%s1075_s12 + $0x34] sm:$0xf0]  ;;  %v782_v52 = vld [vmem:[%s1075_s12 + $0xb0] sm:$0xf]  ;;  %v795_v53 = vor.u32 %v851_v45, %v792_v46  ;;  %v833_v55 = vld [vmem:[%s1075_s12 + $0x34] sm:$0xf] }
  0x3a   : > { %495 = vmatpush.bf16.msra.mxu1 %v799_v36  ;;  %509 = vmatpush.bf16.msra.mxu2 %v739_v37  ;;  %v850_v54 = vld [vmem:[%s1075_s12 + $0xb4] sm:$0xf0]  ;;  %v720_v56 = vld [vmem:[%s1075_s12 + $0x38] sm:$0xf0]  ;;  %v849_v57 = vld [vmem:[%s1075_s12 + $0xb4] sm:$0xf]  ;;  %v719_v59 = vor.u32 %v834_v51, %v718_v50 }
  0x3b   : > { %523 = vmatpush.bf16.msra.mxu3 %v803_v41  ;;  %v784_v58 = vld [vmem:[%s1075_s12 + $0xb8] sm:$0xf0]  ;;  %v783_v60 = vor.u32 %v850_v54, %v782_v52  ;;  %v723_v61 = vor.u32 %v833_v55, %v720_v56  ;;  %v710_v62 = vld [vmem:[%s1075_s12 + $0x20] sm:$0xf]  ;;  %v832_v63 = vld [vmem:[%s1075_s12 + $0x24] sm:$0xf0] }
  0x3c   : > { %v774_v0 = vld [vmem:[%s1075_s12 + $0xa0] sm:$0xf]  ;;  %v787_v1 = vor.u32 %v849_v57, %v784_v58  ;;  %v848_v2 = vld [vmem:[%s1075_s12 + $0xa4] sm:$0xf0]  ;;  %v831_v3 = vld [vmem:[%s1075_s12 + $0x24] sm:$0xf]  ;;  %v711_v7 = vor.u32 %v832_v63, %v710_v62 }
  0x3d   : > { %482 = vmatpush.bf16.msra.mxu0 %v727_v47  ;;  %v712_v4 = vld [vmem:[%s1075_s12 + $0x28] sm:$0xf0]  ;;  %v847_v5 = vld [vmem:[%s1075_s12 + $0xa4] sm:$0xf]  ;;  %v775_v8 = vor.u32 %v848_v2, %v774_v0  ;;  %v702_v10 = vld [vmem:[%s1075_s12 + $0x10] sm:$0xf] }
  0x3e   : > { %496 = vmatpush.bf16.msra.mxu1 %v791_v48  ;;  %510 = vmatpush.bf16.msra.mxu2 %v731_v49  ;;  %v776_v6 = vld [vmem:[%s1075_s12 + $0xa8] sm:$0xf0]  ;;  %v715_v9 = vor.u32 %v831_v3, %v712_v4  ;;  %v830_v11 = vld [vmem:[%s1075_s12 + $0x14] sm:$0xf0]  ;;  %v766_v12 = vld [vmem:[%s1075_s12 + $0x90] sm:$0xf] }
  0x3f   : > { %524 = vmatpush.bf16.msra.mxu3 %v795_v53  ;;  %v779_v13 = vor.u32 %v847_v5, %v776_v6  ;;  %v846_v14 = vld [vmem:[%s1075_s12 + $0x94] sm:$0xf0]  ;;  %v829_v15 = vld [vmem:[%s1075_s12 + $0x14] sm:$0xf]  ;;  %v704_v16 = vld [vmem:[%s1075_s12 + $0x18] sm:$0xf0]  ;;  %v703_v19 = vor.u32 %v830_v11, %v702_v10 }
  0x40   : > { %v845_v17 = vld [vmem:[%s1075_s12 + $0x94] sm:$0xf]  ;;  %v768_v18 = vld [vmem:[%s1075_s12 + $0x98] sm:$0xf0]  ;;  %v767_v20 = vor.u32 %v846_v14, %v766_v12  ;;  %v707_v21 = vor.u32 %v829_v15, %v704_v16  ;;  %v694_v22 = vld [vmem:[%s1075_s12] sm:$0xf] }
  0x41   : > { %483 = vmatpush.bf16.msra.mxu0 %v719_v59  ;;  %v828_v23 = vld [vmem:[%s1075_s12 + $0x4] sm:$0xf0]  ;;  %v758_v24 = vld [vmem:[%s1075_s12 + $0x80] sm:$0xf]  ;;  %v771_v25 = vor.u32 %v845_v17, %v768_v18  ;;  %v827_v27 = vld [vmem:[%s1075_s12 + $0x4] sm:$0xf] }
  0x42   : > { %497 = vmatpush.bf16.msra.mxu1 %v783_v60  ;;  %511 = vmatpush.bf16.msra.mxu2 %v723_v61  ;;  %v844_v26 = vld [vmem:[%s1075_s12 + $0x84] sm:$0xf0]  ;;  %v696_v28 = vld [vmem:[%s1075_s12 + $0x8] sm:$0xf0]  ;;  %v843_v29 = vld [vmem:[%s1075_s12 + $0x84] sm:$0xf]  ;;  %v695_v31 = vor.u32 %v828_v23, %v694_v22 }
  0x43   : > { %525 = vmatpush.bf16.msra.mxu3 %v787_v1  ;;  %v760_v30 = vld [vmem:[%s1075_s12 + $0x88] sm:$0xf0]  ;;  %v686_v32 = vld [vmem:[%s1077_s27] sm:$0xf]  ;;  %v826_v33 = vld [vmem:[%s1077_s27 + $0x4] sm:$0xf0]  ;;  %v759_v34 = vor.u32 %v844_v26, %v758_v24  ;;  %v699_v35 = vor.u32 %v827_v27, %v696_v28 }
  0x44   : > { %v825_v36 = vld [vmem:[%s1077_s27 + $0x4] sm:$0xf]  ;;  %v688_v37 = vld [vmem:[%s1077_s27 + $0x8] sm:$0xf0]  ;;  %v763_v38 = vor.u32 %v843_v29, %v760_v30  ;;  %v687_v39 = vor.u32 %v826_v33, %v686_v32  ;;  %p820_p13 = scmp.ne.s32.totalorder %s964_s14, 1 }
  0x45   : > { %484 = vmatpush.bf16.msra.mxu0 %v711_v7  ;;  %v691_v40 = vor.u32 %v825_v36, %v688_v37  ;;  %v271_v42 = vld [vmem:[#allocation2 + $0x10] sm:$0xff]  ;;  %v272_v47 = vld [vmem:[#allocation2] sm:$0xff]  ;;  %v273_v51 = vld [vmem:[#allocation2 + $0x18] sm:$0xff] }
  0x46   : > { %498 = vmatpush.bf16.msra.mxu1 %v775_v8  ;;  %512 = vmatpush.bf16.msra.mxu2 %v715_v9  ;;  %v274_v57 = vld [vmem:[#allocation2 + $0x8] sm:$0xff] }
  0x47   : > { %526 = vmatpush.bf16.msra.mxu3 %v779_v13 }
  0x49   : > { %485 = vmatpush.bf16.msra.mxu0 %v703_v19 }
  0x4a   : > { %499 = vmatpush.bf16.msra.mxu1 %v767_v20  ;;  %513 = vmatpush.bf16.msra.mxu2 %v707_v21 }
  0x4b   : > { %527 = vmatpush.bf16.msra.mxu3 %v771_v25 }
  0x4d   : > { %486 = vmatpush.bf16.msra.mxu0 %v695_v31 }
  0x4e   : > { %500 = vmatpush.bf16.msra.mxu1 %v759_v34  ;;  %514 = vmatpush.bf16.msra.mxu2 %v699_v35 }
  0x4f   : > { %528 = vmatpush.bf16.msra.mxu3 %v763_v38 }
  0x50   : > { %487 = vmatmul.bf16.vlgmr.msra.gmra.mxu0 %v687_v39 }
  0x51   : > { %501 = vmatmul.bf16.vlgmr.msra.gmra.mxu1 %v691_v40  ;;  %515 = vmatmul.bf16.vlgmr.msra.gmra.mxu2 %v687_v39 }
  0x52   : > { %529 = vmatmul.bf16.vlgmr.msra.gmra.mxu3 %v691_v40 }
  0xcd   : > { %v488_v41 = vpop.f32.mrf.mxu0 }
  0xce   : > { %v502_v43 = vpop.f32.mrf.mxu1 }
  0xcf   : > { %v503_v44 = vadd.f32 %v502_v43, %v488_v41 }
  0xd1   : > { %v535_v45 = vadd.f32 %v503_v44, %v271_v42 }
  0xd3   : > { %539 = vst [vmem:[#allocation2 + $0x10] sm:$0xff] %v535_v45 }
  0xd4   : > { %v516_v46 = vpop.f32.mrf.mxu2 }
  0xd5   : > { %v530_v48 = vpop.f32.mrf.mxu3  ;;  %v490_v49 = vpop.f32.mrf.mxu0 }
  0xd6   : > { %v531_v50 = vadd.f32 %v530_v48, %v516_v46  ;;  %v504_v52 = vpop.f32.mrf.mxu1 }
  0xd7   : > { %v505_v53 = vadd.f32 %v504_v52, %v490_v49 }
  0xd8   : > { %v536_v54 = vadd.f32 %v531_v50, %v272_v47 }
  0xd9   : > { %v537_v55 = vadd.f32 %v505_v53, %v273_v51 }
  0xda   : > { %540 = vst [vmem:[#allocation2] sm:$0xff] %v536_v54 }
  0xdb   : > { %541 = vst [vmem:[#allocation2 + $0x18] sm:$0xff] %v537_v55 }
  0xdc   : > { %v518_v56 = vpop.f32.mrf.mxu2 }
  0xdd   : > { %v532_v58 = vpop.f32.mrf.mxu3 }
  0xde   : > { %v533_v59 = vadd.f32 %v532_v58, %v518_v56  ;;  %546 = sbr.rel (%p820_p13) target bundleno = 363 (0x16b), region = 78 }
  0xe0   : > { %v538_v60 = vadd.f32 %v533_v59, %v274_v57 }
  0xe2   : > { %542 = vst [vmem:[#allocation2 + $0x8] sm:$0xff] %v538_v60 }
  0xe3   : > { %v551_v61 = vld [vmem:[%s1182_s2] sm:$0xff]  ;;  %v983_v62 = vmov 0   ;;  %v552_v63 = vld [vmem:[%s1182_s2 + $0x8] sm:$0xff]  ;;  %v547_v0 = vld [vmem:[#allocation2 + $0x10] sm:$0xff] }
  0xe4   : > { %917 = vset.pattern.permute.xlu0 %v983_v62  ;;  %v548_v1 = vld [vmem:[#allocation2] sm:$0xff]  ;;  %v549_v5 = vld [vmem:[#allocation2 + $0x18] sm:$0xff] }
  0xe5   : > { %555 = vperm.xlu0 %917, %v551_v61  }
  0xe9   : > { %v550_v6 = vld [vmem:[#allocation2 + $0x8] sm:$0xff] }
  0xed   : > { %560 = vperm.xlu0 %917, %v552_v63  }
 0x157   : > { %v556_v2 = vpop.permute.xlu0 %555 }
 0x158   : > { %v563_v3 = vadd.f32 %v556_v2, %v547_v0  ;;  %v564_v4 = vadd.f32 %v556_v2, %v548_v1 }
 0x15a   : > { %918 = vtanh.f32 %v563_v3 }
 0x15b   : > { %920 = vtanh.f32 %v564_v4 }
 0x15f   : > { %v561_v7 = vpop.permute.xlu0 %560 }
 0x160   : > { %v919_v8 = vpop.eup %918  ;;  %v565_v9 = vadd.f32 %v561_v7, %v549_v5  ;;  %v566_v10 = vadd.f32 %v561_v7, %v550_v6 }
 0x161   : > { %v921_v11 = vpop.eup %920  ;;  %571 = vst [vmem:[%s1070_s21] sm:$0xff] %v919_v8 }
 0x162   : > { %572 = vst [vmem:[%s1070_s21 + $0x8] sm:$0xff] %v921_v11  ;;  %922 = vtanh.f32 %v565_v9 }
 0x163   : > { %924 = vtanh.f32 %v566_v10 }
 0x168   : > { %v923_v12 = vpop.eup %922 }
 0x169   : > { %v925_v13 = vpop.eup %924  ;;  %573 = vst [vmem:[%s1070_s21 + $0x10] sm:$0xff] %v923_v12 }
 0x16a   : > { %574 = vst [vmem:[%s1070_s21 + $0x18] sm:$0xff] %v925_v13 }
 0x16b PF: > { %s13_s18 = sadd.s32 1, %s980_s18   ;;  %s1184_s12 = smov %s960_s13 }
 0x16c   : > { %p10_p0 = scmp.ge.s32.totalorder %s13_s18, 6   ;;  %s1185_s13 = smov %s1053_s23 }
 0x16d   : > { %s1186_s14 = smov %s972_s16  ;;  %s1187_s15 = smov %s976_s17 }
 0x16e   : > { %s1188_s16 = smov %s1191_s19  ;;  %s1189_s17 = smov %s1195_s20 }
 0x16f   :  { %12 = sbr.rel (!%p10_p0) target bundleno = 4 (0x4), region = 116 }

</bundles_post_ra>
